<compile_context>
chip_gen: v7x
topology: tpu7x:2x2x1
jax: 0.10.0
libtpu: 0.0.40
codegen_flags: <defaults>
</compile_context>

<pallas_src>
import functools

import jax
import jax.numpy as jnp
from jax.experimental import pallas as pl
from jax.experimental.pallas import tpu as pltpu


_HIGHEST = jax.lax.Precision.HIGHEST


def _round_up(a, b):
    return ((a + b - 1) // b) * b


def _tensorcores_per_chip():
    """2 on v7x (2 TensorCores/chip), 1 on v5e/v6e. Defensive: default to 1."""
    try:
        kind = (jax.devices()[0].device_kind or "").lower()
    except Exception:
        return 1
    if "v7" in kind or "tpu7" in kind:
        return 2
    return 1


def dnn2_kernel(x_ref, w1_ref, b1_ref, w2_ref, b2_ref, wp_ref, bp_ref, o_ref):
    # Batch-on-lanes: every activation below is [features/hidden, block_n].
    bn = x_ref.shape[1]                     # batch tile width (lane axis)
    n_feature = x_ref.shape[0]
    n_hidden = w2_ref.shape[0]

    x = x_ref[...]                          # [n_feature, block_n]
    w1 = w1_ref[...]                        # [n_hidden, n_feature]  (torch [out, in])

    # fc1: K = n_feature (tiny, e.g. 4) -> unrolled VPU broadcast-FMAs instead of a
    # near-empty systolic pass on the MXU.
    h = jnp.broadcast_to(b1_ref[...], (n_hidden, bn))       # [n_hidden, block_n]
    for k in range(n_feature):
        h = h + w1[:, k : k + 1] * x[k : k + 1, :]
    # NOTE: jnp.sin most likely expands to a range-reduce + polynomial on the VALU
    # (sin is not an EUP-native op), so the 4 sins over [32, block_n] dominate the
    # in-kernel compute; that is why the bias broadcast below is hoisted and the
    # MXU precision choice is essentially free.
    h = jnp.sin(h)

    # fc2 applied three times with the SAME weights (matches the PyTorch forward),
    # as [n_hidden, n_hidden] @ [n_hidden, block_n] MXU matmuls.  Precision is pinned
    # to HIGHEST (exact f32 multi-pass) deliberately: the 32x32 matmuls are a tiny
    # fraction of per-tile work, and this keeps results generation-independent.
    w2 = w2_ref[...]
    b2b = jnp.broadcast_to(b2_ref[...], (n_hidden, bn))     # hoisted, reused 3x
    for _ in range(3):
        h = jnp.sin(
            jnp.dot(w2, h, preferred_element_type=jnp.float32, precision=_HIGHEST)
            + b2b
        )

    # predict: n_output == 1 -> VPU multiply + cross-sublane (XLU) reduce, written to
    # a fully lane-dense [1, block_n] output tile (no MXU push/pop, no per-row stores).
    wp = wp_ref[...]                        # [n_hidden, n_output]
    bp = bp_ref[...]                        # [n_output, 1]
    if wp.shape[1] == 1:
        out = jnp.sum(wp * h, axis=0, keepdims=True) + bp
    else:
        out = (
            jax.lax.dot_general(
                wp, h, (((0,), (0,)), ((), ())),
                preferred_element_type=jnp.float32, precision=_HIGHEST,
            )
            + bp
        )
    o_ref[...] = out.astype(o_ref.dtype)


@functools.partial(jax.jit, static_argnames=("block_n",))
def dnn2_forward(x, params, block_n=4096):
    """x: [N, n_feature] float32. params: dict (see init_params). Returns [N, n_output]."""
    n, n_feature = x.shape
    n_hidden = params["w1"].shape[0]
    n_output = params["wp"].shape[1]

    # Lane-align the batch tile (multiple of 128) and never exceed the padded batch.
    # Per-tile VMEM at block_n=4096 is well under every generation's scoped limit.
    block_n = max(128, (block_n // 128) * 128)
    n_lanes = _round_up(n, 128)
    block_n = min(block_n, n_lanes)
    # Only force >= 2 grid steps on 2-TensorCore chips (v7x) so the single "parallel"
    # axis can shard across both cores; on 1-TC v5e/v6e this halving would just double
    # per-step launch/pipeline overhead for mid-size batches.
    if _tensorcores_per_chip() >= 2 and n_lanes >= 2 * 128:
        block_n = min(block_n, max(128, ((n_lanes // 2) // 128) * 128))

    n_pad = _round_up(n_lanes, block_n)
    grid = (n_pad // block_n,)

    # Transpose to batch-on-lanes and zero-pad the batch to a whole number of tiles.
    # (Kept wrapper-side on purpose: one dense XLA copy vs. a 16-byte-per-row DMA
    # scatter into a lane-padded (block_n, 4) VMEM tile -- see header comment.)
    xT = jnp.transpose(x)                                   # [n_feature, N]
    xT = jnp.pad(xT, ((0, 0), (0, n_pad - n)))              # [n_feature, n_pad]

    in_specs = [
        pl.BlockSpec((n_feature, block_n), lambda i: (0, i)),   # x^T tile (lane-dense)
        pl.BlockSpec((n_hidden, n_feature), lambda i: (0, 0)),  # w1 [out, in]
        pl.BlockSpec((n_hidden, 1), lambda i: (0, 0)),          # b1
        pl.BlockSpec((n_hidden, n_hidden), lambda i: (0, 0)),   # w2 [out, in]
        pl.BlockSpec((n_hidden, 1), lambda i: (0, 0)),          # b2
        pl.BlockSpec((n_hidden, n_output), lambda i: (0, 0)),   # wp [in, out]
        pl.BlockSpec((n_output, 1), lambda i: (0, 0)),          # bp
    ]
    out_specs = pl.BlockSpec((n_output, block_n), lambda i: (0, i))  # lane-dense output

    # TODO(synk): if an xprof trace on v7x shows one TensorCore idle, switch this grid
    # axis to pltpu.CORE_PARALLEL (and keep the step count even) -- "parallel" is kept
    # here because it is known-good on all generations.
    outT = pl.pallas_call(
        dnn2_kernel,
        out_shape=jax.ShapeDtypeStruct((n_output, n_pad), x.dtype),
        grid_spec=pltpu.PrefetchScalarGridSpec(
            num_scalar_prefetch=0,
            grid=grid,
            in_specs=in_specs,
            out_specs=out_specs,
        ),
        compiler_params=pltpu.CompilerParams(
            dimension_semantics=("parallel",),
        ),
    )(
        xT,
        params["w1"], params["b1"],
        params["w2"], params["b2"],
        params["wp"], params["bp"],
    )

    return jnp.transpose(outT[:, :n])                       # [N, n_output]


def dnn2_reference(x, params):
    """Pure-JAX reference (identical math to the PyTorch forward), precision pinned
    to HIGHEST so the comparison against the kernel is well-defined on the MXU."""
    h = jnp.sin(jnp.dot(x, params["w1"].T, precision=_HIGHEST) + params["b1"].T)
    h = jnp.sin(jnp.dot(h, params["w2"].T, precision=_HIGHEST) + params["b2"].T)
    h = jnp.sin(jnp.dot(h, params["w2"].T, precision=_HIGHEST) + params["b2"].T)
    h = jnp.sin(jnp.dot(h, params["w2"].T, precision=_HIGHEST) + params["b2"].T)
    return jnp.dot(h, params["wp"], precision=_HIGHEST) + params["bp"].T


_dnn2_reference_jit = jax.jit(dnn2_reference)


def dnn2_apply(x, params, min_pallas_batch=4096):
    """Dispatch: the whole model is ~5 KiB of weights, so for small/mid batches the
    pallas_call launch + wrapper transpose/pad/slice overhead loses to the fused XLA
    path; reserve the kernel for large-N throughput runs.
    TODO(synk): the crossover should be re-measured per TPU generation after tuning."""
    if x.shape[0] < min_pallas_batch:
        return _dnn2_reference_jit(x, params)
    return dnn2_forward(x, params)


def init_params(key, n_feature, n_hidden, n_output):
    """Deterministic init mimicking torch.nn.Linear default U[-1/sqrt(fan_in), +].
    w1/w2 stored [out, in] (torch layout); wp stored [in, out]; biases as columns."""
    ks = jax.random.split(key, 6)

    def uni(k, shape, fan_in):
        bound = 1.0 / jnp.sqrt(jnp.float32(fan_in))
        return jax.random.uniform(k, shape, jnp.float32, -bound, bound)

    return {
        "w1": uni(ks[0], (n_hidden, n_feature), n_feature),
        "b1": uni(ks[1], (n_hidden, 1), n_feature),
        "w2": uni(ks[2], (n_hidden, n_hidden), n_hidden),
        "b2": uni(ks[3], (n_hidden, 1), n_hidden),
        "wp": uni(ks[4], (n_hidden, n_output), n_hidden),
        "bp": uni(ks[5], (n_output, 1), n_hidden),
    }


if __name__ == "__main__":
    # Shapes consistent with the module: DNN2(n_feature=4, n_hidden=32, n_output=1).
    n_feature, n_hidden, n_output = 4, 32, 1

    key = jax.random.PRNGKey(0)
    kx1, kx2, kp = jax.random.split(key, 3)
    params = init_params(kp, n_feature, n_hidden, n_output)

    # Case 1: batch=200 exercises lane padding (non-multiple of 128), single grid step.
    x1 = jax.random.normal(kx1, (200, n_feature), dtype=jnp.float32)
    out1 = jax.block_until_ready(dnn2_forward(x1, params))
    ref1 = dnn2_reference(x1, params)
    assert out1.shape == (200, n_output), out1.shape
    assert jnp.allclose(out1, ref1, atol=1e-5, rtol=1e-5), (
        float(jnp.max(jnp.abs(out1 - ref1)))
    )

    # Case 2: batch=4500 exercises a multi-step grid and batch-tile padding.
    x2 = jax.random.normal(kx2, (4500, n_feature), dtype=jnp.float32)
    out2 = jax.block_until_ready(dnn2_forward(x2, params))
    ref2 = dnn2_reference(x2, params)
    assert out2.shape == (4500, n_output), out2.shape
    assert jnp.allclose(out2, ref2, atol=1e-5, rtol=1e-5), (
        float(jnp.max(jnp.abs(out2 - ref2)))
    )

    print("KERNEL_OK")
</pallas_src>

<mosaic_0001>
module attributes {stable_mosaic.version = 11 : i64} {
  func.func @dnn2_kernel(%arg0: i32, %arg1: memref<4x256xf32, #tpu.memory_space<vmem>>, %arg2: memref<32x4xf32, #tpu.memory_space<vmem>>, %arg3: memref<32x1xf32, #tpu.memory_space<vmem>>, %arg4: memref<32x32xf32, #tpu.memory_space<vmem>>, %arg5: memref<32x1xf32, #tpu.memory_space<vmem>>, %arg6: memref<32x1xf32, #tpu.memory_space<vmem>>, %arg7: memref<1x1xf32, #tpu.memory_space<vmem>>, %arg8: memref<1x256xf32, #tpu.memory_space<vmem>>) attributes {dimension_semantics = [#tpu.dimension_semantics<parallel>], iteration_bounds = array<i64: 1>, scalar_prefetch = 0 : i64, scratch_operands = 0 : i64, tpu.core_type = #tpu.core_type<tc>, window_params = [{transform_indices = @transform_0, window_bounds = array<i64: 4, 256>}, {pipeline_mode = #tpu.pipeline_mode<synchronous>, transform_indices = @transform_1, window_bounds = array<i64: 32, 4>}, {pipeline_mode = #tpu.pipeline_mode<synchronous>, transform_indices = @transform_2, window_bounds = array<i64: 32, 1>}, {pipeline_mode = #tpu.pipeline_mode<synchronous>, transform_indices = @transform_3, window_bounds = array<i64: 32, 32>}, {pipeline_mode = #tpu.pipeline_mode<synchronous>, transform_indices = @transform_4, window_bounds = array<i64: 32, 1>}, {pipeline_mode = #tpu.pipeline_mode<synchronous>, transform_indices = @transform_5, window_bounds = array<i64: 32, 1>}, {pipeline_mode = #tpu.pipeline_mode<synchronous>, transform_indices = @transform_6, window_bounds = array<i64: 1, 1>}, {transform_indices = @transform_7, window_bounds = array<i64: 1, 256>}]} {
    %c0 = arith.constant 0 : index
    %c0_0 = arith.constant 0 : index
    %0 = vector.load %arg1[%c0, %c0_0] : memref<4x256xf32, #tpu.memory_space<vmem>>, vector<4x256xf32>
    %c0_1 = arith.constant 0 : index
    %c0_2 = arith.constant 0 : index
    %1 = vector.load %arg2[%c0_1, %c0_2] : memref<32x4xf32, #tpu.memory_space<vmem>>, vector<32x4xf32>
    %c0_3 = arith.constant 0 : index
    %c0_4 = arith.constant 0 : index
    %2 = vector.load %arg3[%c0_3, %c0_4] : memref<32x1xf32, #tpu.memory_space<vmem>>, vector<32x1xf32>
    %3 = vector.shape_cast %2 : vector<32x1xf32> to vector<32x1xf32>
    %4 = vector.broadcast %3 : vector<32x1xf32> to vector<32x256xf32>
    %5 = vector.extract_strided_slice %1 {offsets = [0, 0], sizes = [32, 1], strides = [1, 1]} : vector<32x4xf32> to vector<32x1xf32>
    %6 = vector.extract_strided_slice %0 {offsets = [0, 0], sizes = [1, 256], strides = [1, 1]} : vector<4x256xf32> to vector<1x256xf32>
    %7 = vector.broadcast %5 : vector<32x1xf32> to vector<32x256xf32>
    %8 = vector.broadcast %6 : vector<1x256xf32> to vector<32x256xf32>
    %9 = arith.mulf %7, %8 : vector<32x256xf32>
    %10 = arith.addf %4, %9 : vector<32x256xf32>
    %11 = vector.extract_strided_slice %1 {offsets = [0, 1], sizes = [32, 1], strides = [1, 1]} : vector<32x4xf32> to vector<32x1xf32>
    %12 = vector.extract_strided_slice %0 {offsets = [1, 0], sizes = [1, 256], strides = [1, 1]} : vector<4x256xf32> to vector<1x256xf32>
    %13 = vector.broadcast %11 : vector<32x1xf32> to vector<32x256xf32>
    %14 = vector.broadcast %12 : vector<1x256xf32> to vector<32x256xf32>
    %15 = arith.mulf %13, %14 : vector<32x256xf32>
    %16 = arith.addf %10, %15 : vector<32x256xf32>
    %17 = vector.extract_strided_slice %1 {offsets = [0, 2], sizes = [32, 1], strides = [1, 1]} : vector<32x4xf32> to vector<32x1xf32>
    %18 = vector.extract_strided_slice %0 {offsets = [2, 0], sizes = [1, 256], strides = [1, 1]} : vector<4x256xf32> to vector<1x256xf32>
    %19 = vector.broadcast %17 : vector<32x1xf32> to vector<32x256xf32>
    %20 = vector.broadcast %18 : vector<1x256xf32> to vector<32x256xf32>
    %21 = arith.mulf %19, %20 : vector<32x256xf32>
    %22 = arith.addf %16, %21 : vector<32x256xf32>
    %23 = vector.extract_strided_slice %1 {offsets = [0, 3], sizes = [32, 1], strides = [1, 1]} : vector<32x4xf32> to vector<32x1xf32>
    %24 = vector.extract_strided_slice %0 {offsets = [3, 0], sizes = [1, 256], strides = [1, 1]} : vector<4x256xf32> to vector<1x256xf32>
    %25 = vector.broadcast %23 : vector<32x1xf32> to vector<32x256xf32>
    %26 = vector.broadcast %24 : vector<1x256xf32> to vector<32x256xf32>
    %27 = arith.mulf %25, %26 : vector<32x256xf32>
    %28 = arith.addf %22, %27 : vector<32x256xf32>
    %29 = math.sin %28 : vector<32x256xf32>
    %c0_5 = arith.constant 0 : index
    %c0_6 = arith.constant 0 : index
    %30 = vector.load %arg4[%c0_5, %c0_6] : memref<32x32xf32, #tpu.memory_space<vmem>>, vector<32x32xf32>
    %c0_7 = arith.constant 0 : index
    %c0_8 = arith.constant 0 : index
    %31 = vector.load %arg5[%c0_7, %c0_8] : memref<32x1xf32, #tpu.memory_space<vmem>>, vector<32x1xf32>
    %32 = vector.shape_cast %31 : vector<32x1xf32> to vector<32x1xf32>
    %33 = vector.broadcast %32 : vector<32x1xf32> to vector<32x256xf32>
    %cst = arith.constant dense<0.000000e+00> : vector<32x256xf32>
    %34 = tpu.matmul %30, %29, %cst {dimension_numbers = #tpu.dot_dimension_numbers<[1], [0], [0], [1], [0, 0, 1, 1], [], []>, precision = #tpu.contract_precision<fp32>} : vector<32x32xf32>, vector<32x256xf32>, vector<32x256xf32> -> vector<32x256xf32>
    %35 = arith.addf %34, %33 : vector<32x256xf32>
    %36 = math.sin %35 : vector<32x256xf32>
    %cst_9 = arith.constant dense<0.000000e+00> : vector<32x256xf32>
    %37 = tpu.matmul %30, %36, %cst_9 {dimension_numbers = #tpu.dot_dimension_numbers<[1], [0], [0], [1], [0, 0, 1, 1], [], []>, precision = #tpu.contract_precision<fp32>} : vector<32x32xf32>, vector<32x256xf32>, vector<32x256xf32> -> vector<32x256xf32>
    %38 = arith.addf %37, %33 : vector<32x256xf32>
    %39 = math.sin %38 : vector<32x256xf32>
    %cst_10 = arith.constant dense<0.000000e+00> : vector<32x256xf32>
    %40 = tpu.matmul %30, %39, %cst_10 {dimension_numbers = #tpu.dot_dimension_numbers<[1], [0], [0], [1], [0, 0, 1, 1], [], []>, precision = #tpu.contract_precision<fp32>} : vector<32x32xf32>, vector<32x256xf32>, vector<32x256xf32> -> vector<32x256xf32>
    %41 = arith.addf %40, %33 : vector<32x256xf32>
    %42 = math.sin %41 : vector<32x256xf32>
    %c0_11 = arith.constant 0 : index
    %c0_12 = arith.constant 0 : index
    %43 = vector.load %arg6[%c0_11, %c0_12] : memref<32x1xf32, #tpu.memory_space<vmem>>, vector<32x1xf32>
    %c0_13 = arith.constant 0 : index
    %c0_14 = arith.constant 0 : index
    %44 = vector.load %arg7[%c0_13, %c0_14] : memref<1x1xf32, #tpu.memory_space<vmem>>, vector<1x1xf32>
    %45 = vector.broadcast %43 : vector<32x1xf32> to vector<32x256xf32>
    %46 = arith.mulf %45, %42 : vector<32x256xf32>
    %cst_15 = arith.constant dense<0.000000e+00> : vector<256xf32>
    %47 = vector.multi_reduction <add>, %46, %cst_15 [0] : vector<32x256xf32> to vector<256xf32>
    %48 = vector.shape_cast %47 : vector<256xf32> to vector<1x256xf32>
    %49 = vector.broadcast %44 : vector<1x1xf32> to vector<1x256xf32>
    %50 = arith.addf %48, %49 : vector<1x256xf32>
    %c0_16 = arith.constant 0 : index
    %c0_17 = arith.constant 0 : index
    %51 = vector.load %arg8[%c0_16, %c0_17] : memref<1x256xf32, #tpu.memory_space<vmem>>, vector<1x256xf32>
    tpu.vector_store %arg8[%c0_16, %c0_17], %50 {strides = array<i32>} : memref<1x256xf32, #tpu.memory_space<vmem>>, vector<1x256xf32>,
    return
  }
  func.func @transform_0(%arg0: i32) -> (i32, i32) {
    %c0_i32 = arith.constant 0 : i32
    %c0_i32_0 = arith.constant 0 : i32
    return %c0_i32, %arg0 : i32, i32
  }
  func.func @transform_1(%arg0: i32) -> (i32, i32) {
    %c0_i32 = arith.constant 0 : i32
    %c0_i32_0 = arith.constant 0 : i32
    %c0_i32_1 = arith.constant 0 : i32
    return %c0_i32, %c0_i32_0 : i32, i32
  }
  func.func @transform_2(%arg0: i32) -> (i32, i32) {
    %c0_i32 = arith.constant 0 : i32
    %c0_i32_0 = arith.constant 0 : i32
    %c0_i32_1 = arith.constant 0 : i32
    return %c0_i32, %c0_i32_0 : i32, i32
  }
  func.func @transform_3(%arg0: i32) -> (i32, i32) {
    %c0_i32 = arith.constant 0 : i32
    %c0_i32_0 = arith.constant 0 : i32
    %c0_i32_1 = arith.constant 0 : i32
    return %c0_i32, %c0_i32_0 : i32, i32
  }
  func.func @transform_4(%arg0: i32) -> (i32, i32) {
    %c0_i32 = arith.constant 0 : i32
    %c0_i32_0 = arith.constant 0 : i32
    %c0_i32_1 = arith.constant 0 : i32
    return %c0_i32, %c0_i32_0 : i32, i32
  }
  func.func @transform_5(%arg0: i32) -> (i32, i32) {
    %c0_i32 = arith.constant 0 : i32
    %c0_i32_0 = arith.constant 0 : i32
    %c0_i32_1 = arith.constant 0 : i32
    return %c0_i32, %c0_i32_0 : i32, i32
  }
  func.func @transform_6(%arg0: i32) -> (i32, i32) {
    %c0_i32 = arith.constant 0 : i32
    %c0_i32_0 = arith.constant 0 : i32
    %c0_i32_1 = arith.constant 0 : i32
    return %c0_i32, %c0_i32_0 : i32, i32
  }
  func.func @transform_7(%arg0: i32) -> (i32, i32) {
    %c0_i32 = arith.constant 0 : i32
    %c0_i32_0 = arith.constant 0 : i32
    return %c0_i32, %arg0 : i32, i32
  }
}

</mosaic_0001>

<bundles_post_ra>
// kernel: dnn2_forward.1
= control target key start
LH: loop header
LB: loop body
LE: loop exit
PB: predicated region body
PF: predicated region fallthrough
CT: control target
= control target key end

     0   :  { %v6488_v0 = vmov 0   ;;  %v6489_v6 = vmov 1   ;;  %v6490_v9 = vmov 2   ;;  %v6491_v10 = vmov 3   ;;  %s10033_s2 = inlined_call_operand.vmem [shape: f32[32,1], index: 2, kind: input, shape index: {}]   ;;  %s10034_s1 = inlined_call_operand.vmem [shape: f32[32,4], index: 1, kind: input, shape index: {}]   ;;  %s10035_s0 = inlined_call_operand.vmem [shape: f32[4,256], index: 0, kind: input, shape index: {}]   ;;  %s10036_s4 = inlined_call_operand.vmem [shape: f32[32,1], index: 4, kind: input, shape index: {}]   ;;  %s10037_s5 = inlined_call_operand.vmem [shape: f32[32,1], index: 5, kind: input, shape index: {}]   ;;  %s10038_s3 = inlined_call_operand.vmem [shape: f32[32,32], index: 3, kind: input, shape index: {}]   ;;  %s10039_s6 = inlined_call_operand.<no memory space> [shape: f32[1,1], index: 6, kind: input, shape index: {}]   ;;  %s10040_s7 = inlined_call_operand.vmem [shape: f32[1,256], index: 7, kind: output, shape index: {}]  }
   0x1   :  { %6347 = vset.pattern.permute.xlu1 %v6488_v0  ;;  %6346 = vset.pattern.permute.xlu0 %v6488_v0  ;;  %v33_v1 = vld [vmem:[%s10033_s2] sm:$0xff]  ;;  %v34_v3 = vld [vmem:[%s10033_s2 + $0x8] sm:$0xff]  ;;  %v32_v5 = vld [vmem:[%s10034_s1 + $0x18] sm:$0xff]  ;;  %v10041_v13 = vlaneseq }
   0x2   :  { %v29_v2 = vld [vmem:[%s10034_s1] sm:$0xff]  ;;  %39 = vperm.xlu1 %6347, %v33_v1   ;;  %v30_v4 = vld [vmem:[%s10034_s1 + $0x8] sm:$0xff]  ;;  %v35_v7 = vld [vmem:[%s10033_s2 + $0x10] sm:$0xff] }
   0x3   :  { %59 = vperm.xlu0 %6346, %v29_v2   ;;  %v31_v8 = vld [vmem:[%s10034_s1 + $0x10] sm:$0xff]  ;;  %v36_v11 = vld [vmem:[%s10033_s2 + $0x18] sm:$0xff]  ;;  %v6567_v15 = vshrl.u32 %v10041_v13, 7  ;;  %v28_v23 = vld [vmem:[%s10035_s0] sm:$0xff] }
   0x5   :  { %10122 = vst [vmem:[#allocation3_spill] sm:$0xff] %v6567_v15  ;;  %v6570_v18 = vsub.s32 0, %v6567_v15  ;;  %v84_v19 = vsub.s32 4, %v6567_v15  ;;  %v130_v20 = vsub.s32 1, %v6567_v15  ;;  %v134_v21 = vsub.s32 5, %v6567_v15 }
   0x6   :  { %44 = vperm.xlu1 %6347, %v34_v3   ;;  %v180_v31 = vsub.s32 2, %v6567_v15  ;;  %v184_v32 = vsub.s32 6, %v6567_v15  ;;  %v230_v33 = vsub.s32 3, %v6567_v15  ;;  %v234_v34 = vsub.s32 7, %v6567_v15 }
   0x7   :  { %64 = vperm.xlu0 %6346, %v30_v4   ;;  %10123 = vst [vmem:[#allocation4_spill] sm:$0xff] %v6570_v18  ;;  %v81_v25 = vrot.slane %v28_v23, %v6570_v18  ;;  %v85_v26 = vrot.slane %v28_v23, %v84_v19  ;;  %v131_v27 = vrot.slane %v28_v23, %v130_v20 }
   0x8   :  { %v135_v28 = vrot.slane %v28_v23, %v134_v21  ;;  %v181_v42 = vrot.slane %v28_v23, %v180_v31  ;;  %v185_v43 = vrot.slane %v28_v23, %v184_v32  ;;  %v231_v45 = vrot.slane %v28_v23, %v230_v33 }
   0x9   :  { %v6588_v35 = vrot.slane %v81_v25, %v6570_v18  ;;  %v6591_v36 = vrot.slane %v85_v26, %v6570_v18  ;;  %v6593_v37 = vrot.slane %v131_v27, %v130_v20  ;;  %v235_v46 = vrot.slane %v28_v23, %v234_v34 }
   0xa   :  { %6348 = vset.pattern.permute.xlu1 %v6489_v6  ;;  %v6595_v38 = vrot.slane %v135_v28, %v130_v20  ;;  %v6601_v52 = vrot.slane %v181_v42, %v180_v31  ;;  %v6603_v53 = vrot.slane %v185_v43, %v180_v31  ;;  %v6605_v55 = vrot.slane %v231_v45, %v230_v33 }
   0xb   :  { %74 = vperm.xlu0 %6346, %v32_v5   ;;  %117 = vperm.xlu1 %6348, %v30_v4   ;;  %v6607_v56 = vrot.slane %v235_v46, %v230_v33 }
   0xf   :  { %49 = vperm.xlu0 %6346, %v35_v7   ;;  %6349 = vset.pattern.permute.xlu1 %v6488_v0 }
  0x10   :  { %69 = vperm.xlu1 %6349, %v31_v8  }
  0x13   :  { %6351 = vset.pattern.permute.xlu0 %v6489_v6 }
  0x14   :  { %113 = vperm.xlu0 %6351, %v29_v2   ;;  %6350 = vset.pattern.permute.xlu1 %v6490_v9 }
  0x15   :  { %163 = vperm.xlu1 %6350, %v29_v2  }
  0x18   :  { %121 = vperm.xlu0 %6351, %v31_v8  }
  0x19   :  { %167 = vperm.xlu1 %6350, %v30_v4  }
  0x1c   :  { %6355 = vset.pattern.permute.xlu0 %v6491_v10 }
  0x1d   :  { %217 = vperm.xlu0 %6355, %v30_v4   ;;  %6352 = vset.pattern.permute.xlu1 %v6488_v0 }
  0x1e   :  { %54 = vperm.xlu1 %6352, %v36_v11  }
  0x21   :  { %221 = vperm.xlu0 %6355, %v31_v8  }
  0x22   :  { %6353 = vset.pattern.permute.xlu1 %v6489_v6 }
  0x23   :  { %125 = vperm.xlu1 %6353, %v32_v5  }
  0x25   :  { %6358 = vset.pattern.permute.xlu0 %v6488_v0 }
  0x27   :  { %6354 = vset.pattern.permute.xlu1 %v6491_v10 }
  0x28   :  { %213 = vperm.xlu1 %6354, %v29_v2  }
  0x2c   :  { %6356 = vset.pattern.permute.xlu1 %v6490_v9 }
  0x2d   :  { %171 = vperm.xlu1 %6356, %v31_v8  }
  0x31   :  { %175 = vperm.xlu1 %6356, %v32_v5  }
  0x35   :  { %6357 = vset.pattern.permute.xlu1 %v6491_v10 }
  0x36   :  { %225 = vperm.xlu1 %6357, %v32_v5  }
  0x3a   :  { %6359 = vset.pattern.permute.xlu1 %v6488_v0 }
  0x81   :  { %v6564_v12 = vpop.permute.xlu1 %39 }
  0x82   :  { %v60_v14 = vpop.permute.xlu0 %59 }
  0x83   :  { %v96_v3 = vmul.f32 %v6588_v35, %v60_v14  ;;  %v97_v6 = vmul.f32 %v6591_v36, %v60_v14 }
  0x85   :  { %v45_v16 = vpop.permute.xlu1 %44  ;;  %v105_v21 = vadd.f32 %v97_v6, %v6564_v12  ;;  %v10053_v6 = vmov 2131351028  }
  0x86   :  { %v65_v17 = vpop.permute.xlu0 %64 }
  0x87   :  { %v98_v40 = vmul.f32 %v6588_v35, %v65_v17  ;;  %v99_v41 = vmul.f32 %v6591_v36, %v65_v17  ;;  %v104_v17 = vadd.f32 %v96_v3, %v6564_v12 }
  0x89   :  { %v106_v50 = vadd.f32 %v98_v40, %v45_v16  ;;  %v107_v51 = vadd.f32 %v99_v41, %v45_v16 }
  0x8a   :  { %v6575_v22 = vpop.permute.xlu0 %74  ;;  %v118_v24 = vpop.permute.xlu1 %117 }
  0x8b   :  { %v148_v47 = vmul.f32 %v6593_v37, %v118_v24  ;;  %v149_v48 = vmul.f32 %v6595_v38, %v118_v24 }
  0x8d   :  { %v156_v57 = vadd.f32 %v148_v47, %v106_v50  ;;  %v157_v58 = vadd.f32 %v149_v48, %v107_v51 }
  0x8e   :  { %v6581_v29 = vpop.permute.xlu0 %49 }
  0x8f   :  { %v70_v30 = vpop.permute.xlu1 %69 }
  0x90   :  { %v6638_v33 = vmul.f32 %v6588_v35, %v70_v30  ;;  %v6641_v12 = vmul.f32 %v6591_v36, %v70_v30 }
  0x93   :  { %v114_v39 = vpop.permute.xlu0 %113 }
  0x94   :  { %v164_v44 = vpop.permute.xlu1 %163  ;;  %v146_v7 = vmul.f32 %v6593_v37, %v114_v39  ;;  %v147_v11 = vmul.f32 %v6595_v38, %v114_v39 }
  0x95   :  { %v196_v26 = vmul.f32 %v6601_v52, %v164_v44  ;;  %v197_v31 = vmul.f32 %v6603_v53, %v164_v44 }
  0x96   :  { %v154_v25 = vadd.f32 %v146_v7, %v104_v17  ;;  %v155_v28 = vadd.f32 %v147_v11, %v105_v21 }
  0x97   :  { %v122_v49 = vpop.permute.xlu0 %121 }
  0x98   :  { %v168_v54 = vpop.permute.xlu1 %167  ;;  %v204_v43 = vadd.f32 %v196_v26, %v154_v25  ;;  %v205_v47 = vadd.f32 %v197_v31, %v155_v28  ;;  %v6646_v44 = vmul.f32 %v6593_v37, %v122_v49  ;;  %v6649_v50 = vmul.f32 %v6595_v38, %v122_v49 }
  0x99   :  { %v198_v59 = vmul.f32 %v6601_v52, %v168_v54  ;;  %v199_v60 = vmul.f32 %v6603_v53, %v168_v54  ;;  %v10062_v49 = vmov 2475754826   ;;  %v10056_v25 = vmov 1326507024  }
  0x9b   :  { %v206_v61 = vadd.f32 %v198_v59, %v156_v57  ;;  %v207_v62 = vadd.f32 %v199_v60, %v157_v58 }
  0x9c   :  { %v218_v63 = vpop.permute.xlu0 %217 }
  0x9d   :  { %v248_v0 = vmul.f32 %v6605_v55, %v218_v63  ;;  %v249_v1 = vmul.f32 %v6607_v56, %v218_v63  ;;  %v6613_v2 = vpop.permute.xlu1 %54 }
  0x9f   :  { %v6616_v4 = vadd.f32 %v248_v0, %v206_v61  ;;  %v6618_v5 = vadd.f32 %v249_v1, %v207_v62  ;;  %v10064_v62 = vmov 683565275  }
  0xa1   :  { %v10047_v8 = vand.u32 2147483647, %v6616_v4  ;;  %v473_v9 = vand.u32 2139095040, %v6616_v4  ;;  %v10044_v10 = vand.u32 2147483647, %v6618_v5  ;;  %v577_v16 = vand.u32 2139095040, %v6618_v5 }
  0xa2   :  { %v6628_v20 = vpop.permute.xlu1 %125 }
  0xa3   :  { %v474_v19 = vshrl.u32 %v473_v9, 23  ;;  %v477_v14 = vand.u32 8388607, %v10047_v8  ;;  %v578_v23 = vshrl.u32 %v577_v16, 23  ;;  %v581_v24 = vand.u32 8388607, %v10044_v10 }
  0xa4   :  { %v10048_v9 = vmov 2102212464   ;;  %v10045_v16 = vmov 920167782  }
  0xa5   :  { %v5798_v27 = vadd.s32 4294967169, %v474_v19  ;;  %v5802_v32 = vadd.s32 4294967169, %v578_v23  ;;  %v478_v39 = vor.u32 8388608, %v477_v14  ;;  %v582_v40 = vor.u32 8388608, %v581_v24 }
  0xa7   :  { %v480_v34 = vadd.s32 1, %v5798_v27  ;;  %v584_v41 = vadd.s32 1, %v5802_v32  ;;  %v214_v42 = vpop.permute.xlu1 %213  ;;  %v6651_v57 = vshll.u32 %v478_v39, 8  ;;  %v6655_v59 = vshll.u32 %v582_v40, 8 }
  0xa8   :  { %v246_v45 = vmul.f32 %v6605_v55, %v214_v42  ;;  %v247_v46 = vmul.f32 %v6607_v56, %v214_v42 }
  0xa9   :  { %vm481_vm0 = vcmp.gt.s32.totalorder %v480_v34, 0  ;;  %vm585_vm1 = vcmp.gt.s32.totalorder %v584_v41, 0 }
  0xaa   :  { %v482_v48 = vsel %vm481_vm0, %v480_v34, 0  ;;  %v586_v54 = vsel %vm585_vm1, %v584_v41, 0  ;;  %v6657_v60 = vadd.f32 %v246_v45, %v204_v43  ;;  %v6660_v1 = vadd.f32 %v247_v46, %v205_v47 }
  0xab   :  { %v483_v30 = vshrl.u32 %v482_v48, 5  ;;  %v484_v51 = vand.u32 31, %v482_v48  ;;  %v6653_v58 = vshrl.u32 %v586_v54, 5  ;;  %v588_v0 = vand.u32 31, %v586_v54 }
  0xad   :  { %v485_v61 = vsub.s32 32, %v484_v51  ;;  %v487_v63 = vshll.u32 %v10064_v62, %v484_v51  ;;  %v490_v3 = vshll.u32 %v10062_v49, %v484_v51  ;;  %v493_v7 = vshll.u32 %v10053_v6, %v484_v51 }
  0xae   :  { %v496_v11 = vshll.u32 %v10048_v9, %v484_v51  ;;  %v499_v17 = vshll.u32 %v10045_v16, %v484_v51  ;;  %vm502_vm2 = vcmp.lt.s32.totalorder %v483_v30, 1  ;;  %vm503_vm3 = vcmp.lt.s32.totalorder %v483_v30, 2 }
  0xaf   :  { %v488_v19 = vshrl.u32 %v10062_v49, %v485_v61  ;;  %v491_v21 = vshrl.u32 %v10053_v6, %v485_v61  ;;  %v494_v14 = vshrl.u32 %v10048_v9, %v485_v61  ;;  %v486_v23 = vshrl.u32 %v10064_v62, %v485_v61 }
  0xb0   :  { %v497_v24 = vshrl.u32 %v10045_v16, %v485_v61  ;;  %v500_v26 = vshrl.u32 %v10056_v25, %v485_v61  ;;  %v589_v32 = vsub.s32 32, %v588_v0  ;;  %vm504_vm4 = vcmp.lt.s32.totalorder %v483_v30, 3 }
  0xb1   :  { %v489_v27 = vor.u32 %v488_v19, %v487_v63  ;;  %v492_v28 = vor.u32 %v491_v21, %v490_v3  ;;  %v495_v31 = vor.u32 %v494_v14, %v493_v7  ;;  %vm505_vm5 = vcmp.lt.s32.totalorder %v483_v30, 4 }
  0xb2   :  { %v498_v34 = vor.u32 %v497_v24, %v496_v11  ;;  %v501_v39 = vor.u32 %v500_v26, %v499_v17  ;;  %v591_v48 = vshll.u32 %v10064_v62, %v588_v0  ;;  %v592_v61 = vshrl.u32 %v10062_v49, %v589_v32 }
  0xb3   :  { %v506_v40 = vsel %vm502_vm2, %v486_v23, %v489_v27  ;;  %v507_v41 = vsel %vm505_vm5, %v495_v31, 2102212464  ;;  %v510_v42 = vsel %vm502_vm2, %v489_v27, %v492_v28  ;;  %v514_v43 = vsel %vm502_vm2, %v492_v28, %v495_v31 }
  0xb4   :  { %v508_v45 = vsel %vm504_vm4, %v492_v28, %v507_v41  ;;  %v511_v46 = vsel %vm505_vm5, %v498_v34, 920167782  ;;  %v515_v47 = vsel %vm505_vm5, %v501_v39, 1326507024  ;;  %v594_v63 = vshll.u32 %v10062_v49, %v588_v0 }
  0xb5   :  { %v512_v51 = vsel %vm504_vm4, %v495_v31, %v511_v46  ;;  %v516_v54 = vsel %vm504_vm4, %v498_v34, %v515_v47  ;;  %v509_v3 = vsel %vm503_vm3, %v506_v40, %v508_v45  ;;  %v595_v17 = vshrl.u32 %v10053_v6, %v589_v32 }
  0xb6   :  { %v513_v7 = vsel %vm503_vm3, %v510_v42, %v512_v51  ;;  %v517_v11 = vsel %vm503_vm3, %v514_v43, %v516_v54  ;;  %v593_v24 = vor.u32 %v592_v61, %v591_v48  ;;  %v597_v27 = vshll.u32 %v10053_v6, %v588_v0 }
  0xb7   :  { %v6683_v19 = vmul.u32.u64.low %v6651_v57, %v517_v11  ;;  %v6684_v21 = vmul.u32.u64.high %v6651_v57, %v517_v11, %v6683_v19  ;;  %v6687_v14 = vmul.u32.u64.low %v6651_v57, %v513_v7  ;;  %v6688_v23 = vmul.u32.u64.high %v6651_v57, %v513_v7, %v6687_v14 }
  0xb8   :  { %v596_v26 = vor.u32 %v595_v17, %v594_v63  ;;  %v598_v28 = vshrl.u32 %v10048_v9, %v589_v32  ;;  %v590_v30 = vshrl.u32 %v10064_v62, %v589_v32  ;;  %v600_v31 = vshll.u32 %v10048_v9, %v588_v0 }
  0xb9   :  { %v601_v34 = vshrl.u32 %v10045_v16, %v589_v32  ;;  %v604_v39 = vshrl.u32 %v10056_v25, %v589_v32  ;;  %v525_v40 = vmul.u32 %v6651_v57, %v509_v3  ;;  %v603_v42 = vshll.u32 %v10045_v16, %v588_v0 }
  0xba   :  { %v599_v41 = vor.u32 %v598_v28, %v597_v27  ;;  %vm606_vm6 = vcmp.lt.s32.totalorder %v6653_v58, 1  ;;  %vm527_vm7 = vc.u32 %v6684_v21, %v6687_v14  ;;  %v528_v43 = vadd.s32 1, %v6688_v23 }
  0xbb   :  { %v602_v45 = vor.u32 %v601_v34, %v600_v31  ;;  %vm607_vm8 = vcmp.lt.s32.totalorder %v6653_v58, 2  ;;  %v605_v46 = vor.u32 %v604_v39, %v603_v42  ;;  %vm608_vm9 = vcmp.lt.s32.totalorder %v6653_v58, 3 }
  0xbc   :  { %vm609_vm10 = vcmp.lt.s32.totalorder %v6653_v58, 4  ;;  %v614_v32 = vsel %vm606_vm6, %v593_v24, %v596_v26  ;;  %v529_v57 = vsel %vm527_vm7, %v528_v43, %v6688_v23  ;;  %v618_v48 = vsel %vm606_vm6, %v596_v26, %v599_v41 }
  0xbd   :  { %v611_v47 = vsel %vm609_vm10, %v599_v41, 2102212464  ;;  %v615_v0 = vsel %vm609_vm10, %v602_v45, 920167782  ;;  %v530_v51 = vadd.s32 %v529_v57, %v525_v40  ;;  %v610_v54 = vsel %vm606_vm6, %v590_v30, %v593_v24 }
  0xbe   :  { %v616_v61 = vsel %vm608_vm9, %v599_v41, %v615_v0  ;;  %v619_v63 = vsel %vm609_vm10, %v605_v46, 1326507024  ;;  %v612_v3 = vsel %vm608_vm9, %v596_v26, %v611_v47  ;;  %v10043_v17 = vand.u32 2147483647, %v6657_v60  ;;  %v172_v0 = vpop.permute.xlu1 %171 }
  0xbf   :  { %v617_v7 = vsel %vm607_vm8, %v614_v32, %v616_v61  ;;  %v620_v11 = vsel %vm608_vm9, %v602_v45, %v619_v63  ;;  %v531_v19 = vadd.s32 536870912, %v530_v51  ;;  %v102_v24 = vmul.f32 %v6588_v35, %v6575_v22 }
  0xc0   :  { %v621_v27 = vsel %vm607_vm8, %v618_v48, %v620_v11  ;;  %v6713_v23 = vmul.u32.u64.low %v6655_v59, %v617_v7  ;;  %v6714_v28 = vmul.u32.u64.high %v6655_v59, %v617_v7, %v6713_v23  ;;  %v108_v26 = vadd.f32 %v6638_v33, %v6581_v29 }
  0xc1   :  { %v6721_v30 = vmul.u32.u64.low %v6655_v59, %v621_v27  ;;  %v6722_v31 = vmul.u32.u64.high %v6655_v59, %v621_v27, %v6721_v30  ;;  %v109_v34 = vadd.f32 %v6641_v12, %v6581_v29  ;;  %v6726_v39 = vshrl.u32 %v531_v19, 30 }
  0xc2   :  { %v613_v40 = vsel %vm607_vm8, %v610_v54, %v612_v3  ;;  %v265_v41 = vand.u32 2139095040, %v6657_v60  ;;  %v103_v35 = vmul.f32 %v6591_v36, %v6575_v22  ;;  %v158_v42 = vadd.f32 %v6646_v44, %v108_v26  ;;  %v222_v44 = vpop.permute.xlu0 %221 }
  0xc3   :  { %v269_v33 = vand.u32 8388607, %v10043_v17  ;;  %v369_v43 = vand.u32 2139095040, %v6660_v1  ;;  %v6738_v45 = vadd.f32 %v6649_v50, %v109_v34  ;;  %v533_v29 = vshll.u32 %v6726_v39, 30 }
  0xc4   :  { %v632_v12 = vadd.s32 1, %v6714_v28  ;;  %v266_v58 = vshrl.u32 %v265_v41, 23  ;;  %v629_v46 = vmul.u32 %v6655_v59, %v613_v40  ;;  %vm631_vm11 = vc.u32 %v6722_v31, %v6713_v23 }
  0xc5   :  { %v10042_v22 = vand.u32 2147483647, %v6660_v1  ;;  %v370_v36 = vshrl.u32 %v369_v43, 23  ;;  %v6745_v32 = vsub.s32 %v530_v51, %v533_v29  ;;  %v6749_v50 = vadd.f32 %v102_v24, %v6613_v2 }
  0xc6   :  { %v633_v57 = vsel %vm631_vm11, %v632_v12, %v6714_v28  ;;  %v5790_v47 = vadd.s32 4294967169, %v266_v58  ;;  %v6752_v54 = vadd.f32 %v103_v35, %v6613_v2  ;;  %v270_v59 = vor.u32 8388608, %v269_v33 }
  0xc7   :  { %v634_v48 = vadd.s32 %v633_v57, %v629_v46  ;;  %v5794_v61 = vadd.s32 4294967169, %v370_v36  ;;  %v536_v63 = vsub.s32 0, %v6745_v32  ;;  %v6756_v7 = vmul.f32 %v6605_v55, %v222_v44 }
  0xc8   :  { %v272_v3 = vadd.s32 1, %v5790_v47  ;;  %v6759_v51 = vmul.f32 %v6607_v56, %v222_v44  ;;  %v6763_v19 = vand.u32 8388607, %v10042_v22  ;;  %v200_v2 = vmul.f32 %v6601_v52, %v172_v0 }
  0xc9   :  { %v635_v11 = vadd.s32 536870912, %v634_v48  ;;  %v376_v27 = vadd.s32 1, %v5794_v61  ;;  %v526_v28 = vadd.s32 %v6687_v14, %v6684_v21  ;;  %v5799_v24 = vmin.u32 %v536_v63, %v6745_v32 }
  0xca   :  { %v6770_v26 = vadd.s32 %v6713_v23, %v6722_v31  ;;  %vm273_vm12 = vcmp.gt.s32.totalorder %v272_v3, 0  ;;  %v6774_v40 = vshll.u32 %v270_v59, 8  ;;  %v6779_v43 = vmul.f32 %v6603_v53, %v172_v0 }
  0xcb   :  { %v6772_v30 = vshrl.u32 %v635_v11, 30  ;;  %v274_v34 = vsel %vm273_vm12, %v272_v3, 0  ;;  %vm377_vm13 = vcmp.gt.s32.totalorder %v376_v27, 0  ;;  %v538_v41 = vclz %v5799_v24 }
  0xcc   :  { %v276_v35 = vand.u32 31, %v274_v34  ;;  %v6776_v33 = vsel %vm377_vm13, %v376_v27, 0  ;;  %v275_v14 = vshrl.u32 %v274_v34, 5  ;;  %v374_v23 = vor.u32 8388608, %v6763_v19 }
  0xcd   :  { %v637_v21 = vshll.u32 %v6772_v30, 30  ;;  %v6783_v31 = vadd.f32 %v200_v2, %v158_v42  ;;  %v5800_v29 = vadd.s32 4294967294, %v538_v41  ;;  %v6787_v46 = vand.u32 31, %v6776_v33 }
  0xce   :  { %v277_v12 = vsub.s32 32, %v276_v35  ;;  %v279_v58 = vshll.u32 %v10064_v62, %v276_v35  ;;  %v282_v44 = vshll.u32 %v10062_v49, %v276_v35  ;;  %v285_v57 = vshll.u32 %v10053_v6, %v276_v35 }
  0xcf   :  { %v6789_v36 = vsub.s32 %v634_v48, %v637_v21  ;;  %v288_v47 = vshll.u32 %v10048_v9, %v276_v35  ;;  %vm5801_vm14 = vcmp.lt.s32.totalorder %v5800_v29, 0  ;;  %v291_v59 = vshll.u32 %v10045_v16, %v276_v35 }
  0xd0   :  { %v280_v0 = vshrl.u32 %v10062_v49, %v277_v12  ;;  %v283_v42 = vshrl.u32 %v10053_v6, %v277_v12  ;;  %v541_v61 = vsel %vm5801_vm14, 0, %v5800_v29  ;;  %v286_v3 = vshrl.u32 %v10048_v9, %v277_v12 }
  0xd1   :  { %v640_v63 = vsub.s32 0, %v6789_v36  ;;  %v289_v48 = vshrl.u32 %v10045_v16, %v277_v12  ;;  %v542_v11 = vsub.s32 32, %v541_v61  ;;  %v546_v27 = vsub.s32 4294967266, %v541_v61 }
  0xd2   :  { %v278_v2 = vshrl.u32 %v10064_v62, %v277_v12  ;;  %v281_v24 = vor.u32 %v280_v0, %v279_v58  ;;  %v284_v41 = vor.u32 %v283_v42, %v282_v44  ;;  %v287_v21 = vor.u32 %v286_v3, %v285_v57 }
  0xd3   :  { %v5803_v34 = vmin.u32 %v640_v63, %v6789_v36  ;;  %v290_v13 = vor.u32 %v289_v48, %v288_v47  ;;  %v543_v22 = vshll.u32 %v6745_v32, %v541_v61  ;;  %v544_v35 = vshrl.u32 %v526_v28, %v542_v11 }
  0xd4   :  { %v547_v29 = vadd.s32 127, %v546_v27  ;;  %v292_v17 = vshrl.u32 %v10056_v25, %v277_v12  ;;  %vm294_vm15 = vcmp.lt.s32.totalorder %v275_v14, 1  ;;  %vm296_vm0 = vcmp.lt.s32.totalorder %v275_v14, 3 }
  0xd5   :  { %v642_v10 = vclz %v5803_v34  ;;  %vm297_vm1 = vcmp.lt.s32.totalorder %v275_v14, 4  ;;  %v545_v16 = vor.u32 %v544_v35, %v543_v22  ;;  %v298_v58 = vsel %vm294_vm15, %v278_v2, %v281_v24 }
  0xd6   :  { %v548_v8 = vshll.u32 %v547_v29, 23  ;;  %v293_v9 = vor.u32 %v292_v17, %v291_v59  ;;  %v299_v44 = vsel %vm297_vm1, %v287_v21, 2102212464  ;;  %v302_v57 = vsel %vm294_vm15, %v281_v24, %v284_v41 }
  0xd7   :  { %v5804_v0 = vadd.s32 4294967294, %v642_v10  ;;  %v303_v32 = vsel %vm297_vm1, %v290_v13, 920167782  ;;  %vm295_vm2 = vcmp.lt.s32.totalorder %v275_v14, 2  ;;  %v300_v12 = vsel %vm296_vm0, %v284_v41, %v299_v44 }
  0xd8   :  { %v549_v28 = vor.u32 4788187, %v548_v8  ;;  %v304_v47 = vsel %vm296_vm0, %v287_v21, %v303_v32  ;;  %v552_v42 = vcvt.s32.f32 %v545_v16  ;;  %v306_v17 = vsel %vm294_vm15, %v284_v41, %v287_v21 }
  0xd9   :  { %vm5805_vm3 = vcmp.lt.s32.totalorder %v5804_v0, 0  ;;  %v305_v22 = vsel %vm295_vm2, %v302_v57, %v304_v47  ;;  %v301_v61 = vsel %vm295_vm2, %v298_v58, %v300_v12  ;;  %v307_v63 = vsel %vm297_vm1, %v293_v9, 1326507024 }
  0xda   :  { %v550_v59 = vand.u32 2147483647, %v549_v28  ;;  %v645_v10 = vsel %vm5805_vm3, 0, %v5804_v0  ;;  %v308_v11 = vsel %vm296_vm0, %v290_v13, %v307_v63  ;;  %v6833_v13 = vmul.f32 %v6595_v38, %v6628_v20 }
  0xdb   :  { %v646_v3 = vsub.s32 32, %v645_v10  ;;  %v647_v8 = vshll.u32 %v6789_v36, %v645_v10  ;;  %v650_v48 = vsub.s32 4294967266, %v645_v10  ;;  %v309_v16 = vsel %vm295_vm2, %v306_v17, %v308_v11 }
  0xdc   :  { %v553_v27 = vmul.f32 %v552_v42, %v550_v59  ;;  %v6818_v2 = vmul.u32.u64.low %v6774_v40, %v305_v22  ;;  %v6819_v24 = vmul.u32.u64.high %v6774_v40, %v305_v22, %v6818_v2  ;;  %v6829_v36 = vmul.f32 %v6593_v37, %v6628_v20 }
  0xdd   :  { %v648_v34 = vshrl.u32 %v6770_v26, %v646_v3  ;;  %v651_v41 = vadd.s32 127, %v650_v48  ;;  %v6824_v21 = vmul.u32.u64.low %v6774_v40, %v309_v16  ;;  %v6825_v9 = vmul.u32.u64.high %v6774_v40, %v309_v16, %v6824_v21 }
  0xde   :  { %v381_v14 = vsub.s32 32, %v6787_v46  ;;  %v209_v35 = vadd.f32 %v6779_v43, %v6738_v45  ;;  %v6840_v58 = vshll.u32 %v374_v23, 8  ;;  %v6844_v0 = vadd.f32 %v6756_v7, %v6783_v31 }
  0xdf   :  { %v649_v29 = vor.u32 %v648_v34, %v647_v8  ;;  %v652_v26 = vshll.u32 %v651_v41, 23  ;;  %vm472_vm4 = vcmp.lt.s32.totalorder %v6616_v4, 0  ;;  %v317_v37 = vmul.u32 %v6774_v40, %v301_v61 }
  0xe0   :  { %v320_v38 = vadd.s32 1, %v6819_v24  ;;  %v379_v20 = vshrl.u32 %v6776_v33, 5  ;;  %v384_v45 = vshrl.u32 %v10062_v49, %v381_v14  ;;  %v554_v43 = vxor.u32 2147483648, %v553_v27 }
  0xe1   :  { %v653_v44 = vor.u32 4788187, %v652_v26  ;;  %v383_v19 = vshll.u32 %v10064_v62, %v6787_v46  ;;  %v386_v23 = vshll.u32 %v10062_v49, %v6787_v46  ;;  %vm319_vm5 = vc.u32 %v6825_v9, %v6818_v2 }
  0xe2   :  { %v387_v7 = vshrl.u32 %v10053_v6, %v381_v14  ;;  %v389_v40 = vshll.u32 %v10053_v6, %v6787_v46  ;;  %v10124_v33 = vmov 2102212464   ;;  %v10125_v57 = vand.u32 2147483647, %v6616_v4 }
  0xe3   :  { %v392_v31 = vshll.u32 %v10124_v33, %v6787_v46  ;;  %v654_v28 = vand.u32 2147483647, %v653_v44  ;;  %v656_v12 = vcvt.s32.f32 %v649_v29  ;;  %v321_v47 = vsel %vm319_vm5, %v320_v38, %v6819_v24 }
  0xe4   :  { %vm6864_vm6 = vcmp.le.f32.partialorder %v10125_v57, 0.7853982  ;;  %v390_v42 = vshrl.u32 %v10124_v33, %v381_v14  ;;  %vm576_vm7 = vcmp.lt.s32.totalorder %v6618_v5, 0  ;;  %v322_v22 = vadd.s32 %v321_v47, %v317_v37 }
  0xe5   :  { %v385_v17 = vor.u32 %v384_v45, %v383_v19  ;;  %v388_v59 = vor.u32 %v387_v7, %v386_v23  ;;  %v10128_v10 = vmov 920167782   ;;  %v657_v63 = vmul.f32 %v656_v12, %v654_v28 }
  0xe6   :  { %v393_v61 = vshrl.u32 %v10128_v10, %v381_v14  ;;  %v391_v3 = vor.u32 %v390_v42, %v389_v40  ;;  %v395_v8 = vshll.u32 %v10128_v10, %v6787_v46  ;;  %v396_v48 = vshrl.u32 %v10056_v25, %v381_v14 }
  0xe7   :  { %v323_v11 = vadd.s32 536870912, %v322_v22  ;;  %v382_v16 = vshrl.u32 %v10064_v62, %v381_v14  ;;  %v6877_v34 = vadd.f32 %v6759_v51, %v209_v35  ;;  %vm398_vm8 = vcmp.lt.s32.totalorder %v379_v20, 1 }
  0xe8   :  { %v394_v24 = vor.u32 %v393_v61, %v392_v31  ;;  %v397_v41 = vor.u32 %v396_v48, %v395_v8  ;;  %vm400_vm9 = vcmp.lt.s32.totalorder %v379_v20, 3  ;;  %vm401_vm10 = vcmp.lt.s32.totalorder %v379_v20, 4  ;;  %v176_v61 = vpop.permute.xlu1 %175 }
  0xe9   :  { %v10129_v21 = vand.u32 2147483647, %v6618_v5  ;;  %v6885_v46 = vshrl.u32 %v323_v11, 30  ;;  %v403_v26 = vsel %vm401_vm10, %v391_v3, 2102212464  ;;  %v406_v37 = vsel %vm398_vm8, %v385_v17, %v388_v59 }
  0xea   :  { %v407_v38 = vsel %vm401_vm10, %v394_v24, 920167782  ;;  %v555_v14 = vsel %vm472_vm4, %v554_v43, %v553_v27  ;;  %v658_v51 = vxor.u32 2147483648, %v657_v63  ;;  %vm399_vm12 = vcmp.lt.s32.totalorder %v379_v20, 2 }
  0xeb   :  { %vm6881_vm11 = vcmp.le.f32.partialorder %v10129_v21, 0.7853982  ;;  %v408_v35 = vsel %vm400_vm9, %v391_v3, %v407_v38  ;;  %v325_v45 = vshll.u32 %v6885_v46, 30  ;;  %v402_v44 = vsel %vm398_vm8, %v382_v16, %v385_v17 }
  0xec   :  { %v409_v19 = vsel %vm399_vm12, %v406_v37, %v408_v35  ;;  %v410_v23 = vsel %vm398_vm8, %v388_v59, %v391_v3  ;;  %v404_v7 = vsel %vm400_vm9, %v388_v59, %v403_v26  ;;  %v411_v40 = vsel %vm401_vm10, %v397_v41, 1326507024 }
  0xed   :  { %v6894_v31 = vmul.u32.u64.low %v6840_v58, %v409_v19  ;;  %v6895_v57 = vmul.u32.u64.high %v6840_v58, %v409_v19, %v6894_v31  ;;  %v558_v27 = vsel %vm6864_vm6, %v6616_v4, %v555_v14  ;;  %v160_v43 = vadd.f32 %v6829_v36, %v6749_v50 }
  0xee   :  { %v6902_v28 = vsub.s32 %v322_v22, %v325_v45  ;;  %v412_v12 = vsel %vm400_vm9, %v394_v24, %v411_v40  ;;  %v659_v47 = vsel %vm576_vm7, %v658_v51, %v657_v63  ;;  %v10055_v17 = vand.u32 2147483647, %v6844_v0 }
  0xef   :  { %v413_v42 = vsel %vm399_vm12, %v410_v23, %v412_v12  ;;  %v681_v59 = vand.u32 2139095040, %v6844_v0  ;;  %v405_v8 = vsel %vm399_vm12, %v402_v44, %v404_v7  ;;  %v424_v22 = vadd.s32 1, %v6895_v57 }
  0xf0   :  { %v328_v3 = vsub.s32 0, %v6902_v28  ;;  %v6913_v50 = vmul.u32.u64.low %v6840_v58, %v413_v42  ;;  %v6914_v36 = vmul.u32.u64.high %v6840_v58, %v413_v42, %v6913_v50  ;;  %v685_v63 = vand.u32 8388607, %v10055_v17 }
  0xf1   :  { %v682_v48 = vshrl.u32 %v681_v59, 23  ;;  %v10052_v11 = vand.u32 2147483647, %v6877_v34  ;;  %v6922_v16 = vadd.f32 %v6833_v13, %v6752_v54  ;;  %v785_v20 = vand.u32 2139095040, %v6877_v34 }
  0xf2   :  { %v5791_v24 = vmin.u32 %v328_v3, %v6902_v28  ;;  %v202_v41 = vmul.f32 %v6601_v52, %v176_v61  ;;  %6360 = vcosq.f32 %v558_v27  ;;  %v6930_v21 = vsel %vm6881_vm11, %v6618_v5, %v659_v47 }
  0xf3   :  { %v5806_v26 = vadd.s32 4294967169, %v682_v48  ;;  %v6933_v37 = vmul.f32 %v6603_v53, %v176_v61  ;;  %v421_v54 = vmul.u32 %v6840_v58, %v405_v8  ;;  %vm423_vm13 = vc.u32 %v6914_v36, %v6894_v31 }
  0xf4   :  { %v330_v38 = vclz %v5791_v24  ;;  %v686_v13 = vor.u32 8388608, %v685_v63  ;;  %v425_v14 = vsel %vm423_vm13, %v424_v22, %v6895_v57  ;;  %v786_v52 = vshrl.u32 %v785_v20, 23 }
  0xf5   :  { %v688_v51 = vadd.s32 1, %v5806_v26  ;;  %v6940_v35 = vand.u32 8388607, %v10052_v11  ;;  %6362 = vsinq.f32 %v558_v27  ;;  %v318_v45 = vadd.s32 %v6818_v2, %v6825_v9 }
  0xf6   :  { %v5792_v53 = vadd.s32 4294967294, %v330_v38  ;;  %v426_v44 = vadd.s32 %v425_v14, %v421_v54  ;;  %6364 = vcosq.f32 %v6930_v21  ;;  %v6946_v58 = vadd.s32 %v6894_v31, %v6914_v36 }
  0xf7   :  { %vm689_vm14 = vcmp.gt.s32.totalorder %v688_v51, 0  ;;  %v6948_v19 = vadd.f32 %v202_v41, %v160_v43  ;;  %v6950_v40 = vshll.u32 %v686_v13, 8  ;;  %v5810_v12 = vadd.s32 4294967169, %v786_v52 }
  0xf8   :  { %vm5793_vm15 = vcmp.lt.s32.totalorder %v5792_v53, 0  ;;  %v427_v23 = vadd.s32 536870912, %v426_v44  ;;  %v690_v7 = vsel %vm689_vm14, %v688_v51, 0  ;;  %v790_v2 = vor.u32 8388608, %v6940_v35 }
  0xf9   :  { %v333_v57 = vsel %vm5793_vm15, 0, %v5792_v53  ;;  %v692_v27 = vand.u32 31, %v690_v7  ;;  %v691_v59 = vshrl.u32 %v690_v7, 5  ;;  %v792_v52 = vadd.s32 1, %v5810_v12 }
  0xfa   :  { %v334_v9 = vsub.s32 32, %v333_v57  ;;  %v338_v47 = vsub.s32 4294967266, %v333_v57  ;;  %v6953_v42 = vshrl.u32 %v427_v23, 30  ;;  %v335_v31 = vshll.u32 %v6902_v28, %v333_v57 }
  0xfb   :  { %v693_v61 = vsub.s32 32, %v692_v27  ;;  %v695_v43 = vshll.u32 %v10064_v62, %v692_v27  ;;  %v698_v3 = vshll.u32 %v10062_v49, %v692_v27  ;;  %v701_v22 = vshll.u32 %v10053_v6, %v692_v27 }
  0xfc   :  { %v336_v8 = vshrl.u32 %v318_v45, %v334_v9  ;;  %v339_v50 = vadd.s32 127, %v338_v47  ;;  %v429_v36 = vshll.u32 %v6953_v42, 30  ;;  %v6960_v48 = vpop.eup %6360  ;;  %v704_v28 = vshll.u32 %v10124_v33, %v692_v27 }
  0xfd   :  { %v696_v63 = vshrl.u32 %v10062_v49, %v693_v61  ;;  %v699_v24 = vshrl.u32 %v10053_v6, %v693_v61  ;;  %v702_v20 = vshrl.u32 %v10124_v33, %v693_v61  ;;  %v705_v54 = vshrl.u32 %v10128_v10, %v693_v61 }
  0xfe   :  { %v337_v41 = vor.u32 %v336_v8, %v335_v31  ;;  %v340_v26 = vshll.u32 %v339_v50, 23  ;;  %v6966_v38 = vsub.s32 %v426_v44, %v429_v36  ;;  %v694_v7 = vshrl.u32 %v10064_v62, %v693_v61 }
  0xff   :  { %v697_v13 = vor.u32 %v696_v63, %v695_v43  ;;  %v700_v14 = vor.u32 %v699_v24, %v698_v3  ;;  %v703_v51 = vor.u32 %v702_v20, %v701_v22  ;;  %v6969_v45 = vpop.eup %6362  ;;  %v706_v57 = vor.u32 %v705_v54, %v704_v28  ;;  %v226_v22 = vpop.permute.xlu1 %225 }
 0x100   :  { %v341_v53 = vor.u32 4788187, %v340_v26  ;;  %v432_v23 = vsub.s32 0, %v6966_v38  ;;  %v6973_v9 = vpop.eup %6364  ;;  %v344_v47 = vcvt.s32.f32 %v337_v41  ;;  %v707_v44 = vshll.u32 %v10128_v10, %v692_v27 }
 0x101   :  { %v708_v31 = vshrl.u32 %v10056_v25, %v693_v61  ;;  %vm710_vm0 = vcmp.lt.s32.totalorder %v691_v59, 1  ;;  %vm712_vm1 = vcmp.lt.s32.totalorder %v691_v59, 3  ;;  %vm713_vm2 = vcmp.lt.s32.totalorder %v691_v59, 4 }
 0x102   :  { %v342_v43 = vand.u32 2147483647, %v341_v53  ;;  %v5795_v3 = vmin.u32 %v432_v23, %v6966_v38  ;;  %v715_v8 = vsel %vm713_vm2, %v703_v51, 2102212464  ;;  %v718_v50 = vsel %vm710_vm0, %v697_v13, %v700_v14 }
 0x103   :  { %v709_v12 = vor.u32 %v708_v31, %v707_v44  ;;  %v719_v36 = vsel %vm713_vm2, %v706_v57, 920167782  ;;  %vm711_vm3 = vcmp.lt.s32.totalorder %v691_v59, 2  ;;  %v714_v24 = vsel %vm710_vm0, %v694_v7, %v697_v13 }
 0x104   :  { %v434_v63 = vclz %v5795_v3  ;;  %v720_v27 = vsel %vm712_vm1, %v703_v51, %v719_v36  ;;  %v716_v61 = vsel %vm712_vm1, %v700_v14, %v715_v8  ;;  %v722_v28 = vsel %vm710_vm0, %v700_v14, %v703_v51 }
 0x105   :  { %v721_v20 = vsel %vm711_vm3, %v718_v50, %v720_v27  ;;  %v723_v41 = vsel %vm713_vm2, %v709_v12, 1326507024  ;;  %v345_v26 = vmul.f32 %v344_v47, %v342_v43  ;;  %v252_v23 = vmul.f32 %v6605_v55, %v226_v22 }
 0x106   :  { %v5796_v54 = vadd.s32 4294967294, %v434_v63  ;;  %v724_v53 = vsel %vm712_vm1, %v706_v57, %v723_v41  ;;  %v6986_v31 = vmul.u32.u64.low %v6950_v40, %v721_v20  ;;  %v6987_v3 = vmul.u32.u64.high %v6950_v40, %v721_v20, %v6986_v31 }
 0x107   :  { %v725_v44 = vsel %vm711_vm3, %v722_v28, %v724_v53  ;;  %vm793_vm5 = vcmp.gt.s32.totalorder %v792_v52, 0  ;;  %v717_v13 = vsel %vm711_vm3, %v714_v24, %v716_v61  ;;  %v6996_v59 = vshll.u32 %v790_v2, 8 }
 0x108   :  { %vm5797_vm8 = vcmp.lt.s32.totalorder %v5796_v54, 0  ;;  %v6991_v7 = vmul.u32.u64.low %v6950_v40, %v725_v44  ;;  %v6992_v8 = vmul.u32.u64.high %v6950_v40, %v725_v44, %v6991_v7  ;;  %v794_v51 = vsel %vm793_vm5, %v792_v52, 0 }
 0x109   :  { %v437_v14 = vsel %vm5797_vm8, 0, %v5796_v54  ;;  %v211_v55 = vadd.f32 %v6933_v37, %v6922_v16  ;;  %vm264_vm9 = vcmp.lt.s32.totalorder %v6657_v60, 0  ;;  %v253_v43 = vmul.f32 %v6607_v56, %v226_v22 }
 0x10a   :  { %v438_v57 = vsub.s32 32, %v437_v14  ;;  %v442_v47 = vsub.s32 4294967266, %v437_v14  ;;  %v7003_v12 = vadd.f32 %v252_v23, %v6948_v19  ;;  %v346_v50 = vxor.u32 2147483648, %v345_v26 }
 0x10b   :  { %v733_v36 = vmul.u32 %v6950_v40, %v717_v13  ;;  %v736_v52 = vadd.s32 1, %v6987_v3  ;;  %v796_v35 = vand.u32 31, %v794_v51  ;;  %v439_v2 = vshll.u32 %v6966_v38, %v437_v14 }
 0x10c   :  { %v440_v63 = vshrl.u32 %v6946_v58, %v438_v57  ;;  %v443_v16 = vadd.s32 127, %v442_v47  ;;  %vm735_vm10 = vc.u32 %v6992_v8, %v6986_v31  ;;  %v795_v56 = vshrl.u32 %v794_v51, 5 }
 0x10d   :  { %v737_v37 = vsel %vm735_vm10, %v736_v52, %v6987_v3  ;;  %v797_v22 = vsub.s32 32, %v796_v35  ;;  %v799_v19 = vshll.u32 %v10064_v62, %v796_v35  ;;  %v802_v61 = vshll.u32 %v10062_v49, %v796_v35 }
 0x10e   :  { %v441_v24 = vor.u32 %v440_v63, %v439_v2  ;;  %v444_v27 = vshll.u32 %v443_v16, 23  ;;  %v738_v40 = vadd.s32 %v737_v37, %v733_v36  ;;  %v805_v58 = vshll.u32 %v10053_v6, %v796_v35 }
 0x10f   :  { %v800_v20 = vshrl.u32 %v10062_v49, %v797_v22  ;;  %v803_v38 = vshrl.u32 %v10053_v6, %v797_v22  ;;  %v806_v28 = vshrl.u32 %v10124_v33, %v797_v22  ;;  %v10132_v41 = vand.u32 2147483647, %v6657_v60 }
 0x110   :  { %v445_v53 = vor.u32 4788187, %v444_v27  ;;  %v448_v23 = vcvt.s32.f32 %v441_v24  ;;  %v739_v44 = vadd.s32 536870912, %v738_v40  ;;  %v808_v3 = vshll.u32 %v10124_v33, %v796_v35 }
 0x111   :  { %vm7020_vm12 = vcmp.le.f32.partialorder %v10132_v41, 0.7853982  ;;  %vm368_vm13 = vcmp.lt.s32.totalorder %v6660_v1, 0  ;;  %v801_v13 = vor.u32 %v800_v20, %v799_v19  ;;  %v804_v7 = vor.u32 %v803_v38, %v802_v61 }
 0x112   :  { %v807_v14 = vor.u32 %v806_v28, %v805_v58  ;;  %v809_v51 = vshrl.u32 %v10128_v10, %v797_v22  ;;  %v446_v57 = vand.u32 2147483647, %v445_v53  ;;  %v7027_v47 = vshrl.u32 %v739_v44, 30 }
 0x113   :  { %v811_v36 = vshll.u32 %v10128_v10, %v796_v35  ;;  %v812_v52 = vshrl.u32 %v10056_v25, %v797_v22  ;;  %v347_v2 = vsel %vm264_vm9, %v346_v50, %v345_v26  ;;  %v798_v63 = vshrl.u32 %v10064_v62, %v797_v22 }
 0x114   :  { %v810_v16 = vor.u32 %v809_v51, %v808_v3  ;;  %vm814_vm14 = vcmp.lt.s32.totalorder %v795_v56, 1  ;;  %v449_v37 = vmul.f32 %v448_v23, %v446_v57  ;;  %v741_v19 = vshll.u32 %v7027_v47, 30 }
 0x115   :  { %v813_v24 = vor.u32 %v812_v52, %v811_v36  ;;  %vm817_vm15 = vcmp.lt.s32.totalorder %v795_v56, 4  ;;  %vm816_vm0 = vcmp.lt.s32.totalorder %v795_v56, 3  ;;  %v822_v61 = vsel %vm814_vm14, %v801_v13, %v804_v7 }
 0x116   :  { %v819_v27 = vsel %vm817_vm15, %v807_v14, 2102212464  ;;  %v823_v20 = vsel %vm817_vm15, %v810_v16, 920167782  ;;  %v450_v35 = vxor.u32 2147483648, %v449_v37  ;;  %v7036_v38 = vsub.s32 %v738_v40, %v741_v19 }
 0x117   :  { %vm815_vm1 = vcmp.lt.s32.totalorder %v795_v56, 2  ;;  %v824_v58 = vsel %vm816_vm0, %v807_v14, %v823_v20  ;;  %v826_v50 = vsel %vm814_vm14, %v804_v7, %v807_v14  ;;  %v827_v22 = vsel %vm817_vm15, %v813_v24, 1326507024 }
 0x118   :  { %v825_v26 = vsel %vm815_vm1, %v822_v61, %v824_v58  ;;  %v7040_v28 = vadd.f32 %v253_v43, %v211_v55  ;;  %v744_v41 = vsub.s32 0, %v7036_v38  ;;  %v818_v53 = vsel %vm814_vm14, %v798_v63, %v801_v13 }
 0x119   :  { %v820_v23 = vsel %vm816_vm0, %v804_v7, %v819_v27  ;;  %v828_v44 = vsel %vm816_vm0, %v810_v16, %v827_v22  ;;  %v350_v40 = vsel %vm7020_vm12, %v6657_v60, %v347_v2  ;;  %v451_v55 = vsel %vm368_vm13, %v450_v35, %v449_v37 }
 0x11a   :  { %v829_v3 = vsel %vm815_vm1, %v826_v50, %v828_v44  ;;  %v7049_v51 = vmul.u32.u64.low %v6996_v59, %v825_v26  ;;  %v7050_v57 = vmul.u32.u64.high %v6996_v59, %v825_v26, %v7049_v51  ;;  %v5807_v43 = vmin.u32 %v744_v41, %v7036_v38 }
 0x11b   :  { %v7056_v14 = vmul.u32.u64.low %v6996_v59, %v829_v3  ;;  %v7057_v13 = vmul.u32.u64.high %v6996_v59, %v829_v3, %v7056_v14  ;;  %6366 = vsinq.f32 %v6930_v21  ;;  %v821_v7 = vsel %vm815_vm1, %v818_v53, %v820_v23 }
 0x11c   :  { %v889_v36 = vand.u32 2139095040, %v7003_v12  ;;  %6368 = vcosq.f32 %v350_v40  ;;  %v10135_v52 = vand.u32 2147483647, %v6660_v1  ;;  %v746_v63 = vclz %v5807_v43 }
 0x11d   :  { %v993_v16 = vand.u32 2139095040, %v7040_v28  ;;  %v840_v21 = vadd.s32 1, %v7050_v57  ;;  %v10051_v56 = vand.u32 2147483647, %v7003_v12  ;;  %6370 = vsinq.f32 %v350_v40 }
 0x11e   :  { %vm7064_vm2 = vcmp.le.f32.partialorder %v10135_v52, 0.7853982  ;;  %v890_v19 = vshrl.u32 %v889_v36, 23  ;;  %v5808_v24 = vadd.s32 4294967294, %v746_v63  ;;  %v837_v27 = vmul.u32 %v6996_v59, %v821_v7 }
 0x11f   :  { %v454_v37 = vsel %vm7064_vm2, %v6660_v1, %v451_v55  ;;  %vm839_vm3 = vc.u32 %v7057_v13, %v7049_v51  ;;  %v734_v61 = vadd.s32 %v6986_v31, %v6992_v8  ;;  %v994_v58 = vshrl.u32 %v993_v16, 23 }
 0x120   :  { %v841_v20 = vsel %vm839_vm3, %v840_v21, %v7050_v57  ;;  %v5814_v35 = vadd.s32 4294967169, %v890_v19  ;;  %6372 = vcosq.f32 %v454_v37  ;;  %vm5809_vm5 = vcmp.lt.s32.totalorder %v5808_v24, 0 }
 0x121   :  { %v842_v26 = vadd.s32 %v841_v20, %v837_v27  ;;  %v10050_v50 = vand.u32 2147483647, %v7040_v28  ;;  %v749_v22 = vsel %vm5809_vm5, 0, %v5808_v24  ;;  %v893_v41 = vand.u32 8388607, %v10051_v56 }
 0x122   :  { %v896_v53 = vadd.s32 1, %v5814_v35  ;;  %v5818_v59 = vadd.s32 4294967169, %v994_v58  ;;  %6374 = vsinq.f32 %v454_v37  ;;  %v750_v23 = vsub.s32 32, %v749_v22 }
 0x123   :  { %v754_v44 = vsub.s32 4294967266, %v749_v22  ;;  %v843_v40 = vadd.s32 536870912, %v842_v26  ;;  %v751_v31 = vshll.u32 %v7036_v38, %v749_v22  ;;  %v7084_v8 = vadd.s32 %v7049_v51, %v7057_v13 }
 0x124   :  { %vm897_vm8 = vcmp.gt.s32.totalorder %v896_v53, 0  ;;  %v1000_v3 = vadd.s32 1, %v5818_v59  ;;  %v752_v57 = vshrl.u32 %v734_v61, %v750_v23  ;;  %v894_v36 = vor.u32 8388608, %v893_v41 }
 0x125   :  { %v755_v55 = vadd.s32 127, %v754_v44  ;;  %v7086_v43 = vshrl.u32 %v843_v40, 30  ;;  %v898_v14 = vsel %vm897_vm8, %v896_v53, 0  ;;  %v7088_v7 = vpop.eup %6366  ;;  %v997_v63 = vand.u32 8388607, %v10050_v50 }
 0x126   :  { %v900_v52 = vand.u32 31, %v898_v14  ;;  %v452_v16 = vsub.s32 4, %v6953_v42  ;;  %v7093_v38 = vpop.eup %6368  ;;  %v753_v51 = vor.u32 %v752_v57, %v751_v31  ;;  %v899_v21 = vshrl.u32 %v898_v14, 5 }
 0x127   :  { %v756_v13 = vshll.u32 %v755_v55, 23  ;;  %v845_v37 = vshll.u32 %v7086_v43, 30  ;;  %vm1001_vm10 = vcmp.gt.s32.totalorder %v1000_v3, 0  ;;  %v7098_v61 = vpop.eup %6370  ;;  %vm680_vm14 = vcmp.lt.s32.totalorder %v6844_v0, 0 }
 0x128   :  { %v901_v19 = vsub.s32 32, %v900_v52  ;;  %v903_v24 = vshll.u32 %v10064_v62, %v900_v52  ;;  %v906_v27 = vshll.u32 %v10062_v49, %v900_v52  ;;  %v760_v35 = vcvt.s32.f32 %v753_v51 }
 0x129   :  { %v757_v20 = vor.u32 4788187, %v756_v13  ;;  %v7100_v58 = vsub.s32 %v842_v26, %v845_v37  ;;  %v909_v22 = vshll.u32 %v10053_v6, %v900_v52  ;;  %v912_v23 = vshll.u32 %v10124_v33, %v900_v52 }
 0x12a   :  { %v904_v41 = vshrl.u32 %v10062_v49, %v901_v19  ;;  %v907_v53 = vshrl.u32 %v10053_v6, %v901_v19  ;;  %v910_v59 = vshrl.u32 %v10124_v33, %v901_v19  ;;  %v7107_v44 = vpop.eup %6372  ;;  %v913_v57 = vshrl.u32 %v10128_v10, %v901_v19 }
 0x12b   :  { %v758_v40 = vand.u32 2147483647, %v757_v20  ;;  %v848_v31 = vsub.s32 0, %v7100_v58  ;;  %v915_v26 = vshll.u32 %v10128_v10, %v900_v52  ;;  %v916_v13 = vshrl.u32 %v10056_v25, %v901_v19 }
 0x12c   :  { %v905_v55 = vor.u32 %v904_v41, %v903_v24  ;;  %v908_v14 = vor.u32 %v907_v53, %v906_v27  ;;  %v911_v51 = vor.u32 %v910_v59, %v909_v22  ;;  %v7114_v37 = vpop.eup %6374  ;;  %v914_v11 = vor.u32 %v913_v57, %v912_v23 }
 0x12d   :  { %v761_v50 = vmul.f32 %v760_v35, %v758_v40  ;;  %v5811_v56 = vmin.u32 %v848_v31, %v7100_v58  ;;  %v7117_v20 = vshll.u32 %v894_v36, 8  ;;  %v917_v6 = vor.u32 %v916_v13, %v915_v26 }
 0x12e   :  { %vm921_vm15 = vcmp.lt.s32.totalorder %v899_v21, 4  ;;  %v998_v17 = vor.u32 8388608, %v997_v63  ;;  %v7122_v52 = vsel %vm368_vm13, %v452_v16, %v6953_v42  ;;  %vm918_vm0 = vcmp.lt.s32.totalorder %v899_v21, 1 }
 0x12f   :  { %v850_v24 = vclz %v5811_v56  ;;  %v923_v27 = vsel %vm921_vm15, %v911_v51, 2102212464  ;;  %v1002_v22 = vsel %vm1001_vm10, %v1000_v3, 0  ;;  %v902_v35 = vshrl.u32 %v10064_v62, %v901_v19 }
 0x130   :  { %vm920_vm1 = vcmp.lt.s32.totalorder %v899_v21, 3  ;;  %v926_v41 = vsel %vm918_vm0, %v905_v55, %v908_v14  ;;  %v927_v36 = vsel %vm921_vm15, %v914_v11, 920167782  ;;  %v762_v53 = vxor.u32 2147483648, %v761_v50 }
 0x131   :  { %v5812_v59 = vadd.s32 4294967294, %v850_v24  ;;  %v928_v63 = vsel %vm920_vm1, %v911_v51, %v927_v36  ;;  %v930_v23 = vsel %vm918_vm0, %v908_v14, %v911_v51  ;;  %vm919_vm3 = vcmp.lt.s32.totalorder %v899_v21, 2 }
 0x132   :  { %v922_v40 = vsel %vm918_vm0, %v902_v35, %v905_v55  ;;  %v924_v42 = vsel %vm920_vm1, %v908_v14, %v923_v27  ;;  %v931_v56 = vsel %vm921_vm15, %v917_v6, 1326507024  ;;  %v929_v16 = vsel %vm919_vm3, %v926_v41, %v928_v63  ;;  %v1099_v14 = vld [vmem:[%s10036_s4 + $0x8] sm:$0xff] }
 0x133   :  { %vm5813_vm13 = vcmp.lt.s32.totalorder %v5812_v59, 0  ;;  %v932_v31 = vsel %vm920_vm1, %v914_v11, %v931_v56  ;;  %v7129_v57 = vshll.u32 %v998_v17, 8  ;;  %v7131_v26 = vshrl.u32 %v1002_v22, 5  ;;  %1109 = vperm.xlu1 %6359, %v1099_v14  }
 0x134   :  { %v853_v3 = vsel %vm5813_vm13, 0, %v5812_v59  ;;  %v933_v19 = vsel %vm919_vm3, %v930_v23, %v932_v31  ;;  %v1004_v13 = vand.u32 31, %v1002_v22  ;;  %v7135_v24 = vsel %vm680_vm14, %v762_v53, %v761_v50  ;;  %v1098_v50 = vld [vmem:[%s10036_s4] sm:$0xff]  ;;  %v1100_v23 = vld [vmem:[%s10036_s4 + $0x10] sm:$0xff] }
 0x135   :  { %v854_v51 = vsub.s32 32, %v853_v3  ;;  %v858_v36 = vsub.s32 4294967266, %v853_v3  ;;  %v925_v55 = vsel %vm919_vm3, %v922_v40, %v924_v42  ;;  %v855_v27 = vshll.u32 %v7100_v58, %v853_v3  ;;  %1104 = vperm.xlu0 %6358, %v1098_v50  }
 0x136   :  { %v7138_v21 = vmul.u32.u64.low %v7117_v20, %v933_v19  ;;  %v7139_v6 = vmul.u32.u64.high %v7117_v20, %v933_v19, %v7138_v21  ;;  %v7142_v11 = vmul.u32.u64.low %v7117_v20, %v929_v16  ;;  %v7143_v17 = vmul.u32.u64.high %v7117_v20, %v929_v16, %v7142_v11 }
 0x137   :  { %v856_v22 = vshrl.u32 %v7084_v8, %v854_v51  ;;  %v859_v35 = vadd.s32 127, %v858_v36  ;;  %v1005_v41 = vsub.s32 32, %v1004_v13  ;;  %v941_v53 = vmul.u32 %v7117_v20, %v925_v55  ;;  %v1101_v8 = vld [vmem:[%s10036_s4 + $0x18] sm:$0xff]  ;;  %1114 = vperm.xlu1 %6359, %v1100_v23  }
 0x138   :  { %v1007_v59 = vshll.u32 %v10064_v62, %v1004_v13  ;;  %v1010_v63 = vshll.u32 %v10062_v49, %v1004_v13  ;;  %vm1022_vm5 = vcmp.lt.s32.totalorder %v7131_v26, 1  ;;  %v10138_v58 = vand.u32 2147483647, %v6844_v0 }
 0x139   :  { %v857_v20 = vor.u32 %v856_v22, %v855_v27  ;;  %v860_v42 = vshll.u32 %v859_v35, 23  ;;  %v1008_v56 = vshrl.u32 %v10062_v49, %v1005_v41  ;;  %v10141_v16 = vmov 2131351028   ;;  %1119 = vperm.xlu0 %6358, %v1101_v8  }
 0x13a   :  { %vm7166_vm8 = vcmp.le.f32.partialorder %v10138_v58, 0.7853982  ;;  %v1013_v31 = vshll.u32 %v10141_v16, %v1004_v13  ;;  %vm943_vm10 = vc.u32 %v7139_v6, %v7142_v11  ;;  %v944_v3 = vadd.s32 1, %v7143_v17  ;;  %v5701_v58 = vld [vmem:[%s10037_s5] sm:$0xff] }
 0x13b   :  { %v1011_v19 = vshrl.u32 %v10141_v16, %v1005_v41  ;;  %v1016_v51 = vshll.u32 %v10124_v33, %v1004_v13  ;;  %v861_v36 = vor.u32 4788187, %v860_v42  ;;  %v1009_v55 = vor.u32 %v1008_v56, %v1007_v59  ;;  %v5702_v59 = vld [vmem:[%s10037_s5 + $0x8] sm:$0xff]  ;;  %5708 = vperm.xlu1 %6359, %v5701_v58  }
 0x13c   :  { %v1014_v21 = vshrl.u32 %v10124_v33, %v1005_v41  ;;  %v1019_v14 = vshll.u32 %v10128_v10, %v1004_v13  ;;  %v945_v50 = vsel %vm943_vm10, %v944_v3, %v7143_v17  ;;  %v1017_v22 = vshrl.u32 %v10128_v10, %v1005_v41 }
 0x13d   :  { %v1012_v27 = vor.u32 %v1011_v19, %v1010_v63  ;;  %v1020_v35 = vshrl.u32 %v10056_v25, %v1005_v41  ;;  %v862_v42 = vand.u32 2147483647, %v861_v36  ;;  %v864_v56 = vcvt.s32.f32 %v857_v20  ;;  %5713 = vperm.xlu0 %6358, %v5702_v59  }
 0x13e   :  { %v946_v13 = vadd.s32 %v945_v50, %v941_v53  ;;  %v1015_v23 = vor.u32 %v1014_v21, %v1013_v31  ;;  %v1006_v8 = vshrl.u32 %v10064_v62, %v1005_v41  ;;  %v1018_v17 = vor.u32 %v1017_v22, %v1016_v51  ;;  %v5703_v21 = vld [vmem:[%s10037_s5 + $0x10] sm:$0xff] }
 0x13f   :  { %v1021_v63 = vor.u32 %v1020_v35, %v1019_v14  ;;  %vm1025_vm15 = vcmp.lt.s32.totalorder %v7131_v26, 4  ;;  %v865_v3 = vmul.f32 %v864_v56, %v862_v42  ;;  %vm1024_vm0 = vcmp.lt.s32.totalorder %v7131_v26, 3  ;;  %v5704_v14 = vld [vmem:[%s10037_s5 + $0x18] sm:$0xff]  ;;  %5718 = vperm.xlu1 %6359, %v5703_v21  }
 0x140   :  { %v947_v19 = vadd.s32 536870912, %v946_v13  ;;  %v1027_v25 = vsel %vm1025_vm15, %v1015_v23, 2102212464  ;;  %v10142_v36 = vand.u32 2147483647, %v6877_v34  ;;  %v1026_v41 = vsel %vm1022_vm5, %v1006_v8, %v1009_v55 }
 0x141   :  { %v1028_v20 = vsel %vm1024_vm0, %v1012_v27, %v1027_v25  ;;  %v1030_v31 = vsel %vm1022_vm5, %v1009_v55, %v1012_v27  ;;  %v1031_v51 = vsel %vm1025_vm15, %v1018_v17, 920167782  ;;  %vm1023_vm3 = vcmp.lt.s32.totalorder %v7131_v26, 2  ;;  %5723 = vperm.xlu0 %6358, %v5704_v14  }
 0x142   :  { %vm7195_vm1 = vcmp.le.f32.partialorder %v10142_v36, 0.7853982  ;;  %v7213_v50 = vshrl.u32 %v947_v19, 30  ;;  %v1032_v25 = vsel %vm1024_vm0, %v1015_v23, %v1031_v51  ;;  %v1034_v55 = vsel %vm1022_vm5, %v1012_v27, %v1015_v23 }
 0x143   :  { %v7224_v22 = vsel %vm7166_vm8, %v6844_v0, %v7135_v24  ;;  %v866_v35 = vxor.u32 2147483648, %v865_v3  ;;  %v1033_v58 = vsel %vm1023_vm3, %v1030_v31, %v1032_v25  ;;  %v1035_v59 = vsel %vm1025_vm15, %v1021_v63, 1326507024 }
 0x144   :  { %v949_v42 = vshll.u32 %v7213_v50, 30  ;;  %v1029_v56 = vsel %vm1023_vm3, %v1026_v41, %v1028_v20  ;;  %v1036_v8 = vsel %vm1024_vm0, %v1018_v17, %v1035_v59  ;;  %v455_v27 = vsel %vm7064_vm2, 0, %v7122_v52 }
 0x145   :  { %vm784_vm13 = vcmp.lt.s32.totalorder %v6877_v34, 0  ;;  %v1037_v24 = vsel %vm1023_vm3, %v1034_v55, %v1036_v8  ;;  %v7236_v23 = vmul.u32.u64.low %v7129_v57, %v1033_v58  ;;  %v7237_v19 = vmul.u32.u64.high %v7129_v57, %v1033_v58, %v7236_v23 }
 0x146   :  { %6376 = vcosq.f32 %v7224_v22  ;;  %v7241_v63 = vsub.s32 %v946_v13, %v949_v42  ;;  %v7244_v26 = vmul.u32.u64.low %v7129_v57, %v1037_v24  ;;  %v7245_v17 = vmul.u32.u64.high %v7129_v57, %v1037_v24, %v7244_v26 }
 0x147   :  { %v867_v2 = vsel %vm784_vm13, %v866_v35, %v865_v3  ;;  %v942_v52 = vadd.s32 %v7142_v11, %v7139_v6  ;;  %v1045_v36 = vmul.u32 %v7129_v57, %v1029_v56  ;;  %v459_v41 = vadd.s32 3, %v455_v27 }
 0x148   :  { %v952_v20 = vsub.s32 0, %v7241_v63  ;;  %v463_v31 = vxor.u32 2147483648, %v7114_v37  ;;  %v466_v13 = vxor.u32 2147483648, %v7107_v44  ;;  %v660_v51 = vsub.s32 4, %v6772_v30 }
 0x149   :  { %v1048_v21 = vadd.s32 1, %v7237_v19  ;;  %vm458_vm2 = vweird.f32 %v6660_v1  ;;  %v460_v14 = vand.u32 3, %v459_v41  ;;  %v348_v3 = vsub.s32 4, %v6885_v46 }
 0x14a   :  { %v7262_v57 = vsel %vm7195_vm1, %v6877_v34, %v867_v2  ;;  %v5815_v6 = vmin.u32 %v952_v20, %v7241_v63  ;;  %vm1047_vm5 = vc.u32 %v7245_v17, %v7236_v23  ;;  %v661_v11 = vsel %vm576_vm7, %v660_v51, %v6772_v30 }
 0x14b   :  { %v1049_v25 = vsel %vm1047_vm5, %v1048_v21, %v7237_v19  ;;  %vm461_vm10 = vcmp.lt.s32.totalorder %v460_v14, 2  ;;  %vm462_vm15 = vcmp.eq.s32.totalorder %v460_v14, 0  ;;  %vm465_vm0 = vcmp.eq.s32.totalorder %v460_v14, 2 }
 0x14c   :  { %v954_v55 = vclz %v5815_v6  ;;  %v1050_v35 = vadd.s32 %v1049_v25, %v1045_v36  ;;  %v464_v58 = vsel %vm462_vm15, %v7107_v44, %v463_v31  ;;  %v467_v59 = vsel %vm465_vm0, %v466_v13, %v7114_v37 }
 0x14d   :  { %6378 = vcosq.f32 %v7262_v57  ;;  %v468_v42 = vsel %vm461_vm10, %v464_v58, %v467_v59  ;;  %v663_v56 = vsel %vm6881_vm11, 0, %v661_v11  ;;  %v349_v30 = vsel %vm264_vm9, %v348_v3, %v6885_v46 }
 0x14e   :  { %v5816_v8 = vadd.s32 4294967294, %v954_v55  ;;  %v1051_v27 = vadd.s32 536870912, %v1050_v35  ;;  %v7281_v24 = vsel %vm458_vm2, nan, %v468_v42  ;;  %v667_v19 = vadd.s32 3, %v663_v56 }
 0x14f   :  { %vm666_vm7 = vweird.f32 %v6618_v5  ;;  %v671_v44 = vxor.u32 2147483648, %v7088_v7  ;;  %v674_v37 = vxor.u32 2147483648, %v6973_v9  ;;  %v351_v29 = vsel %vm7020_vm12, 0, %v349_v30 }
 0x150   :  { %v7288_v26 = vpop.eup %6376  ;;  %vm5817_vm11 = vcmp.lt.s32.totalorder %v5816_v8, 0  ;;  %v7290_v46 = vshrl.u32 %v1051_v27, 30  ;;  %v668_v2 = vand.u32 3, %v667_v19  ;;  %v355_v36 = vadd.s32 3, %v351_v29 }
 0x151   :  { %v957_v1 = vsel %vm5817_vm11, 0, %v5816_v8  ;;  %v1135_v41 = vand.u32 4294901760, %v7281_v24  ;;  %v359_v20 = vxor.u32 2147483648, %v7098_v61  ;;  %v362_v31 = vxor.u32 2147483648, %v7093_v38 }
 0x152   :  { %v958_v13 = vsub.s32 32, %v957_v1  ;;  %v962_v51 = vsub.s32 4294967266, %v957_v1  ;;  %v1053_v21 = vshll.u32 %v7290_v46, 30  ;;  %v556_v54 = vsub.s32 4, %v6726_v39 }
 0x153   :  { %v959_v14 = vshll.u32 %v7241_v63, %v957_v1  ;;  %vm670_vm9 = vcmp.eq.s32.totalorder %v668_v2, 0  ;;  %vm673_vm12 = vcmp.eq.s32.totalorder %v668_v2, 2  ;;  %v356_v3 = vand.u32 3, %v355_v36 }
 0x154   :  { %v960_v6 = vshrl.u32 %v942_v52, %v958_v13  ;;  %v963_v11 = vadd.s32 127, %v962_v51  ;;  %v7298_v25 = vsub.s32 %v1050_v35, %v1053_v21  ;;  %v672_v55 = vsel %vm670_vm9, %v6973_v9, %v671_v44 }
 0x155   :  { %vm669_vm3 = vcmp.lt.s32.totalorder %v668_v2, 2  ;;  %v675_v58 = vsel %vm673_vm12, %v674_v37, %v7088_v7  ;;  %vm358_vm2 = vcmp.eq.s32.totalorder %v356_v3, 0  ;;  %vm361_vm5 = vcmp.eq.s32.totalorder %v356_v3, 2 }
 0x156   :  { %v961_v59 = vor.u32 %v960_v6, %v959_v14  ;;  %v964_v42 = vshll.u32 %v963_v11, 23  ;;  %v1056_v56 = vsub.s32 0, %v7298_v25  ;;  %v676_v30 = vsel %vm669_vm3, %v672_v55, %v675_v58 }
 0x157   :  { %v7303_v63 = vpop.eup %6378  ;;  %vm888_vm10 = vcmp.lt.s32.totalorder %v7003_v12, 0  ;;  %v7308_v52 = vsel %vm666_vm7, nan, %v676_v30  ;;  %v360_v9 = vsel %vm358_vm2, %v7093_v38, %v359_v20  ;;  %v363_v35 = vsel %vm361_vm5, %v362_v31, %v7098_v61 }
 0x158   :  { %v557_v7 = vsel %vm472_vm4, %v556_v54, %v6726_v39  ;;  %v10145_v8 = vand.u32 2147483647, %v7003_v12  ;;  %v965_v19 = vor.u32 4788187, %v964_v42  ;;  %v5819_v44 = vmin.u32 %v1056_v56, %v7298_v25 }
 0x159   :  { %v1139_v5 = vand.u32 4294901760, %v7308_v52  ;;  %vm357_vm0 = vcmp.lt.s32.totalorder %v356_v3, 2  ;;  %6380 = vsinq.f32 %v7262_v57  ;;  %vm354_vm7 = vweird.f32 %v6657_v60 }
 0x15a   :  { %vm7317_vm15 = vcmp.le.f32.partialorder %v10145_v8, 0.7853982  ;;  %v364_v38 = vsel %vm357_vm0, %v360_v9, %v363_v35  ;;  %v559_v39 = vsel %vm6864_vm6, 0, %v557_v7  ;;  %v966_v61 = vand.u32 2147483647, %v965_v19 }
 0x15b   :  { %v968_v37 = vcvt.s32.f32 %v961_v59  ;;  %v1058_v29 = vclz %v5819_v44  ;;  %v7331_v2 = vpack.c.bf16 %v1139_v5, %v1135_v41  ;;  %6382 = vsinq.f32 %v7224_v22 }
 0x15c   :  { %v7334_v36 = vsel %vm354_vm7, nan, %v364_v38  ;;  %v563_v57 = vadd.s32 3, %v559_v39  ;;  %v868_v60 = vsub.s32 4, %v7086_v43  ;;  %v1046_v32 = vadd.s32 %v7236_v23, %v7245_v17 }
 0x15d   :  { %v969_v1 = vmul.f32 %v968_v37, %v966_v61  ;;  %v5820_v20 = vadd.s32 4294967294, %v1058_v29  ;;  %5919 = vmatprep.subr.bf16.mxu1 %v7331_v2  ;;  %5943 = vmatprep.subr.bf16.mxu0 %v7331_v2  ;;  %vm562_vm4 = vweird.f32 %v6616_v4  ;;  %v567_v13 = vxor.u32 2147483648, %v6969_v45 }
 0x15e   :  { %v564_v31 = vand.u32 3, %v563_v57  ;;  %v570_v22 = vxor.u32 2147483648, %v6960_v48  ;;  %v869_v51 = vsel %vm784_vm13, %v868_v60, %v7086_v43  ;;  %v1137_v23 = vand.u32 4294901760, %v7334_v36 }
 0x15f   :  { %v970_v21 = vxor.u32 2147483648, %v969_v1  ;;  %vm5821_vm6 = vcmp.lt.s32.totalorder %v5820_v20, 0  ;;  %v871_v17 = vsel %vm7195_vm1, 0, %v869_v51  ;;  %v882_v4 = vxor.u32 2147483648, %v7303_v63 }
 0x160   :  { %v1061_v54 = vsel %vm5821_vm6, 0, %v5820_v20  ;;  %vm565_vm11 = vcmp.lt.s32.totalorder %v564_v31, 2  ;;  %vm566_vm9 = vcmp.eq.s32.totalorder %v564_v31, 0  ;;  %vm569_vm12 = vcmp.eq.s32.totalorder %v564_v31, 2 }
 0x161   :  { %v971_v14 = vsel %vm888_vm10, %v970_v21, %v969_v1  ;;  %v1062_v3 = vsub.s32 32, %v1061_v54  ;;  %v1063_v6 = vshll.u32 %v7298_v25, %v1061_v54  ;;  %v1066_v11 = vsub.s32 4294967266, %v1061_v54 }
 0x162   :  { %v974_v43 = vsel %vm7317_vm15, %v7003_v12, %v971_v14  ;;  %v568_v55 = vsel %vm566_vm9, %v6960_v48, %v567_v13  ;;  %v571_v53 = vsel %vm569_vm12, %v570_v22, %v6969_v45  ;;  %v875_v58 = vadd.s32 3, %v871_v17 }
 0x163   :  { %6384 = vcosq.f32 %v974_v43  ;;  %v1064_v59 = vshrl.u32 %v1046_v32, %v1062_v3  ;;  %v1067_v42 = vadd.s32 127, %v1066_v11  ;;  %v572_v56 = vsel %vm565_vm11, %v568_v55, %v571_v53  ;;  %v6381_v30 = vpop.eup %6380 }
 0x164   :  { %6386 = vsinq.f32 %v974_v43  ;;  %v7360_v9 = vsel %vm562_vm4, nan, %v572_v56  ;;  %v876_v19 = vand.u32 3, %v875_v58  ;;  %v1076_v48 = vsub.s32 4, %v7290_v46 }
 0x165   :  { %v1065_v25 = vor.u32 %v1064_v59, %v1063_v6  ;;  %v1068_v35 = vshll.u32 %v1067_v42, 23  ;;  %v1141_v7 = vand.u32 4294901760, %v7360_v9  ;;  %v6383_v8 = vpop.eup %6382  ;;  %v879_v38 = vxor.u32 2147483648, %v6381_v30 }
 0x166   :  { %v764_v39 = vsub.s32 4, %v7027_v47  ;;  %v10148_v61 = vand.u32 2147483647, %v7040_v28  ;;  %vm992_vm13 = vcmp.lt.s32.totalorder %v7040_v28, 0  ;;  %v7384_v60 = vsub.f32 %v7281_v24, %v1135_v41 }
 0x167   :  { %v1069_v45 = vor.u32 4788187, %v1068_v35  ;;  %v7368_v44 = vpack.c.bf16 %v1141_v7, %v1137_v23  ;;  %v1072_v57 = vcvt.s32.f32 %v1065_v25  ;;  %vm878_vm3 = vcmp.eq.s32.totalorder %v876_v19, 0 }
 0x168   :  { %vm7374_vm1 = vcmp.le.f32.partialorder %v10148_v61, 0.7853982  ;;  %v1077_v1 = vsel %vm992_vm13, %v1076_v48, %v7290_v46  ;;  %v765_v32 = vsel %vm680_vm14, %v764_v39, %v7027_v47  ;;  %vm881_vm2 = vcmp.eq.s32.totalorder %v876_v19, 2 }
 0x169   :  { %v1070_v29 = vand.u32 2147483647, %v1069_v45  ;;  %5921 = vmatpush1.bf16.msra.mxu1 %v7368_v44  ;;  %5945 = vmatpush1.bf16.msra.mxu0 %v7368_v44  ;;  %v767_v31 = vsel %vm7166_vm8, 0, %v765_v32  ;;  %v972_v13 = vsub.s32 4, %v7213_v50  ;;  %v7398_v24 = vsub.f32 %v7308_v52, %v1139_v5 }
 0x16a   :  { %v880_v41 = vsel %vm878_vm3, %v7303_v63, %v879_v38  ;;  %v883_v22 = vsel %vm881_vm2, %v882_v4, %v6381_v30  ;;  %v771_v46 = vadd.s32 3, %v767_v31  ;;  %v775_v17 = vxor.u32 2147483648, %v6383_v8 }
 0x16b   :  { %v1073_v20 = vmul.f32 %v1072_v57, %v1070_v29  ;;  %v778_v47 = vxor.u32 2147483648, %v7288_v26  ;;  %v973_v40 = vsel %vm888_vm10, %v972_v13, %v7213_v50  ;;  %vm877_vm14 = vcmp.lt.s32.totalorder %v876_v19, 2 }
 0x16c   :  { %v1079_v14 = vsel %vm7374_vm1, 0, %v1077_v1  ;;  %v772_v52 = vand.u32 3, %v771_v46  ;;  %v975_v63 = vsel %vm7317_vm15, 0, %v973_v40  ;;  %v884_v3 = vsel %vm877_vm14, %v880_v41, %v883_v22 }
 0x16d   :  { %v6385_v51 = vpop.eup %6384  ;;  %v1074_v21 = vxor.u32 2147483648, %v1073_v20  ;;  %v979_v6 = vadd.s32 3, %v975_v63  ;;  %vm874_vm10 = vweird.f32 %v6877_v34  ;;  %v1083_v27 = vadd.s32 3, %v1079_v14  ;;  %v1097_v14 = vld [vmem:[%s10038_s3 + $0x18] sm:$0xff] }
 0x16e   :  { %v6387_v54 = vpop.eup %6386  ;;  %v986_v11 = vxor.u32 2147483648, %v6385_v51  ;;  %vm774_vm8 = vcmp.eq.s32.totalorder %v772_v52, 0  ;;  %vm777_vm5 = vcmp.eq.s32.totalorder %v772_v52, 2  ;;  %vm773_vm15 = vcmp.lt.s32.totalorder %v772_v52, 2 }
 0x16f   :  { %v1075_v5 = vsel %vm992_vm13, %v1074_v21, %v1073_v20  ;;  %v983_v50 = vxor.u32 2147483648, %v6387_v54  ;;  %v776_v55 = vsel %vm774_vm8, %v7288_v26, %v775_v17  ;;  %v779_v53 = vsel %vm777_vm5, %v778_v47, %v6383_v8  ;;  %v1094_v26 = vld [vmem:[%s10038_s3] sm:$0xff] }
 0x170   :  { %v1078_v43 = vsel %vm7374_vm1, %v7040_v28, %v1075_v5  ;;  %v980_v58 = vand.u32 3, %v979_v6  ;;  %vm770_vm0 = vweird.f32 %v6844_v0  ;;  %v780_v59 = vsel %vm773_vm15, %v776_v55, %v779_v53  ;;  %v1095_v0 = vld [vmem:[%s10038_s3 + $0x8] sm:$0xff] }
 0x171   :  { %6388 = vcosq.f32 %v1078_v43  ;;  %v7417_v42 = vsel %vm874_vm10, nan, %v884_v3  ;;  %vm978_vm11 = vweird.f32 %v7003_v12  ;;  %v1254_v34 = vand.u32 4294901760, %v7384_v60 }
 0x172   :  { %6390 = vsinq.f32 %v1078_v43  ;;  %vm982_vm7 = vcmp.eq.s32.totalorder %v980_v58, 0  ;;  %vm985_vm4 = vcmp.eq.s32.totalorder %v980_v58, 2  ;;  %vm981_vm6 = vcmp.lt.s32.totalorder %v980_v58, 2 }
 0x173   :  { %v984_v56 = vsel %vm982_vm7, %v6385_v51, %v983_v50  ;;  %v987_v30 = vsel %vm985_vm4, %v986_v11, %v6387_v54  ;;  %v781_v35 = vsel %vm770_vm0, nan, %v780_v59  ;;  %v1266_v19 = vand.u32 4294901760, %v7398_v24  ;;  %v1096_v51 = vld [vmem:[%s10038_s3 + $0x10] sm:$0xff] }
 0x174   :  { %v988_v25 = vsel %vm981_vm6, %v984_v56, %v987_v30  ;;  %v10058_v48 = vmov 0.0   ;;  %vm1122_vm9 = vcmask 261120   ;;  %v1084_v45 = vand.u32 3, %v1083_v27 }
 0x175   :  { %v989_v8 = vsel %vm978_vm11, nan, %v988_v25  ;;  %1207 = vmatprep.mubr.f32.mxu1 %v10058_v48  ;;  %1570 = vmatprep.mubr.f32.mxu0 %v10058_v48  ;;  %v1124_v12 = vsel %vm1122_vm9, %v1094_v26, 0  ;;  %v7434_v4 = vsub.f32 %v7334_v36, %v1137_v23  ;;  %v1143_v39 = vand.u32 4294901760, %v7417_v42 }
 0x176   :  { %v1149_v38 = vand.u32 4294901760, %v989_v8  ;;  %v7437_v61 = vand.u32 4294901760, %v1124_v12  ;;  %v1127_v37 = vsel %vm1122_vm9, %v1095_v0, 0  ;;  %v1145_v29 = vand.u32 4294901760, %v781_v35 }
 0x177   :  { %v1255_v57 = vsub.f32 %v7384_v60, %v1254_v34  ;;  %v1267_v1 = vsub.f32 %v7398_v24, %v1266_v19  ;;  %v7447_v20 = vand.u32 4294901760, %v1127_v37  ;;  %v7452_v23 = vsub.f32 %v7360_v9, %v1141_v7 }
 0x178   :  { %10151 = vst [vmem:[#allocation5_spill] sm:$0xff] %v7437_v61  ;;  %v7445_v32 = vsub.f32 %v1124_v12, %v7437_v61  ;;  %vm1082_vm12 = vweird.f32 %v7040_v28  ;;  %vm1085_vm1 = vcmp.lt.s32.totalorder %v1084_v45, 2  ;;  %v7455_v31 = vsub.f32 %v989_v8, %v1149_v38 }
 0x179   :  { %10153 = vst [vmem:[#allocation7_spill] sm:$0xff] %v7447_v20  ;;  %vm1086_vm13 = vcmp.eq.s32.totalorder %v1084_v45, 0  ;;  %v7458_v22 = vsub.f32 %v7417_v42, %v1143_v39  ;;  %v1260_v46 = vand.u32 4294901760, %v7434_v4  ;;  %vm1089_vm3 = vcmp.eq.s32.totalorder %v1084_v45, 2 }
 0x17a   :  { %10152 = vst [vmem:[#allocation6_spill] sm:$0xff] %v7445_v32  ;;  %v7464_v9 = vsub.f32 %v781_v35, %v1145_v29  ;;  %v7467_v7 = vsub.f32 %v1127_v37, %v7447_v20  ;;  %v1256_v47 = vand.u32 4294901760, %v1255_v57  ;;  %v1268_v40 = vand.u32 4294901760, %v1267_v1 }
 0x17b   :  { %v6389_v36 = vpop.eup %6388  ;;  %v7470_v54 = vand.u32 4294901760, %v7445_v32  ;;  %v1272_v63 = vand.u32 4294901760, %v7452_v23  ;;  %v1296_v5 = vand.u32 4294901760, %v7455_v31  ;;  %v1130_v3 = vsel %vm1122_vm9, %v1096_v51, 0 }
 0x17c   :  { %v6391_v13 = vpop.eup %6390  ;;  %v1090_v41 = vxor.u32 2147483648, %v6389_v36  ;;  %10154 = vst [vmem:[#allocation8_spill] sm:$0xff] %v7467_v7  ;;  %v1261_v11 = vsub.f32 %v7434_v4, %v1260_v46  ;;  %v1278_v43 = vand.u32 4294901760, %v7458_v22  ;;  %v7481_v50 = vand.u32 4294901760, %v1130_v3 }
 0x17d   :  { %v1087_v21 = vxor.u32 2147483648, %v6391_v13  ;;  %10155 = vst [vmem:[#allocation9_spill] sm:$0xff] %v7470_v54  ;;  %v7486_v53 = vand.u32 4294901760, %v7467_v7  ;;  %v1284_v58 = vand.u32 4294901760, %v7464_v9  ;;  %v1133_v27 = vsel %vm1122_vm9, %v1097_v14, 0 }
 0x17e   :  { %v1091_v17 = vsel %vm1089_vm3, %v1090_v41, %v6391_v13  ;;  %10156 = vst [vmem:[#allocation10_spill] sm:$0xff] %v7481_v50  ;;  %v1211_v42 = vsub.f32 %v7445_v32, %v7470_v54  ;;  %v7493_v56 = vsub.f32 %v1130_v3, %v7481_v50  ;;  %v7495_v30 = vand.u32 4294901760, %v1133_v27 }
 0x17f   :  { %v1088_v52 = vsel %vm1086_vm13, %v6389_v36, %v1087_v21  ;;  %10157 = vst [vmem:[#allocation11_spill] sm:$0xff] %v7486_v53  ;;  %v7497_v26 = vpack.c.bf16 %v1149_v38, %v1145_v29  ;;  %v1273_v28 = vsub.f32 %v7452_v23, %v1272_v63  ;;  %v1297_v25 = vsub.f32 %v7455_v31, %v1296_v5 }
 0x180   :  { %v1092_v6 = vsel %vm1085_vm1, %v1088_v52, %v1091_v17  ;;  %10158 = vst [vmem:[#allocation12_spill] sm:$0xff] %v7493_v56  ;;  %10159 = vst [vmem:[#allocation13_spill] sm:$0xff] %v7495_v30  ;;  %v12_v0 = vstv %s10039_s6  ;;  %v5926_v45 = vpack.c.bf16 %v1268_v40, %v1256_v47  ;;  %v5950_v12 = vpack.c.bf16 %v1266_v19, %v1254_v34 }
 0x181   :  { %v1093_v55 = vsel %vm1082_vm12, nan, %v1092_v6  ;;  %13 = vst [vmem:[#allocation2] sm:$0x1] %v12_v0  ;;  %v1262_v38 = vand.u32 4294901760, %v1261_v11  ;;  %v1222_v37 = vsub.f32 %v7467_v7, %v7486_v53  ;;  %v1279_v29 = vsub.f32 %v7458_v22, %v1278_v43 }
 0x182   :  { %v1147_v59 = vand.u32 4294901760, %v1093_v55  ;;  %v1285_v57 = vsub.f32 %v7464_v9, %v1284_v58  ;;  %v7522_v36 = vand.u32 4294901760, %v7493_v56  ;;  %v7525_v34 = vsub.f32 %v1133_v27, %v7495_v30 }
 0x183   :  { %v1274_v19 = vand.u32 4294901760, %v1273_v28  ;;  %v1298_v13 = vand.u32 4294901760, %v1297_v25  ;;  %v5952_v41 = vpack.c.bf16 %v1272_v63, %v1260_v46  ;;  %v7530_v17 = vand.u32 4294901760, %v1222_v37 }
 0x184   :  { %v7506_v35 = vpack.c.bf16 %v1147_v59, %v1143_v39  ;;  %v7508_v8 = vsub.f32 %v1093_v55, %v1147_v59  ;;  %v7518_v39 = vand.u32 4294901760, %v1211_v42  ;;  %10160 = vst [vmem:[#allocation14_spill] sm:$0xff] %v7522_v36  ;;  %10161 = vst [vmem:[#allocation15_spill] sm:$0xff] %v7525_v34  ;;  %v1280_v47 = vand.u32 4294901760, %v1279_v29 }
 0x185   :  { %v5928_v21 = vpack.c.bf16 %v1274_v19, %v1262_v38  ;;  %10162 = vst [vmem:[#allocation16_spill] sm:$0xff] %v7530_v17  ;;  %v1286_v40 = vand.u32 4294901760, %v1285_v57  ;;  %v1233_v3 = vsub.f32 %v7493_v56, %v7522_v36  ;;  %v7537_v6 = vand.u32 4294901760, %v7525_v34 }
 0x186   :  { %5923 = vmatprep.subr.bf16.mxu1 %v7506_v35  ;;  %5947 = vmatprep.subr.bf16.mxu0 %v7506_v35  ;;  %v1290_v1 = vand.u32 4294901760, %v7508_v8  ;;  %v5934_v55 = vpack.c.bf16 %v7398_v24, %v7384_v60  ;;  %v5938_v60 = vpack.c.bf16 %v7508_v8, %v7458_v22  ;;  %v5940_v24 = vpack.c.bf16 %v7455_v31, %v7464_v9 }
 0x187   :  { %5925 = vmatpush1.bf16.msra.mxu1 %v7497_v26  ;;  %5949 = vmatpush1.bf16.msra.mxu0 %v7497_v26  ;;  %10163 = vst [vmem:[#allocation17_spill] sm:$0xff] %v7537_v6  ;;  %v5932_v46 = vpack.c.bf16 %v1298_v13, %v1286_v40  ;;  %v7546_v27 = vand.u32 4294901760, %v1233_v3  ;;  %v1244_v59 = vsub.f32 %v7525_v34, %v7537_v6 }
 0x188   :  { %5927 = vmatprep.subr.bf16.mxu1 %v5926_v45  ;;  %5951 = vmatprep.subr.bf16.mxu0 %v5950_v12  ;;  %v1291_v51 = vsub.f32 %v7508_v8, %v1290_v1  ;;  %v5954_v14 = vpack.c.bf16 %v1290_v1, %v1278_v43  ;;  %v5705_v63 = vld [vmem:[#allocation2] sm:$0x1]  ;;  %v5956_v43 = vpack.c.bf16 %v1296_v5, %v1284_v58 }
 0x189   :  { %5754 = vperm.xlu1 %6359, %v5705_v63   ;;  %10164 = vst [vmem:[#allocation18_spill] sm:$0xff] %v7546_v27  ;;  %v7555_v5 = vand.u32 4294901760, %v1244_v59 }
 0x18a   :  { %1213 = vmatmul.mubr.f32.vlgmr.msra.gmra.mrb[0].mxu1 %v7518_v39  ;;  %1574 = vmatmul.mubr.f32.vlgmr.msra.gmra.mrb[0].mxu0 %v7470_v54  ;;  %v1292_v52 = vand.u32 4294901760, %v1291_v51 }
 0x18b   :  { %5929 = vmatpush1.bf16.msra.mxu1 %v5928_v21  ;;  %5953 = vmatpush1.bf16.msra.mxu0 %v5952_v41  ;;  %10165 = vst [vmem:[#allocation19_spill] sm:$0xff] %v7555_v5 }
 0x18c   :  { %5955 = vmatprep.subr.bf16.mxu0 %v5954_v14  ;;  %1218 = vmatprep.mubr.f32.mxu1 %v10058_v48  ;;  %v5930_v11 = vpack.c.bf16 %v1292_v52, %v1280_v47 }
 0x18d   :  { %1579 = vmatprep.mubr.f32.mxu0 %v10058_v48 }
 0x18e   :  { %1224 = vmatmul.mubr.f32.gmra.mrb[2].mxu1 %v7530_v17  ;;  %5931 = vmatprep.subr.bf16.mxu1 %v5930_v11 }
 0x18f   :  { %1583 = vmatmul.mubr.f32.gmra.mrb[2].mxu0 %v7486_v53  ;;  %5933 = vmatpush1.bf16.msra.mxu1 %v5932_v46 }
 0x190   :  { %5957 = vmatpush1.bf16.msra.mxu0 %v5956_v43  ;;  %5935 = vmatprep.subr.bf16.mxu1 %v5934_v55 }
 0x191   :  { %5959 = vmatprep.subr.bf16.mxu0 %v7331_v2  ;;  %1229 = vmatprep.mubr.f32.mxu1 %v10058_v48  ;;  %v5936_v2 = vpack.c.bf16 %v7452_v23, %v7434_v4 }
 0x192   :  { %1588 = vmatprep.mubr.f32.mxu0 %v10058_v48  ;;  %1235 = vmatmul.mubr.f32.gmra.mrb[4].mxu1 %v7546_v27 }
 0x193   :  { %1592 = vmatmul.mubr.f32.gmra.mrb[4].mxu0 %v7522_v36  ;;  %1240 = vmatprep.mubr.f32.mxu1 %v10058_v48 }
 0x194   :  { %1597 = vmatprep.mubr.f32.mxu0 %v10058_v48 }
 0x196   :  { %1246 = vmatmul.mubr.f32.gmra.mrb[6].mxu1 %v7555_v5 }
 0x197   :  { %1601 = vmatmul.mubr.f32.gmra.mrb[6].mxu0 %v7537_v6  ;;  %1356 = vmatprep.mubr.f32.mxu1 %v10058_v48 }
 0x198   :  { %1695 = vmatprep.mubr.f32.mxu0 %v10058_v48 }
 0x19a   :  { %1358 = vmatmul.mubr.f32.vlgmr.msra.gmra.mrb[0].mxu1 %v7437_v61 }
 0x19b   :  { %5937 = vmatpush1.bf16.msra.mxu1 %v5936_v2  ;;  %1697 = vmatmul.mubr.f32.vlgmr.msra.gmra.mrb[0].mxu0 %v7437_v61 }
 0x19c   :  { %5961 = vmatpush1.bf16.msra.mxu0 %v7368_v44  ;;  %5939 = vmatprep.subr.bf16.mxu1 %v5938_v60 }
 0x19d   :  { %5963 = vmatprep.subr.bf16.mxu0 %v7506_v35  ;;  %1363 = vmatprep.mubr.f32.mxu1 %v10058_v48 }
 0x19e   :  { %1702 = vmatprep.mubr.f32.mxu0 %v10058_v48  ;;  %1365 = vmatmul.mubr.f32.gmra.mrb[2].mxu1 %v7447_v20 }
 0x19f   :  { %5941 = vmatpush1.bf16.msra.mxu1 %v5940_v24  ;;  %1704 = vmatmul.mubr.f32.gmra.mrb[2].mxu0 %v7447_v20 }
 0x1a0   :  { %5965 = vmatpush1.bf16.msra.mxu0 %v7497_v26  ;;  %1370 = vmatprep.mubr.f32.mxu1 %v10058_v48 }
 0x1a1   :  { %1709 = vmatprep.mubr.f32.mxu0 %v10058_v48 }
 0x1a2   :  { %1372 = vmatmul.mubr.f32.gmra.mrb[4].mxu1 %v7481_v50 }
 0x1a3   :  { %1711 = vmatmul.mubr.f32.gmra.mrb[4].mxu0 %v7481_v50  ;;  %1377 = vmatprep.mubr.f32.mxu1 %v10058_v48 }
 0x1a4   :  { %1716 = vmatprep.mubr.f32.mxu0 %v10058_v48 }
 0x1a6   :  { %1379 = vmatmul.mubr.f32.gmra.mrb[6].mxu1 %v7495_v30 }
 0x1a7   :  { %1718 = vmatmul.mubr.f32.gmra.mrb[6].mxu0 %v7495_v30  ;;  %1465 = vmatprep.mubr.f32.mxu1 %v10058_v48 }
 0x1a8   :  { %1796 = vmatprep.mubr.f32.mxu0 %v10058_v48 }
 0x1aa   :  { %1468 = vmatmul.mubr.f32.vlgmr.msra.gmra.mrb[0].mxu1 %v7445_v32 }
 0x1ab   :  { %1798 = vmatmul.mubr.f32.vlgmr.msra.gmra.mrb[0].mxu0 %v7437_v61  ;;  %1473 = vmatprep.mubr.f32.mxu1 %v10058_v48 }
 0x1ac   :  { %1803 = vmatprep.mubr.f32.mxu0 %v10058_v48 }
 0x1ae   :  { %1476 = vmatmul.mubr.f32.gmra.mrb[2].mxu1 %v7467_v7 }
 0x1af   :  { %1805 = vmatmul.mubr.f32.gmra.mrb[2].mxu0 %v7447_v20  ;;  %1481 = vmatprep.mubr.f32.mxu1 %v10058_v48 }
 0x1b0   :  { %1810 = vmatprep.mubr.f32.mxu0 %v10058_v48 }
 0x1b2   :  { %1484 = vmatmul.mubr.f32.gmra.mrb[4].mxu1 %v7493_v56  ;;  %v7611_v26 = vpop.permute.xlu1 %1109 }
 0x1b3   :  { %1812 = vmatmul.mubr.f32.gmra.mrb[4].mxu0 %v7481_v50  ;;  %1489 = vmatprep.mubr.f32.mxu1 %v10058_v48  ;;  %10167 = vst [vmem:[#allocation21_spill] sm:$0xff] %v7611_v26 }
 0x1b4   :  { %1817 = vmatprep.mubr.f32.mxu0 %v10058_v48  ;;  %v7605_v44 = vpop.permute.xlu0 %1104 }
 0x1b5   :  { %10166 = vst [vmem:[#allocation20_spill] sm:$0xff] %v7605_v44 }
 0x1b6   :  { %1492 = vmatmul.mubr.f32.gmra.mrb[6].mxu1 %v7525_v34 }
 0x1b7   :  { %1819 = vmatmul.mubr.f32.gmra.mrb[6].mxu0 %v7495_v30  ;;  %2729 = vmatprep.mubr.f32.mxu1 %v10058_v48 }
 0x1b8   :  { %4251 = vmatprep.mubr.f32.mxu0 %v10058_v48 }
 0x27d   :  { %v1469_v4 = vpop.f32.mrb[0].mxu1 }
 0x27e   :  { %v6062_v23 = vadd.f32 %v1469_v4, %v7605_v44  ;;  %v1799_v31 = vpop.f32.mrb[0].mxu0  ;;  %v1471_v22 = vpop.f32.mrb[1].mxu1 }
 0x27f   :  { %v6064_v9 = vadd.f32 %v1471_v22, %v7605_v44  ;;  %v1801_v58 = vpop.f32.mrb[1].mxu0 }
 0x280   :  { %v7609_v42 = vadd.f32 %v6062_v23, %v1799_v31 }
 0x281   :  { %v7613_v28 = vadd.f32 %v6064_v9, %v1801_v58  ;;  %v1477_v25 = vpop.f32.mrb[2].mxu1 }
 0x282   :  { %v10061_v0 = vand.u32 2147483647, %v7609_v42  ;;  %v1828_v35 = vand.u32 2139095040, %v7609_v42  ;;  %v6066_v8 = vadd.f32 %v1477_v25, %v7611_v26  ;;  %v1806_v45 = vpop.f32.mrb[2].mxu0  ;;  %v1479_v12 = vpop.f32.mrb[3].mxu1 }
 0x283   :  { %v10060_v38 = vand.u32 2147483647, %v7613_v28  ;;  %v1932_v37 = vand.u32 2139095040, %v7613_v28  ;;  %v6068_v29 = vadd.f32 %v1479_v12, %v7611_v26  ;;  %v1808_v57 = vpop.f32.mrb[3].mxu0 }
 0x284   :  { %v1829_v1 = vshrl.u32 %v1828_v35, 23  ;;  %v7621_v19 = vadd.f32 %v6066_v8, %v1806_v45  ;;  %v1832_v13 = vand.u32 8388607, %v10061_v0 }
 0x285   :  { %v1933_v41 = vshrl.u32 %v1932_v37, 23  ;;  %v1936_v51 = vand.u32 8388607, %v10060_v38  ;;  %v7627_v21 = vadd.f32 %v6068_v29, %v1808_v57  ;;  %v7629_v47 = vpop.f32.mrb[4].mxu1 }
 0x286   :  { %v5822_v40 = vadd.s32 4294967169, %v1829_v1  ;;  %v7631_v14 = vpop.f32.mrb[4].mxu0  ;;  %v2036_v3 = vand.u32 2139095040, %v7621_v19  ;;  %v7634_v46 = vpop.f32.mrb[5].mxu1  ;;  %v1833_v11 = vor.u32 8388608, %v1832_v13 }
 0x287   :  { %v5826_v52 = vadd.s32 4294967169, %v1933_v41  ;;  %v1937_v43 = vor.u32 8388608, %v1936_v51  ;;  %v7636_v2 = vpop.f32.mrb[5].mxu0  ;;  %v10178_v32 = vand.u32 2147483647, %v7621_v19 }
 0x288   :  { %v1835_v63 = vadd.s32 1, %v5822_v40  ;;  %v2037_v59 = vshrl.u32 %v2036_v3, 23  ;;  %v7646_v35 = vshll.u32 %v1833_v11, 8 }
 0x289   :  { %v1939_v55 = vadd.s32 1, %v5826_v52  ;;  %v7638_v60 = vpop.f32.mrb[6].mxu1  ;;  %v7650_v45 = vshll.u32 %v1937_v43, 8 }
 0x28a   :  { %vm1836_vm2 = vcmp.gt.s32.totalorder %v1835_v63, 0  ;;  %v7640_v24 = vpop.f32.mrb[6].mxu0  ;;  %v5830_v23 = vadd.s32 4294967169, %v2037_v59  ;;  %v7642_v31 = vpop.f32.mrb[7].mxu1 }
 0x28b   :  { %v1837_v4 = vsel %vm1836_vm2, %v1835_v63, 0  ;;  %vm1940_vm14 = vcmp.gt.s32.totalorder %v1939_v55, 0  ;;  %v7644_v25 = vpop.f32.mrb[7].mxu0 }
 0x28c   :  { %v1838_v22 = vshrl.u32 %v1837_v4, 5  ;;  %v1839_v9 = vand.u32 31, %v1837_v4  ;;  %v1941_v58 = vsel %vm1940_vm14, %v1939_v55, 0  ;;  %v7654_v1 = vadd.s32 1, %v5830_v23 }
 0x28d   :  { %v7648_v8 = vshrl.u32 %v1941_v58, 5  ;;  %v1943_v57 = vand.u32 31, %v1941_v58  ;;  %v10168_v55 = vmov 1326507024  }
 0x28e   :  { %v1840_v37 = vsub.s32 32, %v1839_v9  ;;  %v1842_v29 = vshll.u32 %v10064_v62, %v1839_v9  ;;  %v1845_v13 = vshll.u32 %v10062_v49, %v1839_v9  ;;  %v1848_v41 = vshll.u32 %v10141_v16, %v1839_v9 }
 0x28f   :  { %v1851_v51 = vshll.u32 %v10124_v33, %v1839_v9  ;;  %v1854_v40 = vshll.u32 %v10128_v10, %v1839_v9  ;;  %vm1857_vm8 = vcmp.lt.s32.totalorder %v1838_v22, 1  ;;  %vm1858_vm5 = vcmp.lt.s32.totalorder %v1838_v22, 2 }
 0x290   :  { %v1843_v52 = vshrl.u32 %v10062_v49, %v1840_v37  ;;  %v1846_v3 = vshrl.u32 %v10141_v16, %v1840_v37  ;;  %v1849_v63 = vshrl.u32 %v10124_v33, %v1840_v37  ;;  %v1841_v11 = vshrl.u32 %v10064_v62, %v1840_v37 }
 0x291   :  { %v1852_v43 = vshrl.u32 %v10128_v10, %v1840_v37  ;;  %v1855_v59 = vshrl.u32 %v10168_v55, %v1840_v37  ;;  %v1944_v48 = vsub.s32 32, %v1943_v57  ;;  %vm1859_vm10 = vcmp.lt.s32.totalorder %v1838_v22, 3 }
 0x292   :  { %v1844_v4 = vor.u32 %v1843_v52, %v1842_v29  ;;  %v1847_v23 = vor.u32 %v1846_v3, %v1845_v13  ;;  %v1850_v58 = vor.u32 %v1849_v63, %v1848_v41  ;;  %vm1860_vm15 = vcmp.lt.s32.totalorder %v1838_v22, 4 }
 0x293   :  { %v1853_v38 = vor.u32 %v1852_v43, %v1851_v51  ;;  %v1856_v9 = vor.u32 %v1855_v59, %v1854_v40  ;;  %v10169_v37 = vmov 683565275   ;;  %v10170_v41 = vmov 2475754826  }
 0x294   :  { %v1861_v0 = vsel %vm1857_vm8, %v1841_v11, %v1844_v4  ;;  %v1862_v12 = vsel %vm1860_vm15, %v1850_v58, 2102212464  ;;  %v1865_v49 = vsel %vm1857_vm8, %v1844_v4, %v1847_v23  ;;  %v1869_v62 = vsel %vm1857_vm8, %v1847_v23, %v1850_v58 }
 0x295   :  { %v1863_v15 = vsel %vm1859_vm10, %v1847_v23, %v1862_v12  ;;  %v1866_v18 = vsel %vm1860_vm15, %v1853_v38, 920167782  ;;  %v1870_v26 = vsel %vm1860_vm15, %v1856_v9, 1326507024  ;;  %v1946_v44 = vshll.u32 %v10169_v37, %v1943_v57 }
 0x296   :  { %v1867_v29 = vsel %vm1859_vm10, %v1850_v58, %v1866_v18  ;;  %v1871_v13 = vsel %vm1859_vm10, %v1853_v38, %v1870_v26  ;;  %v1947_v52 = vshrl.u32 %v10170_v41, %v1944_v48  ;;  %v1949_v51 = vshll.u32 %v10170_v41, %v1943_v57 }
 0x297   :  { %v1864_v40 = vsel %vm1858_vm5, %v1861_v0, %v1863_v15  ;;  %v1868_v3 = vsel %vm1858_vm5, %v1865_v49, %v1867_v29  ;;  %v1872_v63 = vsel %vm1858_vm5, %v1869_v62, %v1871_v13  ;;  %v1950_v11 = vshrl.u32 %v10141_v16, %v1944_v48 }
 0x298   :  { %v7677_v12 = vmul.u32.u64.low %v7646_v35, %v1872_v63  ;;  %v7678_v43 = vmul.u32.u64.high %v7646_v35, %v1872_v63, %v7677_v12  ;;  %v7681_v59 = vmul.u32.u64.low %v7646_v35, %v1868_v3  ;;  %v7682_v18 = vmul.u32.u64.high %v7646_v35, %v1868_v3, %v7681_v59 }
 0x299   :  { %v1948_v26 = vor.u32 %v1947_v52, %v1946_v44  ;;  %v1951_v38 = vor.u32 %v1950_v11, %v1949_v51  ;;  %v1952_v4 = vshll.u32 %v10141_v16, %v1943_v57  ;;  %v1953_v15 = vshrl.u32 %v10124_v33, %v1944_v48 }
 0x29a   :  { %v1945_v49 = vshrl.u32 %v10169_v37, %v1944_v48  ;;  %v1955_v62 = vshll.u32 %v10124_v33, %v1943_v57  ;;  %v1956_v0 = vshrl.u32 %v10128_v10, %v1944_v48  ;;  %v1959_v22 = vshrl.u32 %v10168_v55, %v1944_v48 }
 0x29b   :  { %v1880_v23 = vmul.u32 %v7646_v35, %v1864_v40  ;;  %v1954_v58 = vor.u32 %v1953_v15, %v1952_v4  ;;  %v1958_v9 = vshll.u32 %v10128_v10, %v1943_v57  ;;  %vm1961_vm0 = vcmp.lt.s32.totalorder %v7648_v8, 1 }
 0x29c   :  { %vm1882_vm7 = vc.u32 %v7678_v43, %v7681_v59  ;;  %v1883_v44 = vadd.s32 1, %v7682_v18  ;;  %v1957_v29 = vor.u32 %v1956_v0, %v1955_v62  ;;  %vm1962_vm4 = vcmp.lt.s32.totalorder %v7648_v8, 2 }
 0x29d   :  { %v1960_v13 = vor.u32 %v1959_v22, %v1958_v9  ;;  %vm1963_vm6 = vcmp.lt.s32.totalorder %v7648_v8, 3  ;;  %vm1964_vm11 = vcmp.lt.s32.totalorder %v7648_v8, 4  ;;  %v1969_v48 = vsel %vm1961_vm0, %v1948_v26, %v1951_v38 }
 0x29e   :  { %v1884_v35 = vsel %vm1882_vm7, %v1883_v44, %v7682_v18  ;;  %v1966_v52 = vsel %vm1964_vm11, %v1954_v58, 2102212464  ;;  %v1970_v57 = vsel %vm1964_vm11, %v1957_v29, 920167782  ;;  %v1973_v51 = vsel %vm1961_vm0, %v1951_v38, %v1954_v58 }
 0x29f   :  { %v1885_v40 = vadd.s32 %v1884_v35, %v1880_v23  ;;  %v1965_v3 = vsel %vm1961_vm0, %v1945_v49, %v1948_v26  ;;  %v1971_v63 = vsel %vm1963_vm6, %v1954_v58, %v1970_v57  ;;  %v1974_v11 = vsel %vm1964_vm11, %v1960_v13, 1326507024 }
 0x2a0   :  { %v1967_v12 = vsel %vm1963_vm6, %v1951_v38, %v1966_v52  ;;  %v1972_v4 = vsel %vm1962_vm4, %v1969_v48, %v1971_v63  ;;  %v1975_v15 = vsel %vm1963_vm6, %v1957_v29, %v1974_v11  ;;  %vm2044_vm9 = vcmp.gt.s32.totalorder %v7654_v1, 0 }
 0x2a1   :  { %v1886_v62 = vadd.s32 536870912, %v1885_v40  ;;  %v1976_v0 = vsel %vm1962_vm4, %v1973_v51, %v1975_v15  ;;  %v7707_v18 = vmul.u32.u64.low %v7650_v45, %v1972_v4  ;;  %v7708_v22 = vmul.u32.u64.high %v7650_v45, %v1972_v4, %v7707_v18 }
 0x2a2   :  { %v7712_v26 = vmul.u32.u64.low %v7650_v45, %v1976_v0  ;;  %v7713_v49 = vmul.u32.u64.high %v7650_v45, %v1976_v0, %v7712_v26  ;;  %v2045_v38 = vsel %vm2044_vm9, %v7654_v1, 0  ;;  %v1968_v58 = vsel %vm1962_vm4, %v1965_v3, %v1967_v12 }
 0x2a3   :  { %v7716_v23 = vshrl.u32 %v1886_v62, 30  ;;  %v10171_v9 = vand.u32 2147483647, %v7621_v19  ;;  %v2047_v29 = vand.u32 31, %v2045_v38  ;;  %v1987_v48 = vadd.s32 1, %v7708_v22 }
 0x2a4   :  { %v2140_v52 = vand.u32 2139095040, %v7627_v21  ;;  %v1984_v57 = vmul.u32 %v7650_v45, %v1968_v58  ;;  %vm1986_vm12 = vc.u32 %v7713_v49, %v7707_v18  ;;  %vm1827_vm6 = vcmp.lt.s32.totalorder %v7609_v42, 0 }
 0x2a5   :  { %v2040_v44 = vand.u32 8388607, %v10171_v9  ;;  %v1888_v13 = vshll.u32 %v7716_v23, 30  ;;  %v2048_v35 = vsub.s32 32, %v2047_v29  ;;  %v1988_v8 = vsel %vm1986_vm12, %v1987_v48, %v7708_v22 }
 0x2a6   :  { %v1989_v3 = vadd.s32 %v1988_v8, %v1984_v57  ;;  %v2050_v63 = vshll.u32 %v10169_v37, %v2047_v29  ;;  %v2053_v15 = vshll.u32 %v10170_v41, %v2047_v29  ;;  %v2141_v62 = vshrl.u32 %v2140_v52, 23  ;;  %v7745_v52 = vpop.permute.xlu1 %1114 }
 0x2a7   :  { %v7728_v1 = vsub.s32 %v1885_v40, %v1888_v13  ;;  %v2041_v51 = vor.u32 8388608, %v2040_v44  ;;  %v2051_v11 = vshrl.u32 %v10170_v41, %v2048_v35  ;;  %v2054_v12 = vshrl.u32 %v10141_v16, %v2048_v35  ;;  %10172 = vst [vmem:[#allocation22_spill] sm:$0xff] %v7745_v52 }
 0x2a8   :  { %v2057_v45 = vshrl.u32 %v10124_v33, %v2048_v35  ;;  %v1990_v0 = vadd.s32 536870912, %v1989_v3  ;;  %v2046_v40 = vshrl.u32 %v2045_v38, 5  ;;  %v2056_v22 = vshll.u32 %v10141_v16, %v2047_v29 }
 0x2a9   :  { %v1891_v4 = vsub.s32 0, %v7728_v1  ;;  %v2052_v26 = vor.u32 %v2051_v11, %v2050_v63  ;;  %v2055_v9 = vor.u32 %v2054_v12, %v2053_v15  ;;  %v2059_v44 = vshll.u32 %v10124_v33, %v2047_v29 }
 0x2aa   :  { %v2060_v13 = vshrl.u32 %v10128_v10, %v2048_v35  ;;  %v7741_v48 = vshrl.u32 %v1990_v0, 30  ;;  %v2058_v57 = vor.u32 %v2057_v45, %v2056_v22  ;;  %v2062_v8 = vshll.u32 %v10128_v10, %v2047_v29 }
 0x2ab   :  { %v5823_v58 = vmin.u32 %v1891_v4, %v7728_v1  ;;  %v2063_v6 = vshrl.u32 %v10168_v55, %v2048_v35  ;;  %v2081_v11 = vshll.u32 %v2041_v51, 8  ;;  %v5834_v36 = vadd.s32 4294967169, %v2141_v62  ;;  %v7755_v62 = vpop.permute.xlu0 %1119 }
 0x2ac   :  { %v2061_v63 = vor.u32 %v2060_v13, %v2059_v44  ;;  %v1992_v4 = vshll.u32 %v7741_v48, 30  ;;  %vm2065_vm1 = vcmp.lt.s32.totalorder %v2046_v40, 1  ;;  %v6070_v15 = vadd.f32 %v7629_v47, %v7745_v52  ;;  %10173 = vst [vmem:[#allocation23_spill] sm:$0xff] %v7755_v62 }
 0x2ad   :  { %v1893_v38 = vclz %v5823_v58  ;;  %v2064_v12 = vor.u32 %v2063_v6, %v2062_v8  ;;  %vm2068_vm13 = vcmp.lt.s32.totalorder %v2046_v40, 4  ;;  %v2073_v45 = vsel %vm2065_vm1, %v2052_v26, %v2055_v9 }
 0x2ae   :  { %v6072_v29 = vadd.f32 %v7634_v46, %v7745_v52  ;;  %v7753_v22 = vsub.s32 %v1989_v3, %v1992_v4  ;;  %vm2067_vm3 = vcmp.lt.s32.totalorder %v2046_v40, 3  ;;  %v2070_v58 = vsel %vm2068_vm13, %v2058_v57, 2102212464 }
 0x2af   :  { %v5824_v0 = vadd.s32 4294967294, %v1893_v38  ;;  %v2074_v51 = vsel %vm2068_vm13, %v2061_v63, 920167782  ;;  %v2049_v6 = vshrl.u32 %v10169_v37, %v2048_v35  ;;  %vm2066_vm2 = vcmp.lt.s32.totalorder %v2046_v40, 2 }
 0x2b0   :  { %v2075_v44 = vsel %vm2067_vm3, %v2058_v57, %v2074_v51  ;;  %v2077_v47 = vsel %vm2065_vm1, %v2055_v9, %v2058_v57  ;;  %v1995_v13 = vsub.s32 0, %v7753_v22  ;;  %v2078_v38 = vsel %vm2068_vm13, %v2064_v12, 1326507024 }
 0x2b1   :  { %v2076_v8 = vsel %vm2066_vm2, %v2073_v45, %v2075_v44  ;;  %v6074_v46 = vadd.f32 %v7638_v60, %v7755_v62  ;;  %vm5825_vm14 = vcmp.lt.s32.totalorder %v5824_v0, 0  ;;  %v2069_v3 = vsel %vm2065_vm1, %v2049_v6, %v2052_v26 }
 0x2b2   :  { %v2071_v4 = vsel %vm2067_vm3, %v2055_v9, %v2070_v58  ;;  %v2079_v52 = vsel %vm2067_vm3, %v2061_v63, %v2078_v38  ;;  %v5827_v53 = vmin.u32 %v1995_v13, %v7753_v22  ;;  %v10084_v60 = vand.u32 2147483647, %v7627_v21 }
 0x2b3   :  { %v2080_v35 = vsel %vm2066_vm2, %v2077_v47, %v2079_v52  ;;  %v7766_v51 = vmul.u32.u64.low %v2081_v11, %v2076_v8  ;;  %v7767_v54 = vmul.u32.u64.high %v2081_v11, %v2076_v8, %v7766_v51  ;;  %v2072_v45 = vsel %vm2066_vm2, %v2069_v3, %v2071_v4 }
 0x2b4   :  { %v7770_v57 = vmul.u32.u64.low %v2081_v11, %v2080_v35  ;;  %v7771_v34 = vmul.u32.u64.high %v2081_v11, %v2080_v35, %v7770_v57  ;;  %v1997_v12 = vclz %v5827_v53  ;;  %v2147_v44 = vadd.s32 1, %v5834_v36 }
 0x2b5   :  { %v1896_v26 = vsel %vm5825_vm14, 0, %v5824_v0  ;;  %v7776_v9 = vadd.f32 %v6070_v15, %v7631_v14  ;;  %v7779_v63 = vadd.f32 %v6072_v29, %v7636_v2  ;;  %v2091_v58 = vadd.s32 1, %v7767_v54 }
 0x2b6   :  { %v5828_v52 = vadd.s32 4294967294, %v1997_v12  ;;  %vm2148_vm8 = vcmp.gt.s32.totalorder %v2147_v44, 0  ;;  %v7783_v6 = vadd.f32 %v6074_v46, %v7640_v24  ;;  %v2088_v53 = vmul.u32 %v2081_v11, %v2072_v45 }
 0x2b7   :  { %vm2090_vm5 = vc.u32 %v7771_v34, %v7766_v51  ;;  %v2144_v14 = vand.u32 8388607, %v10084_v60  ;;  %v2149_v40 = vsel %vm2148_vm8, %v2147_v44, 0  ;;  %v1901_v2 = vsub.s32 4294967266, %v1896_v26 }
 0x2b8   :  { %vm5829_vm10 = vcmp.lt.s32.totalorder %v5828_v52, 0  ;;  %v2092_v36 = vsel %vm2090_vm5, %v2091_v58, %v7767_v54  ;;  %v2151_v29 = vand.u32 31, %v2149_v40  ;;  %v1897_v13 = vsub.s32 32, %v1896_v26 }
 0x2b9   :  { %v2000_v15 = vsel %vm5829_vm10, 0, %v5828_v52  ;;  %v2093_v0 = vadd.s32 %v2092_v36, %v2088_v53  ;;  %v2145_v24 = vor.u32 8388608, %v2144_v14  ;;  %v1902_v11 = vadd.s32 127, %v1901_v2 }
 0x2ba   :  { %v2005_v8 = vsub.s32 4294967266, %v2000_v15  ;;  %v2152_v38 = vsub.s32 32, %v2151_v29  ;;  %v1881_v3 = vadd.s32 %v7681_v59, %v7678_v43  ;;  %v1911_v54 = vsub.s32 4, %v7716_v23 }
 0x2bb   :  { %v2094_v47 = vadd.s32 536870912, %v2093_v0  ;;  %v1898_v35 = vshll.u32 %v7728_v1, %v1896_v26  ;;  %v1985_v57 = vadd.s32 %v7707_v18, %v7713_v49  ;;  %v2154_v58 = vshll.u32 %v10169_v37, %v2151_v29 }
 0x2bc   :  { %v2155_v4 = vshrl.u32 %v10170_v41, %v2152_v38  ;;  %v2158_v45 = vshrl.u32 %v10141_v16, %v2152_v38  ;;  %v1899_v44 = vshrl.u32 %v1881_v3, %v1897_v13  ;;  %v2006_v52 = vadd.s32 127, %v2005_v8 }
 0x2bd   :  { %v7790_v46 = vshrl.u32 %v2094_v47, 30  ;;  %v7802_v53 = vshll.u32 %v2145_v24, 8  ;;  %v1903_v43 = vshll.u32 %v1902_v11, 23  ;;  %v2150_v36 = vshrl.u32 %v2149_v40, 5 }
 0x2be   :  { %v2157_v14 = vshll.u32 %v10170_v41, %v2151_v29  ;;  %v2001_v1 = vsub.s32 32, %v2000_v15  ;;  %v2156_v26 = vor.u32 %v2155_v4, %v2154_v58  ;;  %v2160_v18 = vshll.u32 %v10141_v16, %v2151_v29 }
 0x2bf   :  { %v2096_v12 = vshll.u32 %v7790_v46, 30  ;;  %v2161_v49 = vshrl.u32 %v10124_v33, %v2152_v38  ;;  %v2163_v13 = vshll.u32 %v10124_v33, %v2151_v29  ;;  %v2164_v8 = vshrl.u32 %v10128_v10, %v2152_v38 }
 0x2c0   :  { %v2159_v47 = vor.u32 %v2158_v45, %v2157_v14  ;;  %v2007_v24 = vshll.u32 %v2006_v52, 23  ;;  %v2167_v40 = vshrl.u32 %v10168_v55, %v2152_v38  ;;  %v1900_v3 = vor.u32 %v1899_v44, %v1898_v35 }
 0x2c1   :  { %v7804_v59 = vsub.s32 %v2093_v0, %v2096_v12  ;;  %v2162_v11 = vor.u32 %v2161_v49, %v2160_v18  ;;  %v2166_v0 = vshll.u32 %v10128_v10, %v2151_v29  ;;  %v1904_v12 = vor.u32 4788187, %v1903_v43 }
 0x2c2   :  { %v2165_v58 = vor.u32 %v2164_v8, %v2163_v13  ;;  %v2003_v60 = vshrl.u32 %v1985_v57, %v2001_v1  ;;  %vm2169_vm15 = vcmp.lt.s32.totalorder %v2150_v36, 1  ;;  %vm2172_vm0 = vcmp.lt.s32.totalorder %v2150_v36, 4 }
 0x2c3   :  { %v2099_v2 = vsub.s32 0, %v7804_v59  ;;  %v2168_v56 = vor.u32 %v2167_v40, %v2166_v0  ;;  %vm2171_vm7 = vcmp.lt.s32.totalorder %v2150_v36, 3  ;;  %v2177_v14 = vsel %vm2169_vm15, %v2156_v26, %v2159_v47 }
 0x2c4   :  { %v2178_v7 = vsel %vm2172_vm0, %v2165_v58, 920167782  ;;  %v2002_v52 = vshll.u32 %v7753_v22, %v2000_v15  ;;  %v2008_v18 = vor.u32 4788187, %v2007_v24  ;;  %vm2170_vm4 = vcmp.lt.s32.totalorder %v2150_v36, 2 }
 0x2c5   :  { %v5831_v4 = vmin.u32 %v2099_v2, %v7804_v59  ;;  %v2179_v29 = vsel %vm2171_vm7, %v2162_v11, %v2178_v7  ;;  %v2174_v44 = vsel %vm2172_vm0, %v2162_v11, 2102212464  ;;  %v2181_v57 = vsel %vm2169_vm15, %v2159_v47, %v2162_v11 }
 0x2c6   :  { %v2180_v43 = vsel %vm2170_vm4, %v2177_v14, %v2179_v29  ;;  %v2153_v1 = vshrl.u32 %v10169_v37, %v2152_v38  ;;  %v2182_v49 = vsel %vm2172_vm0, %v2168_v56, 1326507024  ;;  %v2004_v22 = vor.u32 %v2003_v60, %v2002_v52 }
 0x2c7   :  { %v2101_v45 = vclz %v5831_v4  ;;  %v7822_v2 = vmul.u32.u64.low %v7802_v53, %v2180_v43  ;;  %v7823_v13 = vmul.u32.u64.high %v7802_v53, %v2180_v43, %v7822_v2  ;;  %v2183_v7 = vsel %vm2171_vm7, %v2165_v58, %v2182_v49 }
 0x2c8   :  { %v1905_v15 = vand.u32 2147483647, %v1904_v12  ;;  %v2173_v8 = vsel %vm2169_vm15, %v2153_v1, %v2156_v26  ;;  %v2175_v24 = vsel %vm2171_vm7, %v2159_v47, %v2174_v44  ;;  %v2184_v11 = vsel %vm2170_vm4, %v2181_v57, %v2183_v7 }
 0x2c9   :  { %v5832_v35 = vadd.s32 4294967294, %v2101_v45  ;;  %v10174_v56 = vand.u32 2147483647, %v7609_v42  ;;  %v1912_v60 = vsel %vm1827_vm6, %v1911_v54, %v7716_v23  ;;  %v2009_v0 = vand.u32 2147483647, %v2008_v18 }
 0x2ca   :  { %v2244_v40 = vand.u32 2139095040, %v7776_v9  ;;  %v1907_v12 = vcvt.s32.f32 %v1900_v3  ;;  %v7842_v26 = vmul.u32.u64.low %v7802_v53, %v2184_v11  ;;  %v7843_v47 = vmul.u32.u64.high %v7802_v53, %v2184_v11, %v7842_v26 }
 0x2cb   :  { %vm5833_vm11 = vcmp.lt.s32.totalorder %v5832_v35, 0  ;;  %vm7833_vm9 = vcmp.le.f32.partialorder %v10174_v56, 0.7853982  ;;  %v2011_v58 = vcvt.s32.f32 %v2004_v22  ;;  %v2176_v45 = vsel %vm2170_vm4, %v2173_v8, %v2175_v24 }
 0x2cc   :  { %v2104_v4 = vsel %vm5833_vm11, 0, %v5832_v35  ;;  %v2195_v14 = vadd.s32 1, %v7823_v13  ;;  %v2245_v52 = vshrl.u32 %v2244_v40, 23  ;;  %v1908_v29 = vmul.f32 %v1907_v12, %v1905_v15 }
 0x2cd   :  { %v1914_v44 = vsel %vm7833_vm9, 0, %v1912_v60  ;;  %v10089_v23 = vand.u32 2147483647, %v7776_v9  ;;  %v2348_v54 = vand.u32 2139095040, %v7779_v63  ;;  %vm1931_vm12 = vcmp.lt.s32.totalorder %v7613_v28, 0 }
 0x2ce   :  { %v2012_v3 = vmul.f32 %v2011_v58, %v2009_v0  ;;  %v2105_v18 = vsub.s32 32, %v2104_v4  ;;  %v5838_v35 = vadd.s32 4294967169, %v2245_v52  ;;  %v2109_v43 = vsub.s32 4294967266, %v2104_v4 }
 0x2cf   :  { %v2192_v36 = vmul.u32 %v7802_v53, %v2176_v45  ;;  %vm2194_vm1 = vc.u32 %v7843_v47, %v7822_v2  ;;  %v2349_v57 = vshrl.u32 %v2348_v54, 23  ;;  %v1918_v1 = vadd.s32 3, %v1914_v44 }
 0x2d0   :  { %v2089_v49 = vadd.s32 %v7766_v51, %v7771_v34  ;;  %v2196_v22 = vsel %vm2194_vm1, %v2195_v14, %v7823_v13  ;;  %v2251_v7 = vadd.s32 1, %v5838_v35  ;;  %v1909_v15 = vxor.u32 2147483648, %v1908_v29 }
 0x2d1   :  { %v2119_v8 = vsub.s32 4, %v7790_v46  ;;  %v2197_v24 = vadd.s32 %v2196_v22, %v2192_v36  ;;  %v2248_v11 = vand.u32 8388607, %v10089_v23  ;;  %v2013_v56 = vxor.u32 2147483648, %v2012_v3 }
 0x2d2   :  { %vm2035_vm13 = vcmp.lt.s32.totalorder %v7621_v19, 0  ;;  %v2107_v53 = vshrl.u32 %v2089_v49, %v2105_v18  ;;  %vm2252_vm3 = vcmp.gt.s32.totalorder %v2251_v7, 0  ;;  %v7862_v60 = vadd.s32 127, %v2109_v43 }
 0x2d3   :  { %v2198_v0 = vadd.s32 536870912, %v2197_v24  ;;  %v2253_v40 = vsel %vm2252_vm3, %v2251_v7, 0  ;;  %v5842_v34 = vadd.s32 4294967169, %v2349_v57  ;;  %v7864_v51 = vand.u32 3, %v1918_v1 }
 0x2d4   :  { %v2106_v12 = vshll.u32 %v7804_v59, %v2104_v4  ;;  %v2255_v26 = vand.u32 31, %v2253_v40  ;;  %v7870_v58 = vsel %vm1827_vm6, %v1909_v15, %v1908_v29  ;;  %v7875_v45 = vsel %vm2035_vm13, %v2119_v8, %v7790_v46 }
 0x2d5   :  { %v7877_v14 = vshrl.u32 %v2198_v0, 30  ;;  %v2249_v52 = vor.u32 8388608, %v2248_v11  ;;  %v7881_v44 = vsel %vm1931_vm12, %v2013_v56, %v2012_v3  ;;  %v2111_v29 = vshll.u32 %v7862_v60, 23 }
 0x2d6   :  { %v7883_v54 = vor.u32 %v2107_v53, %v2106_v12  ;;  %v2256_v59 = vsub.s32 32, %v2255_v26  ;;  %v2254_v35 = vshrl.u32 %v2253_v40, 5  ;;  %v2355_v43 = vadd.s32 1, %v5842_v34 }
 0x2d7   :  { %v2200_v18 = vshll.u32 %v7877_v14, 30  ;;  %v2258_v46 = vshll.u32 %v10169_v37, %v2255_v26  ;;  %v2261_v57 = vshll.u32 %v10170_v41, %v2255_v26  ;;  %v2264_v49 = vshll.u32 %v10141_v16, %v2255_v26 }
 0x2d8   :  { %v2259_v36 = vshrl.u32 %v10170_v41, %v2256_v59  ;;  %v2262_v3 = vshrl.u32 %v10141_v16, %v2256_v59  ;;  %v2265_v22 = vshrl.u32 %v10124_v33, %v2256_v59  ;;  %v7896_v7 = vshll.u32 %v2249_v52, 8 }
 0x2d9   :  { %v7892_v1 = vsub.s32 %v2197_v24, %v2200_v18  ;;  %v2267_v11 = vshll.u32 %v10124_v33, %v2255_v26  ;;  %v2268_v56 = vshrl.u32 %v10128_v10, %v2256_v59  ;;  %v2257_v60 = vshrl.u32 %v10169_v37, %v2256_v59 }
 0x2da   :  { %v2260_v15 = vor.u32 %v2259_v36, %v2258_v46  ;;  %v2263_v8 = vor.u32 %v2262_v3, %v2261_v57  ;;  %v2266_v0 = vor.u32 %v2265_v22, %v2264_v49  ;;  %vm2356_vm2 = vcmp.gt.s32.totalorder %v2355_v43, 0 }
 0x2db   :  { %v2203_v53 = vsub.s32 0, %v7892_v1  ;;  %v2269_v24 = vor.u32 %v2268_v56, %v2267_v11  ;;  %v2270_v40 = vshll.u32 %v10128_v10, %v2255_v26  ;;  %v2271_v34 = vshrl.u32 %v10168_v55, %v2256_v59 }
 0x2dc   :  { %vm2273_vm14 = vcmp.lt.s32.totalorder %v2254_v35, 1  ;;  %vm2274_vm8 = vcmp.lt.s32.totalorder %v2254_v35, 2  ;;  %vm2275_vm5 = vcmp.lt.s32.totalorder %v2254_v35, 3  ;;  %vm2276_vm10 = vcmp.lt.s32.totalorder %v2254_v35, 4 }
 0x2dd   :  { %v5835_v12 = vmin.u32 %v2203_v53, %v7892_v1  ;;  %v2272_v52 = vor.u32 %v2271_v34, %v2270_v40  ;;  %v2278_v18 = vsel %vm2276_vm10, %v2266_v0, 2102212464  ;;  %v2281_v46 = vsel %vm2273_vm14, %v2260_v15, %v2263_v8 }
 0x2de   :  { %v2282_v36 = vsel %vm2276_vm10, %v2269_v24, 920167782  ;;  %v2277_v3 = vsel %vm2273_vm14, %v2257_v60, %v2260_v15  ;;  %v2285_v49 = vsel %vm2273_vm14, %v2263_v8, %v2266_v0  ;;  %v2279_v22 = vsel %vm2275_vm5, %v2263_v8, %v2278_v18 }
 0x2df   :  { %v2205_v57 = vclz %v5835_v12  ;;  %v2283_v23 = vsel %vm2275_vm5, %v2266_v0, %v2282_v36  ;;  %v2286_v26 = vsel %vm2276_vm10, %v2272_v52, 1326507024  ;;  %v2357_v59 = vsel %vm2356_vm2, %v2355_v43, 0 }
 0x2e0   :  { %v2284_v11 = vsel %vm2274_vm8, %v2281_v46, %v2283_v23  ;;  %v2287_v13 = vsel %vm2275_vm5, %v2269_v24, %v2286_v26  ;;  %v10177_v34 = vand.u32 2147483647, %v7779_v63  ;;  %v2359_v60 = vand.u32 31, %v2357_v59 }
 0x2e1   :  { %v5836_v56 = vadd.s32 4294967294, %v2205_v57  ;;  %v7908_v53 = vmul.u32.u64.low %v7896_v7, %v2284_v11  ;;  %v7909_v4 = vmul.u32.u64.high %v7896_v7, %v2284_v11, %v7908_v53  ;;  %v2288_v40 = vsel %vm2274_vm8, %v2285_v49, %v2287_v13 }
 0x2e2   :  { %v2352_v15 = vand.u32 8388607, %v10177_v34  ;;  %v2452_v8 = vand.u32 2139095040, %v7783_v6  ;;  %v7917_v23 = vmul.u32.u64.low %v7896_v7, %v2288_v40  ;;  %v7918_v0 = vmul.u32.u64.high %v7896_v7, %v2288_v40, %v7917_v23 }
 0x2e3   :  { %vm5837_vm15 = vcmp.lt.s32.totalorder %v5836_v56, 0  ;;  %v2193_v24 = vadd.s32 %v7822_v2, %v7843_v47  ;;  %v2280_v13 = vsel %vm2274_vm8, %v2277_v3, %v2279_v22  ;;  %v2360_v52 = vsub.s32 32, %v2359_v60 }
 0x2e4   :  { %v7923_v12 = vsel %vm5837_vm15, 0, %v5836_v56  ;;  %v2112_v18 = vor.u32 4788187, %v2111_v29  ;;  %v2115_v46 = vcvt.s32.f32 %v7883_v54  ;;  %v2299_v57 = vadd.s32 1, %v7909_v4 }
 0x2e5   :  { %v2213_v36 = vsub.s32 4294967266, %v7923_v12  ;;  %v2353_v49 = vor.u32 8388608, %v2352_v15  ;;  %v2363_v11 = vshrl.u32 %v10170_v41, %v2360_v52  ;;  %v2366_v26 = vshrl.u32 %v10141_v16, %v2360_v52 }
 0x2e6   :  { %v2453_v40 = vshrl.u32 %v2452_v8, 23  ;;  %v2296_v2 = vmul.u32 %v7896_v7, %v2280_v13  ;;  %vm2298_vm0 = vc.u32 %v7918_v0, %v7908_v53  ;;  %v2362_v47 = vshll.u32 %v10169_v37, %v2359_v60 }
 0x2e7   :  { %v2365_v29 = vshll.u32 %v10170_v41, %v2359_v60  ;;  %v2300_v54 = vsel %vm2298_vm0, %v2299_v57, %v7909_v4  ;;  %v2358_v35 = vshrl.u32 %v2357_v59, 5  ;;  %v2368_v3 = vshll.u32 %v10141_v16, %v2359_v60 }
 0x2e8   :  { %v2369_v22 = vshrl.u32 %v10124_v33, %v2360_v52  ;;  %v2214_v56 = vadd.s32 127, %v2213_v36  ;;  %v2301_v34 = vadd.s32 %v2300_v54, %v2296_v2  ;;  %v2364_v15 = vor.u32 %v2363_v11, %v2362_v47 }
 0x2e9   :  { %v2367_v8 = vor.u32 %v2366_v26, %v2365_v29  ;;  %v2371_v7 = vshll.u32 %v10124_v33, %v2359_v60  ;;  %v2372_v23 = vshrl.u32 %v10128_v10, %v2360_v52  ;;  %v2374_v13 = vshll.u32 %v10128_v10, %v2359_v60 }
 0x2ea   :  { %v2375_v43 = vshrl.u32 %v10168_v55, %v2360_v52  ;;  %vm7945_vm7 = vcmp.le.f32.partialorder %v10178_v32, 0.7853982  ;;  %v2113_v59 = vand.u32 2147483647, %v2112_v18  ;;  %v2209_v36 = vsub.s32 32, %v7923_v12 }
 0x2eb   :  { %v2302_v57 = vadd.s32 536870912, %v2301_v34  ;;  %v2370_v11 = vor.u32 %v2369_v22, %v2368_v3  ;;  %v2373_v26 = vor.u32 %v2372_v23, %v2371_v7  ;;  %v2393_v47 = vshll.u32 %v2353_v49, 8 }
 0x2ec   :  { %v2376_v2 = vor.u32 %v2375_v43, %v2374_v13  ;;  %v5846_v29 = vadd.s32 4294967169, %v2453_v40  ;;  %v10181_v54 = vand.u32 2147483647, %v7613_v28  ;;  %v2215_v30 = vshll.u32 %v2214_v56, 23 }
 0x2ed   :  { %v7956_v32 = vshrl.u32 %v2302_v57, 30  ;;  %vm2377_vm6 = vcmp.lt.s32.totalorder %v2358_v35, 1  ;;  %vm2380_vm11 = vcmp.lt.s32.totalorder %v2358_v35, 4  ;;  %v2210_v18 = vshll.u32 %v7892_v1, %v7923_v12 }
 0x2ee   :  { %vm7952_vm4 = vcmp.le.f32.partialorder %v10181_v54, 0.7853982  ;;  %v2361_v3 = vshrl.u32 %v10169_v37, %v2360_v52  ;;  %v2385_v43 = vsel %vm2377_vm6, %v2364_v15, %v2367_v8  ;;  %v2386_v49 = vsel %vm2380_vm11, %v2373_v26, 920167782 }
 0x2ef   :  { %v2211_v40 = vshrl.u32 %v2193_v24, %v2209_v36  ;;  %v2304_v22 = vshll.u32 %v7956_v32, 30  ;;  %vm2379_vm1 = vcmp.lt.s32.totalorder %v2358_v35, 3  ;;  %v2382_v7 = vsel %vm2380_vm11, %v2370_v11, 2102212464 }
 0x2f0   :  { %vm2378_vm3 = vcmp.lt.s32.totalorder %v2358_v35, 2  ;;  %v2387_v23 = vsel %vm2379_vm1, %v2370_v11, %v2386_v49  ;;  %v2389_v56 = vsel %vm2377_vm6, %v2367_v8, %v2370_v11  ;;  %v2390_v13 = vsel %vm2380_vm11, %v2376_v2, 1326507024 }
 0x2f1   :  { %v2216_v57 = vor.u32 4788187, %v2215_v30  ;;  %v7964_v54 = vsub.s32 %v2301_v34, %v2304_v22  ;;  %v2381_v1 = vsel %vm2377_vm6, %v2361_v3, %v2364_v15  ;;  %v2388_v12 = vsel %vm2378_vm3, %v2385_v43, %v2387_v23 }
 0x2f2   :  { %v2383_v52 = vsel %vm2379_vm1, %v2367_v8, %v2382_v7  ;;  %v2391_v50 = vsel %vm2379_vm1, %v2373_v26, %v2390_v13  ;;  %v7968_v20 = vmul.u32.u64.low %v2393_v47, %v2388_v12  ;;  %v7969_v24 = vmul.u32.u64.high %v2393_v47, %v2388_v12, %v7968_v20 }
 0x2f3   :  { %v2116_v36 = vmul.f32 %v2115_v46, %v2113_v59  ;;  %v2212_v61 = vor.u32 %v2211_v40, %v2210_v18  ;;  %v2307_v49 = vsub.s32 0, %v7964_v54  ;;  %v2392_v11 = vsel %vm2378_vm3, %v2389_v56, %v2391_v50 }
 0x2f4   :  { %v7978_v30 = vsel %vm7833_vm9, %v7609_v42, %v7870_v58  ;;  %v2122_v34 = vsel %vm7945_vm7, 0, %v7875_v45  ;;  %v7983_v15 = vmul.u32.u64.low %v2393_v47, %v2392_v11  ;;  %v7984_v8 = vmul.u32.u64.high %v2393_v47, %v2392_v11, %v7983_v15 }
 0x2f5   :  { %v2217_v26 = vand.u32 2147483647, %v2216_v57  ;;  %v5839_v46 = vmin.u32 %v2307_v49, %v7964_v54  ;;  %v2384_v59 = vsel %vm2378_vm3, %v2381_v1, %v2383_v52  ;;  %v2459_v2 = vadd.s32 1, %v5846_v29 }
 0x2f6   :  { %v7992_v50 = vsel %vm7952_vm4, %v7613_v28, %v7881_v44  ;;  %v2403_v38 = vadd.s32 1, %v7969_v24  ;;  %v10184_v58 = vand.u32 2147483647, %v7783_v6  ;;  %v6076_v18 = vadd.f32 %v7642_v31, %v7755_v62 }
 0x2f7   :  { %v2117_v3 = vxor.u32 2147483648, %v2116_v36  ;;  %v2219_v43 = vcvt.s32.f32 %v2212_v61  ;;  %v2309_v40 = vclz %v5839_v46  ;;  %vm2460_vm9 = vcmp.gt.s32.totalorder %v2459_v2, 0 }
 0x2f8   :  { %v2456_v45 = vand.u32 8388607, %v10184_v58  ;;  %v2400_v35 = vmul.u32 %v2393_v47, %v2384_v59  ;;  %vm2402_vm2 = vc.u32 %v7984_v8, %v7968_v20  ;;  %v2461_v29 = vsel %vm2460_vm9, %v2459_v2, 0 }
 0x2f9   :  { %v8002_v44 = vadd.f32 %v6076_v18, %v7644_v25  ;;  %v8004_v22 = vmul.f32 %v2219_v43, %v2217_v26  ;;  %v5840_v7 = vadd.s32 4294967294, %v2309_v40  ;;  %v2404_v23 = vsel %vm2402_vm2, %v2403_v38, %v7969_v24 }
 0x2fa   :  { %v2463_v56 = vand.u32 31, %v2461_v29  ;;  %6392 = vcosq.f32 %v7978_v30  ;;  %v10185_v61 = vsub.s32 4, %v7741_v48  ;;  %v8015_v47 = vadd.s32 3, %v2122_v34 }
 0x2fb   :  { %v2405_v13 = vadd.s32 %v2404_v23, %v2400_v35  ;;  %6394 = vsinq.f32 %v7992_v50  ;;  %v8020_v25 = vsel %vm2035_vm13, %v2117_v3, %v2116_v36  ;;  %vm5841_vm14 = vcmp.lt.s32.totalorder %v5840_v7, 0 }
 0x2fc   :  { %v8013_v31 = vsel %vm1931_vm12, %v10185_v61, %v7741_v48  ;;  %v2464_v57 = vsub.s32 32, %v2463_v56  ;;  %v2297_v1 = vadd.s32 %v7908_v53, %v7918_v0  ;;  %v2312_v12 = vsel %vm5841_vm14, 0, %v5840_v7 }
 0x2fd   :  { %v2406_v52 = vadd.s32 536870912, %v2405_v13  ;;  %v2457_v24 = vor.u32 8388608, %v2456_v45  ;;  %v2317_v49 = vsub.s32 4294967266, %v2312_v12  ;;  %v2466_v11 = vshll.u32 %v10169_v37, %v2463_v56 }
 0x2fe   :  { %v2469_v34 = vshll.u32 %v10170_v41, %v2463_v56  ;;  %v2467_v36 = vshrl.u32 %v10170_v41, %v2464_v57  ;;  %v2470_v26 = vshrl.u32 %v10141_v16, %v2464_v57  ;;  %v2473_v46 = vshrl.u32 %v10124_v33, %v2464_v57 }
 0x2ff   :  { %v8027_v15 = vshrl.u32 %v2406_v52, 30  ;;  %v2313_v59 = vsub.s32 32, %v2312_v12  ;;  %v2318_v53 = vadd.s32 127, %v2317_v49  ;;  %v2475_v0 = vshll.u32 %v10124_v33, %v2463_v56 }
 0x300   :  { %v2476_v2 = vshrl.u32 %v10128_v10, %v2464_v57  ;;  %v2462_v58 = vshrl.u32 %v2461_v29, 5  ;;  %v2472_v45 = vshll.u32 %v10141_v16, %v2463_v56  ;;  %v8036_v18 = vshll.u32 %v2457_v24, 8 }
 0x301   :  { %v2408_v38 = vshll.u32 %v8027_v15, 30  ;;  %v2468_v3 = vor.u32 %v2467_v36, %v2466_v11  ;;  %v2471_v43 = vor.u32 %v2470_v26, %v2469_v34  ;;  %v2478_v61 = vshll.u32 %v10128_v10, %v2463_v56 }
 0x302   :  { %v2477_v40 = vor.u32 %v2476_v2, %v2475_v0  ;;  %v2474_v23 = vor.u32 %v2473_v46, %v2472_v45  ;;  %v2479_v52 = vshrl.u32 %v10168_v55, %v2464_v57  ;;  %v2314_v49 = vshll.u32 %v7964_v54, %v2312_v12 }
 0x303   :  { %v8039_v7 = vsub.s32 %v2405_v13, %v2408_v38  ;;  %v2315_v48 = vshrl.u32 %v2297_v1, %v2313_v59  ;;  %v2319_v29 = vshll.u32 %v2318_v53, 23  ;;  %v2556_v62 = vand.u32 2139095040, %v8002_v44 }
 0x304   :  { %v8045_v24 = vpop.eup %6392  ;;  %vm2139_vm12 = vcmp.lt.s32.totalorder %v7627_v21, 0  ;;  %v2480_v34 = vor.u32 %v2479_v52, %v2478_v61  ;;  %vm2481_vm13 = vcmp.lt.s32.totalorder %v2462_v58, 1  ;;  %vm2484_vm8 = vcmp.lt.s32.totalorder %v2462_v58, 4 }
 0x305   :  { %v2411_v11 = vsub.s32 0, %v8039_v7  ;;  %v8049_v13 = vpop.eup %6394  ;;  %vm2482_vm5 = vcmp.lt.s32.totalorder %v2462_v58, 2  ;;  %vm2483_vm10 = vcmp.lt.s32.totalorder %v2462_v58, 3  ;;  %v2489_v56 = vsel %vm2481_vm13, %v2468_v3, %v2471_v43 }
 0x306   :  { %v2490_v54 = vsel %vm2484_vm8, %v2477_v40, 920167782  ;;  %v2486_v12 = vsel %vm2484_vm8, %v2474_v23, 2102212464  ;;  %v2493_v26 = vsel %vm2481_vm13, %v2471_v43, %v2474_v23  ;;  %v10186_v46 = vand.u32 2147483647, %v7627_v21 }
 0x307   :  { %v5843_v1 = vmin.u32 %v2411_v11, %v8039_v7  ;;  %v2491_v36 = vsel %vm2483_vm10, %v2474_v23, %v2490_v54  ;;  %v2320_v53 = vor.u32 4788187, %v2319_v29  ;;  %v2465_v0 = vshrl.u32 %v10169_v37, %v2464_v57 }
 0x308   :  { %vm8057_vm15 = vcmp.le.f32.partialorder %v10186_v46, 0.7853982  ;;  %v2492_v2 = vsel %vm2482_vm5, %v2489_v56, %v2491_v36  ;;  %v2494_v38 = vsel %vm2484_vm8, %v2480_v34, 1326507024  ;;  %v2316_v23 = vor.u32 %v2315_v48, %v2314_v49 }
 0x309   :  { %v2413_v45 = vclz %v5843_v1  ;;  %v2495_v61 = vsel %vm2483_vm10, %v2477_v40, %v2494_v38  ;;  %v8065_v52 = vmul.u32.u64.low %v8036_v18, %v2492_v2  ;;  %v8066_v11 = vmul.u32.u64.high %v8036_v18, %v2492_v2, %v8065_v52 }
 0x30a   :  { %v2485_v54 = vsel %vm2481_vm13, %v2465_v0, %v2468_v3  ;;  %v2487_v46 = vsel %vm2483_vm10, %v2471_v43, %v2486_v12  ;;  %v2496_v35 = vsel %vm2482_vm5, %v2493_v26, %v2495_v61  ;;  %v2557_v34 = vshrl.u32 %v2556_v62, 23 }
 0x30b   :  { %v5844_v29 = vadd.s32 4294967294, %v2413_v45  ;;  %v8072_v57 = vmul.u32.u64.low %v8036_v18, %v2496_v35  ;;  %v8073_v5 = vmul.u32.u64.high %v8036_v18, %v2496_v35, %v8072_v57  ;;  %6396 = vsinq.f32 %v7978_v30 }
 0x30c   :  { %v8077_v40 = vand.u32 3, %v8015_v47  ;;  %v2321_v56 = vand.u32 2147483647, %v2320_v53  ;;  %v2018_v48 = vsel %vm7952_vm4, 0, %v8013_v31  ;;  %v2488_v3 = vsel %vm2482_vm5, %v2485_v54, %v2487_v46 }
 0x30d   :  { %vm5845_vm0 = vcmp.lt.s32.totalorder %v5844_v29, 0  ;;  %v2507_v43 = vadd.s32 1, %v8066_v11  ;;  %v5850_v49 = vadd.s32 4294967169, %v2557_v34  ;;  %v2121_v62 = vsel %vm7945_vm7, %v7621_v19, %v8020_v25 }
 0x30e   :  { %v10189_v30 = vxor.u32 2147483648, %v8004_v22  ;;  %v2416_v35 = vsel %vm5845_vm0, 0, %v5844_v29  ;;  %v10190_v60 = vand.u32 2147483647, %v8002_v44  ;;  %6398 = vcosq.f32 %v7992_v50 }
 0x30f   :  { %v2323_v58 = vcvt.s32.f32 %v2316_v23  ;;  %v2421_v1 = vsub.s32 4294967266, %v2416_v35  ;;  %v2022_v12 = vadd.s32 3, %v2018_v48  ;;  %v2223_v36 = vsub.s32 4, %v7877_v14 }
 0x310   :  { %v2222_v47 = vsel %vm2139_vm12, %v10189_v30, %v8004_v22  ;;  %v2560_v31 = vand.u32 8388607, %v10190_v60  ;;  %v2504_v4 = vmul.u32 %v8036_v18, %v2488_v3  ;;  %vm2506_vm7 = vc.u32 %v8073_v5, %v8065_v52 }
 0x311   :  { %v2563_v25 = vadd.s32 1, %v5850_v49  ;;  %6400 = vcosq.f32 %v2121_v62  ;;  %v2225_v22 = vsel %vm8057_vm15, %v7627_v21, %v2222_v47  ;;  %v8102_v26 = vmul.f32 %v2323_v58, %v2321_v56 }
 0x312   :  { %v2508_v53 = vsel %vm2506_vm7, %v2507_v43, %v8066_v11  ;;  %6402 = vsinq.f32 %v2121_v62  ;;  %v2561_v0 = vor.u32 8388608, %v2560_v31  ;;  %v2417_v2 = vsub.s32 32, %v2416_v35 }
 0x313   :  { %v2509_v50 = vadd.s32 %v2508_v53, %v2504_v4  ;;  %vm2564_vm4 = vcmp.gt.s32.totalorder %v2563_v25, 0  ;;  %v2422_v38 = vadd.s32 127, %v2421_v1  ;;  %v8105_v18 = vand.u32 3, %v2022_v12 }
 0x314   :  { %v2565_v45 = vsel %vm2564_vm4, %v2563_v25, 0  ;;  %v8110_v61 = vsel %vm2139_vm12, %v2223_v36, %v7877_v14  ;;  %6404 = vcosq.f32 %v2225_v22  ;;  %v2401_v46 = vadd.s32 %v7968_v20, %v7984_v8 }
 0x315   :  { %v2510_v23 = vadd.s32 536870912, %v2509_v50  ;;  %v2567_v54 = vand.u32 31, %v2565_v45  ;;  %6406 = vsinq.f32 %v2225_v22  ;;  %v2026_v29 = vxor.u32 2147483648, %v8049_v13  ;;  %v8116_v57 = vpop.eup %6396 }
 0x316   :  { %v2418_v34 = vshll.u32 %v8039_v7, %v2416_v35  ;;  %v8120_v56 = vadd.s32 %v8065_v52, %v8073_v5  ;;  %v2419_v3 = vshrl.u32 %v2401_v46, %v2417_v2  ;;  %v2423_v43 = vshll.u32 %v2422_v38, 23 }
 0x317   :  { %v8122_v14 = vshrl.u32 %v2510_v23, 30  ;;  %v2568_v48 = vsub.s32 32, %v2567_v54  ;;  %v8124_v49 = vshll.u32 %v2561_v0, 8  ;;  %vm2025_vm6 = vcmp.eq.s32.totalorder %v8105_v18, 0 }
 0x318   :  { %v2570_v8 = vshll.u32 %v10169_v37, %v2567_v54  ;;  %v2573_v7 = vshll.u32 %v10170_v41, %v2567_v54  ;;  %v6399_v30 = vpop.eup %6398  ;;  %v2576_v52 = vshll.u32 %v10141_v16, %v2567_v54  ;;  %v2566_v31 = vshrl.u32 %v2565_v45, 5 }
 0x319   :  { %v2512_v20 = vshll.u32 %v8122_v14, 30  ;;  %v2571_v62 = vshrl.u32 %v10170_v41, %v2568_v48  ;;  %v2574_v5 = vshrl.u32 %v10141_v16, %v2568_v48  ;;  %v2577_v47 = vshrl.u32 %v10124_v33, %v2568_v48 }
 0x31a   :  { %v2580_v35 = vshrl.u32 %v10128_v10, %v2568_v48  ;;  %v2579_v58 = vshll.u32 %v10124_v33, %v2567_v54  ;;  %v2583_v1 = vshrl.u32 %v10168_v55, %v2568_v48  ;;  %v2582_v22 = vshll.u32 %v10128_v10, %v2567_v54 }
 0x31b   :  { %v8135_v60 = vsub.s32 %v2509_v50, %v2512_v20  ;;  %v8139_v12 = vpop.eup %6400  ;;  %v2572_v36 = vor.u32 %v2571_v62, %v2570_v8  ;;  %v2575_v4 = vor.u32 %v2574_v5, %v2573_v7  ;;  %v2578_v25 = vor.u32 %v2577_v47, %v2576_v52 }
 0x31c   :  { %vm2024_vm11 = vcmp.lt.s32.totalorder %v8105_v18, 2  ;;  %v8143_v53 = vpop.eup %6402  ;;  %v8145_v0 = vor.u32 %v2419_v3, %v2418_v34  ;;  %v2581_v2 = vor.u32 %v2580_v35, %v2579_v58  ;;  %vm2028_vm1 = vcmp.eq.s32.totalorder %v8105_v18, 2 }
 0x31d   :  { %v2515_v50 = vsub.s32 0, %v8135_v60  ;;  %v2569_v38 = vshrl.u32 %v10169_v37, %v2568_v48  ;;  %v2584_v45 = vor.u32 %v2583_v1, %v2582_v22  ;;  %v2027_v23 = vsel %vm2025_vm6, %v6399_v30, %v2026_v29 }
 0x31e   :  { %v2029_v46 = vxor.u32 2147483648, %v6399_v30  ;;  %v6405_v20 = vpop.eup %6404  ;;  %v2424_v54 = vor.u32 4788187, %v2423_v43  ;;  %vm2585_vm3 = vcmp.lt.s32.totalorder %v2566_v31, 1  ;;  %vm2588_vm9 = vcmp.lt.s32.totalorder %v2566_v31, 4 }
 0x31f   :  { %v5847_v8 = vmin.u32 %v2515_v50, %v8135_v60  ;;  %vm2021_vm2 = vweird.f32 %v7613_v28  ;;  %v6407_v34 = vpop.eup %6406  ;;  %vm2587_vm14 = vcmp.lt.s32.totalorder %v2566_v31, 3  ;;  %v2589_v3 = vsel %vm2585_vm3, %v2569_v38, %v2572_v36 }
 0x320   :  { %v2590_v62 = vsel %vm2588_vm9, %v2578_v25, 2102212464  ;;  %v2593_v7 = vsel %vm2585_vm3, %v2572_v36, %v2575_v4  ;;  %v2594_v52 = vsel %vm2588_vm9, %v2581_v2, 920167782  ;;  %v2226_v29 = vsel %vm8057_vm15, 0, %v8110_v61 }
 0x321   :  { %v2517_v5 = vclz %v5847_v8  ;;  %v2591_v48 = vsel %vm2587_vm14, %v2575_v4, %v2590_v62  ;;  %vm2586_vm12 = vcmp.lt.s32.totalorder %v2566_v31, 2  ;;  %v2595_v43 = vsel %vm2587_vm14, %v2578_v25, %v2594_v52 }
 0x322   :  { %v2597_v30 = vsel %vm2585_vm3, %v2575_v4, %v2578_v25  ;;  %v2598_v47 = vsel %vm2588_vm9, %v2584_v45, 1326507024  ;;  %v2592_v58 = vsel %vm2586_vm12, %v2589_v3, %v2591_v48  ;;  %v2596_v1 = vsel %vm2586_vm12, %v2593_v7, %v2595_v43 }
 0x323   :  { %v5848_v35 = vadd.s32 4294967294, %v2517_v5  ;;  %v2599_v22 = vsel %vm2587_vm14, %v2581_v2, %v2598_v47  ;;  %v8158_v38 = vmul.u32.u64.low %v8124_v49, %v2596_v1  ;;  %v8159_v11 = vmul.u32.u64.high %v8124_v49, %v2596_v1, %v8158_v38 }
 0x324   :  { %v2600_v50 = vsel %vm2586_vm12, %v2597_v30, %v2599_v22  ;;  %v2030_v36 = vsel %vm2028_vm1, %v2029_v46, %v8049_v13  ;;  %v2425_v4 = vand.u32 2147483647, %v2424_v54  ;;  %v2427_v25 = vcvt.s32.f32 %v8145_v0 }
 0x325   :  { %vm5849_vm13 = vcmp.lt.s32.totalorder %v5848_v35, 0  ;;  %v8166_v59 = vmul.u32.u64.low %v8124_v49, %v2600_v50  ;;  %v8167_v61 = vmul.u32.u64.high %v8124_v49, %v2600_v50, %v8166_v59  ;;  %v2031_v31 = vsel %vm2024_vm11, %v2027_v23, %v2030_v36 }
 0x326   :  { %v2520_v2 = vsel %vm5849_vm13, 0, %v5848_v35  ;;  %v2230_v45 = vadd.s32 3, %v2226_v29  ;;  %vm2243_vm8 = vcmp.lt.s32.totalorder %v7776_v9, 0  ;;  %v2608_v62 = vmul.u32 %v8124_v49, %v2592_v58 }
 0x327   :  { %v2521_v8 = vsub.s32 32, %v2520_v2  ;;  %v2525_v3 = vsub.s32 4294967266, %v2520_v2  ;;  %v2234_v13 = vxor.u32 2147483648, %v6407_v34  ;;  %v2611_v46 = vadd.s32 1, %v8159_v11 }
 0x328   :  { %v8177_v7 = vsel %vm2021_vm2, nan, %v2031_v31  ;;  %v2231_v18 = vand.u32 3, %v2230_v45  ;;  %v2237_v23 = vxor.u32 2147483648, %v6405_v20  ;;  %v2522_v54 = vshll.u32 %v8135_v60, %v2520_v2 }
 0x329   :  { %v2523_v0 = vshrl.u32 %v8120_v56, %v2521_v8  ;;  %v2526_v5 = vadd.s32 127, %v2525_v3  ;;  %vm2610_vm5 = vc.u32 %v8167_v61, %v8158_v38  ;;  %vm2229_vm10 = vweird.f32 %v7627_v21 }
 0x32a   :  { %v2612_v48 = vsel %vm2610_vm5, %v2611_v46, %v8159_v11  ;;  %vm2233_vm15 = vcmp.eq.s32.totalorder %v2231_v18, 0  ;;  %vm2236_vm0 = vcmp.eq.s32.totalorder %v2231_v18, 2  ;;  %v2428_v43 = vmul.f32 %v2427_v25, %v2425_v4 }
 0x32b   :  { %v2524_v49 = vor.u32 %v2523_v0, %v2522_v54  ;;  %v2527_v28 = vshll.u32 %v2526_v5, 23  ;;  %v2613_v52 = vadd.s32 %v2612_v48, %v2608_v62  ;;  %v2235_v29 = vsel %vm2233_vm15, %v6405_v20, %v2234_v13 }
 0x32c   :  { %vm2232_vm7 = vcmp.lt.s32.totalorder %v2231_v18, 2  ;;  %v2238_v30 = vsel %vm2236_vm0, %v2237_v23, %v6407_v34  ;;  %v2657_v60 = vand.u32 4294901760, %v8177_v7  ;;  %vm1921_vm4 = vcmp.eq.s32.totalorder %v7864_v51, 0 }
 0x32d   :  { %v2528_v56 = vor.u32 4788187, %v2527_v28  ;;  %v2614_v47 = vadd.s32 536870912, %v2613_v52  ;;  %v2239_v35 = vsel %vm2232_vm7, %v2235_v29, %v2238_v30  ;;  %v2531_v58 = vcvt.s32.f32 %v2524_v49 }
 0x32e   :  { %v8189_v11 = vsel %vm2229_vm10, nan, %v2239_v35  ;;  %v1922_v1 = vxor.u32 2147483648, %v8116_v57  ;;  %v1925_v22 = vxor.u32 2147483648, %v8045_v24  ;;  %vm1924_vm6 = vcmp.eq.s32.totalorder %v7864_v51, 2 }
 0x32f   :  { %v2529_v20 = vand.u32 2147483647, %v2528_v56  ;;  %v8193_v50 = vshrl.u32 %v2614_v47, 30  ;;  %v2661_v34 = vand.u32 4294901760, %v8189_v11  ;;  %v10191_v36 = vxor.u32 2147483648, %v8102_v26 }
 0x330   :  { %v1923_v21 = vsel %vm1921_vm4, %v8045_v24, %v1922_v1  ;;  %v1926_v31 = vsel %vm1924_vm6, %v1925_v22, %v8116_v57  ;;  %v2429_v4 = vxor.u32 2147483648, %v2428_v43  ;;  %v10192_v8 = vand.u32 2147483647, %v7776_v9 }
 0x331   :  { %v2326_v59 = vsel %vm2243_vm8, %v10191_v36, %v8102_v26  ;;  %v2532_v25 = vmul.f32 %v2531_v58, %v2529_v20  ;;  %v2616_v2 = vshll.u32 %v8193_v50, 30  ;;  %v8209_v45 = vpack.c.bf16 %v2661_v34, %v2657_v60 }
 0x332   :  { %vm8213_vm11 = vcmp.le.f32.partialorder %v10192_v8, 0.7853982  ;;  %vm2347_vm1 = vcmp.lt.s32.totalorder %v7779_v63, 0  ;;  %vm1920_vm3 = vcmp.lt.s32.totalorder %v7864_v51, 2  ;;  %v2130_v24 = vxor.u32 2147483648, %v8143_v53 }
 0x333   :  { %v2533_v26 = vxor.u32 2147483648, %v2532_v25  ;;  %v2617_v57 = vsub.s32 %v2613_v52, %v2616_v2  ;;  %5967 = vmatprep.subr.bf16.mxu1 %v8209_v45  ;;  %v1927_v62 = vsel %vm1920_vm3, %v1923_v21, %v1926_v31  ;;  %vm2129_vm9 = vcmp.eq.s32.totalorder %v8077_v40, 0 }
 0x334   :  { %v2329_v13 = vsel %vm8213_vm11, %v7776_v9, %v2326_v59  ;;  %vm2451_vm2 = vcmp.lt.s32.totalorder %v7783_v6, 0  ;;  %v2131_v46 = vsel %vm2129_vm9, %v8139_v12, %v2130_v24  ;;  %v2133_v18 = vxor.u32 2147483648, %v8139_v12 }
 0x335   :  { %v2430_v51 = vsel %vm2347_vm1, %v2429_v4, %v2428_v43  ;;  %v2619_v23 = vsub.s32 0, %v2617_v57  ;;  %vm1917_vm14 = vweird.f32 %v7609_v42  ;;  %vm2132_vm12 = vcmp.eq.s32.totalorder %v8077_v40, 2 }
 0x336   :  { %v2534_v54 = vsel %vm2451_vm2, %v2533_v26, %v2532_v25  ;;  %v8234_v0 = vsel %vm1917_vm14, nan, %v1927_v62  ;;  %vm2128_vm13 = vcmp.lt.s32.totalorder %v8077_v40, 2  ;;  %v2134_v5 = vsel %vm2132_vm12, %v2133_v18, %v8143_v53 }
 0x337   :  { %v10195_v48 = vand.u32 2147483647, %v7779_v63  ;;  %v5851_v49 = vmin.u32 %v2619_v23, %v2617_v57  ;;  %vm2125_vm10 = vweird.f32 %v7621_v19  ;;  %v2135_v42 = vsel %vm2128_vm13, %v2131_v46, %v2134_v5 }
 0x338   :  { %6408 = vcosq.f32 %v2329_v13  ;;  %v10198_v52 = vand.u32 2147483647, %v7783_v6  ;;  %v8254_v53 = vsel %vm2125_vm10, nan, %v2135_v42  ;;  %v2659_v19 = vand.u32 4294901760, %v8234_v0 }
 0x339   :  { %vm8240_vm5 = vcmp.le.f32.partialorder %v10195_v48, 0.7853982  ;;  %v2621_v43 = vclz %v5851_v49  ;;  %v2663_v30 = vand.u32 4294901760, %v8254_v53  ;;  %6410 = vsinq.f32 %v2329_v13 }
 0x33a   :  { %v2433_v28 = vsel %vm8240_vm5, %v7779_v63, %v2430_v51  ;;  %vm8250_vm15 = vcmp.le.f32.partialorder %v10198_v52, 0.7853982  ;;  %v2431_v56 = vsub.s32 4, %v8027_v15  ;;  %v2535_v47 = vsub.s32 4, %v8122_v14 }
 0x33b   :  { %v2537_v29 = vsel %vm8250_vm15, %v7783_v6, %v2534_v54  ;;  %6412 = vsinq.f32 %v2433_v28  ;;  %v5852_v35 = vadd.s32 4294967294, %v2621_v43  ;;  %v8267_v58 = vpack.c.bf16 %v2663_v30, %v2659_v19 }
 0x33c   :  { %v2327_v1 = vsub.s32 4, %v7956_v32  ;;  %6414 = vcosq.f32 %v2537_v29  ;;  %v2432_v22 = vsel %vm2347_vm1, %v2431_v56, %v8027_v15  ;;  %v2536_v36 = vsel %vm2451_vm2, %v2535_v47, %v8122_v14 }
 0x33d   :  { %6416 = vsinq.f32 %v2537_v29  ;;  %vm5853_vm0 = vcmp.lt.s32.totalorder %v5852_v35, 0  ;;  %5969 = vmatpush1.bf16.msra.mxu1 %v8267_v58  ;;  %v2609_v59 = vadd.s32 %v8158_v38, %v8167_v61  ;;  %v2434_v15 = vsel %vm8240_vm5, 0, %v2432_v22 }
 0x33e   :  { %6418 = vcosq.f32 %v2433_v28  ;;  %v2624_v20 = vsel %vm5853_vm0, 0, %v5852_v35  ;;  %v2328_v4 = vsel %vm2243_vm8, %v2327_v1, %v7956_v32  ;;  %v2538_v26 = vsel %vm8250_vm15, 0, %v2536_v36 }
 0x33f   :  { %v2625_v21 = vsub.s32 32, %v2624_v20  ;;  %v2629_v31 = vsub.s32 4294967266, %v2624_v20  ;;  %v2626_v25 = vshll.u32 %v2617_v57, %v2624_v20  ;;  %v2330_v38 = vsel %vm8213_vm11, 0, %v2328_v4 }
 0x340   :  { %v2438_v61 = vadd.s32 3, %v2434_v15  ;;  %v2542_v18 = vadd.s32 3, %v2538_v26  ;;  %v2639_v57 = vsub.s32 4, %v8193_v50  ;;  %v2334_v54 = vadd.s32 3, %v2330_v38 }
 0x341   :  { %v2627_v2 = vshrl.u32 %v2609_v59, %v2625_v21  ;;  %v2630_v8 = vadd.s32 127, %v2629_v31  ;;  %vm2555_vm8 = vcmp.lt.s32.totalorder %v8002_v44, 0  ;;  %v10201_v56 = vand.u32 2147483647, %v8002_v44 }
 0x342   :  { %v6409_v24 = vpop.eup %6408  ;;  %v2439_v49 = vand.u32 3, %v2438_v61  ;;  %v2543_v42 = vand.u32 3, %v2542_v18  ;;  %v2640_v3 = vsel %vm2555_vm8, %v2639_v57, %v8193_v50  ;;  %v2335_v43 = vand.u32 3, %v2334_v54 }
 0x343   :  { %v2628_v14 = vor.u32 %v2627_v2, %v2626_v25  ;;  %v2631_v62 = vshll.u32 %v2630_v8, 23  ;;  %v6411_v13 = vpop.eup %6410  ;;  %vm8295_vm7 = vcmp.le.f32.partialorder %v10201_v56, 0.7853982  ;;  %v2341_v36 = vxor.u32 2147483648, %v6409_v24 }
 0x344   :  { %vm2441_vm4 = vcmp.eq.s32.totalorder %v2439_v49, 0  ;;  %v2642_v22 = vsel %vm8295_vm7, 0, %v2640_v3  ;;  %v2338_v20 = vxor.u32 2147483648, %v6411_v13  ;;  %vm2545_vm6 = vcmp.eq.s32.totalorder %v2543_v42, 0 }
 0x345   :  { %v6413_v46 = vpop.eup %6412  ;;  %v2632_v32 = vor.u32 4788187, %v2631_v62  ;;  %v2635_v48 = vcvt.s32.f32 %v2628_v14  ;;  %vm2548_vm11 = vcmp.eq.s32.totalorder %v2543_v42, 2  ;;  %vm2444_vm1 = vcmp.eq.s32.totalorder %v2439_v49, 2 }
 0x346   :  { %v6415_v51 = vpop.eup %6414  ;;  %v2442_v52 = vxor.u32 2147483648, %v6413_v46  ;;  %vm2337_vm3 = vcmp.eq.s32.totalorder %v2335_v43, 0  ;;  %vm2340_vm9 = vcmp.eq.s32.totalorder %v2335_v43, 2  ;;  %vm2544_vm2 = vcmp.lt.s32.totalorder %v2543_v42, 2 }
 0x347   :  { %v6417_v23 = vpop.eup %6416  ;;  %v2633_v5 = vand.u32 2147483647, %v2632_v32  ;;  %v2549_v29 = vxor.u32 2147483648, %v6415_v51  ;;  %v2339_v2 = vsel %vm2337_vm3, %v6409_v24, %v2338_v20  ;;  %v2342_v8 = vsel %vm2340_vm9, %v2341_v36, %v6411_v13 }
 0x348   :  { %v6419_v12 = vpop.eup %6418  ;;  %v2546_v40 = vxor.u32 2147483648, %v6417_v23  ;;  %vm2440_vm14 = vcmp.lt.s32.totalorder %v2439_v49, 2  ;;  %vm2336_vm12 = vcmp.lt.s32.totalorder %v2335_v43, 2  ;;  %v2646_v14 = vadd.s32 3, %v2642_v22 }
 0x349   :  { %v2636_v28 = vmul.f32 %v2635_v48, %v2633_v5  ;;  %v2445_v1 = vxor.u32 2147483648, %v6419_v12  ;;  %v2443_v59 = vsel %vm2441_vm4, %v6419_v12, %v2442_v52  ;;  %v2550_v4 = vsel %vm2548_vm11, %v2549_v29, %v6417_v23 }
 0x34a   :  { %v2547_v31 = vsel %vm2545_vm6, %v6415_v51, %v2546_v40  ;;  %v2343_v62 = vsel %vm2336_vm12, %v2339_v2, %v2342_v8  ;;  %vm2541_vm13 = vweird.f32 %v7783_v6  ;;  %v8310_v38 = vsub.f32 %v8189_v11, %v2661_v34 }
 0x34b   :  { %v2637_v35 = vxor.u32 2147483648, %v2636_v28  ;;  %v2446_v25 = vsel %vm2444_vm1, %v2445_v1, %v6413_v46  ;;  %v2551_v15 = vsel %vm2544_vm2, %v2547_v31, %v2550_v4  ;;  %vm2437_vm5 = vweird.f32 %v7779_v63 }
 0x34c   :  { %v2447_v26 = vsel %vm2440_vm14, %v2443_v59, %v2446_v25  ;;  %v2552_v61 = vsel %vm2541_vm13, nan, %v2551_v15  ;;  %vm2333_vm10 = vweird.f32 %v7776_v9  ;;  %v8317_v24 = vsub.f32 %v8177_v7, %v2657_v60 }
 0x34d   :  { %v2638_v50 = vsel %vm2555_vm8, %v2637_v35, %v2636_v28  ;;  %v2448_v46 = vsel %vm2437_vm5, nan, %v2447_v26  ;;  %v2344_v13 = vsel %vm2333_vm10, nan, %v2343_v62  ;;  %v8322_v6 = vsub.f32 %v8254_v53, %v2663_v30 }
 0x34e   :  { %v2641_v21 = vsel %vm8295_vm7, %v8002_v44, %v2638_v50  ;;  %v2647_v18 = vand.u32 3, %v2646_v14  ;;  %v2671_v11 = vand.u32 4294901760, %v2552_v61  ;;  %v2665_v34 = vand.u32 4294901760, %v2448_v46 }
 0x34f   :  { %6420 = vcosq.f32 %v2641_v21  ;;  %v2788_v63 = vand.u32 4294901760, %v8310_v38  ;;  %v8328_v9 = vsub.f32 %v8234_v0, %v2659_v19  ;;  %v2667_v57 = vand.u32 4294901760, %v2344_v13 }
 0x350   :  { %6422 = vsinq.f32 %v2641_v21  ;;  %v2776_v51 = vand.u32 4294901760, %v8317_v24  ;;  %vm2652_vm15 = vcmp.eq.s32.totalorder %v2647_v18, 2  ;;  %v8331_v53 = vsub.f32 %v2552_v61, %v2671_v11 }
 0x351   :  { %v2794_v30 = vand.u32 4294901760, %v8322_v6  ;;  %vm2649_vm0 = vcmp.eq.s32.totalorder %v2647_v18, 0  ;;  %v8334_v5 = vsub.f32 %v2448_v46, %v2665_v34  ;;  %v2789_v0 = vsub.f32 %v8310_v38, %v2788_v63 }
 0x352   :  { %vm2648_vm8 = vcmp.lt.s32.totalorder %v2647_v18, 2  ;;  %v8339_v48 = vsub.f32 %v2344_v13, %v2667_v57  ;;  %v2782_v12 = vand.u32 4294901760, %v8328_v9  ;;  %vm2645_vm7 = vweird.f32 %v8002_v44  ;;  %v10205_v18 = vld [vmem:[#allocation19_spill] sm:$0xff] }
 0x353   :  { %v2777_v42 = vsub.f32 %v8317_v24, %v2776_v51  ;;  %v2795_v3 = vsub.f32 %v8322_v6, %v2794_v30  ;;  %v2818_v52 = vand.u32 4294901760, %v8331_v53  ;;  %v2790_v29 = vand.u32 4294901760, %v2789_v0  ;;  %v10211_v0 = vld [vmem:[#allocation8_spill] sm:$0xff] }
 0x354   :  { %v2800_v43 = vand.u32 4294901760, %v8334_v5  ;;  %v2783_v44 = vsub.f32 %v8328_v9, %v2782_v12  ;;  %v2806_v56 = vand.u32 4294901760, %v8339_v48  ;;  %v8359_v22 = vpack.c.bf16 %v2671_v11, %v2667_v57 }
 0x355   :  { %v2778_v1 = vand.u32 4294901760, %v2777_v42  ;;  %v2796_v20 = vand.u32 4294901760, %v2795_v3  ;;  %v2819_v36 = vsub.f32 %v8331_v53, %v2818_v52  ;;  %v10204_v14 = vmov 0.0   ;;  %v10213_v42 = vld [vmem:[#allocation15_spill] sm:$0xff] }
 0x356   :  { %v2801_v59 = vsub.f32 %v8334_v5, %v2800_v43  ;;  %v2784_v31 = vand.u32 4294901760, %v2783_v44  ;;  %v2807_v4 = vsub.f32 %v8339_v48, %v2806_v56  ;;  %v5982_v13 = vpack.c.bf16 %v8310_v38, %v8317_v24  ;;  %v10214_v38 = vld [vmem:[#allocation9_spill] sm:$0xff] }
 0x357   :  { %v5974_v50 = vpack.c.bf16 %v2790_v29, %v2778_v1  ;;  %v2820_v8 = vand.u32 4294901760, %v2819_v36  ;;  %v5984_v11 = vpack.c.bf16 %v8322_v6, %v8328_v9  ;;  %v5988_v57 = vpack.c.bf16 %v8331_v53, %v8339_v48  ;;  %v10216_v6 = vld [vmem:[#allocation14_spill] sm:$0xff]  ;;  %v10217_v9 = vld [vmem:[#allocation17_spill] sm:$0xff] }
 0x358   :  { %v5976_v2 = vpack.c.bf16 %v2796_v20, %v2784_v31  ;;  %v2802_v15 = vand.u32 4294901760, %v2801_v59  ;;  %v2808_v62 = vand.u32 4294901760, %v2807_v4  ;;  %v6000_v24 = vpack.c.bf16 %v2794_v30, %v2782_v12 }
 0x359   :  { %v6421_v32 = vpop.eup %6420 }
 0x35a   :  { %v6423_v7 = vpop.eup %6422  ;;  %v2653_v60 = vxor.u32 2147483648, %v6421_v32  ;;  %v5980_v46 = vpack.c.bf16 %v2820_v8, %v2808_v62 }
 0x35b   :  { %v2650_v23 = vxor.u32 2147483648, %v6423_v7 }
 0x35c   :  { %v2654_v54 = vsel %vm2652_vm15, %v2653_v60, %v6423_v7  ;;  %v10207_v7 = vld [vmem:[#allocation7_spill] sm:$0xff]  ;;  %v10208_v60 = vld [vmem:[#allocation10_spill] sm:$0xff] }
 0x35d   :  { %v2651_v19 = vsel %vm2649_vm0, %v6421_v32, %v2650_v23  ;;  %v10209_v23 = vld [vmem:[#allocation13_spill] sm:$0xff] }
 0x35e   :  { %v2655_v49 = vsel %vm2648_vm8, %v2651_v19, %v2654_v54  ;;  %v10210_v54 = vld [vmem:[#allocation6_spill] sm:$0xff]  ;;  %v5998_v19 = vpack.c.bf16 %v2788_v63, %v2776_v51  ;;  %v6004_v51 = vpack.c.bf16 %v2818_v52, %v2806_v56 }
 0x35f   :  { %v2656_v28 = vsel %vm2645_vm7, nan, %v2655_v49  ;;  %v10212_v49 = vld [vmem:[#allocation12_spill] sm:$0xff] }
 0x360   :  { %v2669_v40 = vand.u32 4294901760, %v2656_v28 }
 0x362   :  { %v8355_v47 = vpack.c.bf16 %v2669_v40, %v2665_v34  ;;  %v8357_v35 = vsub.f32 %v2656_v28, %v2669_v40  ;;  %v10206_v34 = vld [vmem:[#allocation5_spill] sm:$0xff]  ;;  %v10215_v28 = vld [vmem:[#allocation11_spill] sm:$0xff] }
 0x364   :  { %5971 = vmatprep.subr.bf16.mxu1 %v8355_v47  ;;  %v2812_v21 = vand.u32 4294901760, %v8357_v35  ;;  %v5986_v32 = vpack.c.bf16 %v8357_v35, %v8334_v5 }
 0x365   :  { %5973 = vmatpush1.bf16.msra.mxu1 %v8359_v22 }
 0x366   :  { %5975 = vmatprep.subr.bf16.mxu1 %v5974_v50  ;;  %v2813_v25 = vsub.f32 %v8357_v35, %v2812_v21  ;;  %v6002_v63 = vpack.c.bf16 %v2812_v21, %v2800_v43  ;;  %v10219_v43 = vld [vmem:[#allocation21_spill] sm:$0xff] }
 0x368   :  { %2735 = vmatmul.mubr.f32.vlgmr.msra.gmra.mrb[8].mxu1 %v7518_v39  ;;  %v2814_v26 = vand.u32 4294901760, %v2813_v25 }
 0x369   :  { %5977 = vmatpush1.bf16.msra.mxu1 %v5976_v2  ;;  %2740 = vmatprep.mubr.f32.mxu1 %v10204_v14 }
 0x36a   :  { %v5978_v61 = vpack.c.bf16 %v2814_v26, %v2802_v15 }
 0x36c   :  { %2746 = vmatmul.mubr.f32.gmra.mrb[10].mxu1 %v7530_v17  ;;  %5979 = vmatprep.subr.bf16.mxu1 %v5978_v61 }
 0x36d   :  { %5981 = vmatpush1.bf16.msra.mxu1 %v5980_v46  ;;  %2751 = vmatprep.mubr.f32.mxu1 %v10204_v14 }
 0x36e   :  { %5983 = vmatprep.subr.bf16.mxu1 %v5982_v13 }
 0x370   :  { %2757 = vmatmul.mubr.f32.gmra.mrb[12].mxu1 %v7546_v27 }
 0x371   :  { %2762 = vmatprep.mubr.f32.mxu1 %v10204_v14 }
 0x374   :  { %2768 = vmatmul.mubr.f32.gmra.mrb[14].mxu1 %v10205_v18 }
 0x375   :  { %2878 = vmatprep.mubr.f32.mxu1 %v10204_v14 }
 0x378   :  { %2880 = vmatmul.mubr.f32.vlgmr.msra.gmra.mrb[8].mxu1 %v10206_v34 }
 0x379   :  { %5985 = vmatpush1.bf16.msra.mxu1 %v5984_v11  ;;  %2885 = vmatprep.mubr.f32.mxu1 %v10204_v14 }
 0x37a   :  { %5987 = vmatprep.subr.bf16.mxu1 %v5986_v32 }
 0x37c   :  { %2887 = vmatmul.mubr.f32.gmra.mrb[10].mxu1 %v10207_v7 }
 0x37d   :  { %5989 = vmatpush1.bf16.msra.mxu1 %v5988_v57  ;;  %2892 = vmatprep.mubr.f32.mxu1 %v10204_v14 }
 0x37e   :  { %5991 = vmatprep.subr.bf16.mxu1 %v8209_v45 }
 0x380   :  { %2894 = vmatmul.mubr.f32.gmra.mrb[12].mxu1 %v10208_v60 }
 0x381   :  { %2899 = vmatprep.mubr.f32.mxu1 %v10204_v14 }
 0x384   :  { %2901 = vmatmul.mubr.f32.gmra.mrb[14].mxu1 %v10209_v23 }
 0x385   :  { %2987 = vmatprep.mubr.f32.mxu1 %v10204_v14 }
 0x388   :  { %2990 = vmatmul.mubr.f32.vlgmr.msra.gmra.mrb[8].mxu1 %v10210_v54 }
 0x389   :  { %5993 = vmatpush1.bf16.msra.mxu1 %v8267_v58  ;;  %2995 = vmatprep.mubr.f32.mxu1 %v10204_v14 }
 0x38a   :  { %5995 = vmatprep.subr.bf16.mxu1 %v8355_v47 }
 0x38c   :  { %2998 = vmatmul.mubr.f32.gmra.mrb[10].mxu1 %v10211_v0 }
 0x38d   :  { %5997 = vmatpush1.bf16.msra.mxu1 %v8359_v22  ;;  %3003 = vmatprep.mubr.f32.mxu1 %v10204_v14 }
 0x38e   :  { %5999 = vmatprep.subr.bf16.mxu1 %v5998_v19 }
 0x390   :  { %3006 = vmatmul.mubr.f32.gmra.mrb[12].mxu1 %v10212_v49 }
 0x391   :  { %3011 = vmatprep.mubr.f32.mxu1 %v10204_v14 }
 0x394   :  { %3014 = vmatmul.mubr.f32.gmra.mrb[14].mxu1 %v10213_v42 }
 0x395   :  { %3092 = vmatprep.mubr.f32.mxu1 %v10204_v14 }
 0x398   :  { %3096 = vmatmul.mubr.f32.vlgmr.msra.gmra.mrb[8].mxu1 %v10214_v38 }
 0x399   :  { %6001 = vmatpush1.bf16.msra.mxu1 %v6000_v24  ;;  %3101 = vmatprep.mubr.f32.mxu1 %v10204_v14 }
 0x39a   :  { %6003 = vmatprep.subr.bf16.mxu1 %v6002_v63 }
 0x39c   :  { %3105 = vmatmul.mubr.f32.gmra.mrb[10].mxu1 %v10215_v28 }
 0x39d   :  { %6005 = vmatpush1.bf16.msra.mxu1 %v6004_v51  ;;  %3110 = vmatprep.mubr.f32.mxu1 %v10204_v14 }
 0x39e   :  { %6007 = vmatprep.subr.bf16.mxu1 %v8209_v45 }
 0x3a0   :  { %3114 = vmatmul.mubr.f32.gmra.mrb[12].mxu1 %v10216_v6 }
 0x3a1   :  { %3119 = vmatprep.mubr.f32.mxu1 %v10204_v14 }
 0x3a4   :  { %3123 = vmatmul.mubr.f32.gmra.mrb[14].mxu1 %v10217_v9 }
 0x3a5   :  { %3217 = vmatprep.mubr.f32.mxu1 %v10204_v14 }
 0x3a8   :  { %3219 = vmatmul.mubr.f32.vlgmr.msra.gmra.mrb[8].mxu1 %v10206_v34 }
 0x3a9   :  { %6009 = vmatpush1.bf16.msra.mxu1 %v8267_v58  ;;  %3224 = vmatprep.mubr.f32.mxu1 %v10204_v14  ;;  %v10218_v58 = vld [vmem:[#allocation20_spill] sm:$0xff] }
 0x3aa   :  { %6011 = vmatprep.subr.bf16.mxu1 %v8355_v47 }
 0x3ac   :  { %3226 = vmatmul.mubr.f32.gmra.mrb[10].mxu1 %v10207_v7 }
 0x3ad   :  { %6013 = vmatpush1.bf16.msra.mxu1 %v8359_v22  ;;  %3231 = vmatprep.mubr.f32.mxu1 %v10204_v14 }
 0x3b0   :  { %3233 = vmatmul.mubr.f32.gmra.mrb[12].mxu1 %v10208_v60 }
 0x3b1   :  { %3238 = vmatprep.mubr.f32.mxu1 %v10204_v14 }
 0x3b4   :  { %3240 = vmatmul.mubr.f32.gmra.mrb[14].mxu1 %v10209_v23 }
 0x3b5   :  { %3318 = vmatprep.mubr.f32.mxu1 %v10204_v14 }
 0x3b8   :  { %3320 = vmatmul.mubr.f32.vlgmr.msra.gmra.mrb[8].mxu1 %v10206_v34 }
 0x3b9   :  { %3325 = vmatprep.mubr.f32.mxu1 %v10204_v14 }
 0x3bc   :  { %3327 = vmatmul.mubr.f32.gmra.mrb[10].mxu1 %v10207_v7 }
 0x3bd   :  { %3332 = vmatprep.mubr.f32.mxu1 %v10204_v14 }
 0x3c0   :  { %3334 = vmatmul.mubr.f32.gmra.mrb[12].mxu1 %v10208_v60 }
 0x3c1   :  { %3339 = vmatprep.mubr.f32.mxu1 %v10204_v14 }
 0x3c4   :  { %3341 = vmatmul.mubr.f32.gmra.mrb[14].mxu1 %v10209_v23 }
 0x48b   :  { %v3321_v45 = vpop.f32.mrb[8].mxu1 }
 0x48c   :  { %v8452_v53 = vadd.f32 %v3321_v45, %v10218_v58  ;;  %v3323_v30 = vpop.f32.mrb[9].mxu1 }
 0x48d   :  { %v8455_v5 = vadd.f32 %v3323_v30, %v10218_v58 }
 0x48e   :  { %v10105_v48 = vand.u32 2147483647, %v8452_v53  ;;  %v3350_v12 = vand.u32 2139095040, %v8452_v53 }
 0x48f   :  { %v10104_v3 = vand.u32 2147483647, %v8455_v5  ;;  %v3454_v52 = vand.u32 2139095040, %v8455_v5  ;;  %v3328_v40 = vpop.f32.mrb[10].mxu1 }
 0x490   :  { %v3351_v29 = vshrl.u32 %v3350_v12, 23  ;;  %v8462_v44 = vadd.f32 %v3328_v40, %v10219_v43  ;;  %v3330_v56 = vpop.f32.mrb[11].mxu1  ;;  %v3354_v47 = vand.u32 8388607, %v10105_v48 }
 0x491   :  { %v3455_v35 = vshrl.u32 %v3454_v52, 23  ;;  %v3458_v1 = vand.u32 8388607, %v10104_v3  ;;  %v8476_v13 = vadd.f32 %v3330_v56, %v10219_v43 }
 0x492   :  { %v5854_v22 = vadd.s32 4294967169, %v3351_v29  ;;  %v3558_v36 = vand.u32 2139095040, %v8462_v44  ;;  %v3355_v21 = vor.u32 8388608, %v3354_v47 }
 0x493   :  { %v5858_v20 = vadd.s32 4294967169, %v3455_v35  ;;  %v8469_v50 = vpop.f32.mrb[12].mxu1  ;;  %v3459_v31 = vor.u32 8388608, %v3458_v1 }
 0x494   :  { %v3357_v59 = vadd.s32 1, %v5854_v22  ;;  %v3559_v25 = vshrl.u32 %v3558_v36, 23  ;;  %v8471_v2 = vpop.f32.mrb[13].mxu1  ;;  %v8480_v32 = vshll.u32 %v3355_v21, 8 }
 0x495   :  { %v3461_v4 = vadd.s32 1, %v5858_v20  ;;  %v8484_v19 = vshll.u32 %v3459_v31, 8 }
 0x496   :  { %vm3358_vm4 = vcmp.gt.s32.totalorder %v3357_v59, 0  ;;  %v5862_v15 = vadd.s32 4294967169, %v3559_v25 }
 0x497   :  { %v3359_v8 = vsel %vm3358_vm4, %v3357_v59, 0  ;;  %vm3462_vm6 = vcmp.gt.s32.totalorder %v3461_v4, 0  ;;  %v8473_v26 = vpop.f32.mrb[14].mxu1 }
 0x498   :  { %v3360_v62 = vshrl.u32 %v3359_v8, 5  ;;  %v3361_v61 = vand.u32 31, %v3359_v8  ;;  %v3463_v46 = vsel %vm3462_vm6, %v3461_v4, 0  ;;  %v8478_v11 = vpop.f32.mrb[15].mxu1  ;;  %v8488_v30 = vadd.s32 1, %v5862_v15 }
 0x499   :  { %v8482_v57 = vshrl.u32 %v3463_v46, 5  ;;  %v3465_v45 = vand.u32 31, %v3463_v46 }
 0x49a   :  { %v3362_v63 = vsub.s32 32, %v3361_v61  ;;  %v3364_v51 = vshll.u32 %v10169_v37, %v3361_v61  ;;  %v3367_v12 = vshll.u32 %v10170_v41, %v3361_v61  ;;  %v3370_v52 = vshll.u32 %v10141_v16, %v3361_v61 }
 0x49b   :  { %v3373_v40 = vshll.u32 %v10124_v33, %v3361_v61  ;;  %v3376_v29 = vshll.u32 %v10128_v10, %v3361_v61  ;;  %vm3379_vm11 = vcmp.lt.s32.totalorder %v3360_v62, 1  ;;  %vm3380_vm1 = vcmp.lt.s32.totalorder %v3360_v62, 2 }
 0x49c   :  { %v3365_v56 = vshrl.u32 %v10170_v41, %v3362_v63  ;;  %v3368_v47 = vshrl.u32 %v10141_v16, %v3362_v63  ;;  %v3371_v35 = vshrl.u32 %v10124_v33, %v3362_v63  ;;  %v3363_v1 = vshrl.u32 %v10169_v37, %v3362_v63 }
 0x49d   :  { %v3374_v22 = vshrl.u32 %v10128_v10, %v3362_v63  ;;  %v3377_v20 = vshrl.u32 %v10168_v55, %v3362_v63  ;;  %v3466_v31 = vsub.s32 32, %v3465_v45  ;;  %vm3381_vm3 = vcmp.lt.s32.totalorder %v3360_v62, 3 }
 0x49e   :  { %v3366_v36 = vor.u32 %v3365_v56, %v3364_v51  ;;  %v3369_v59 = vor.u32 %v3368_v47, %v3367_v12  ;;  %v3372_v21 = vor.u32 %v3371_v35, %v3370_v52  ;;  %vm3382_vm9 = vcmp.lt.s32.totalorder %v3360_v62, 4 }
 0x49f   :  { %v3375_v4 = vor.u32 %v3374_v22, %v3373_v40  ;;  %v3378_v25 = vor.u32 %v3377_v20, %v3376_v29  ;;  %v3468_v63 = vshll.u32 %v10169_v37, %v3465_v45  ;;  %v3469_v52 = vshrl.u32 %v10170_v41, %v3466_v31 }
 0x4a0   :  { %v3383_v8 = vsel %vm3379_vm11, %v3363_v1, %v3366_v36  ;;  %v3384_v15 = vsel %vm3382_vm9, %v3372_v21, 2102212464  ;;  %v3387_v61 = vsel %vm3379_vm11, %v3366_v36, %v3369_v59  ;;  %v3391_v46 = vsel %vm3379_vm11, %v3369_v59, %v3372_v21 }
 0x4a1   :  { %v3385_v3 = vsel %vm3381_vm3, %v3369_v59, %v3384_v15  ;;  %v3388_v48 = vsel %vm3382_vm9, %v3375_v4, 920167782  ;;  %v3392_v24 = vsel %vm3382_vm9, %v3378_v25, 1326507024  ;;  %v3471_v40 = vshll.u32 %v10170_v41, %v3465_v45 }
 0x4a2   :  { %v3389_v51 = vsel %vm3381_vm3, %v3372_v21, %v3388_v48  ;;  %v3393_v12 = vsel %vm3381_vm3, %v3375_v4, %v3392_v24  ;;  %v3386_v29 = vsel %vm3380_vm1, %v3383_v8, %v3385_v3  ;;  %v3472_v35 = vshrl.u32 %v10141_v16, %v3466_v31 }
 0x4a3   :  { %v3390_v56 = vsel %vm3380_vm1, %v3387_v61, %v3389_v51  ;;  %v3394_v47 = vsel %vm3380_vm1, %v3391_v46, %v3393_v12  ;;  %v3470_v24 = vor.u32 %v3469_v52, %v3468_v63  ;;  %v3474_v59 = vshll.u32 %v10141_v16, %v3465_v45 }
 0x4a4   :  { %v8511_v1 = vmul.u32.u64.low %v8480_v32, %v3394_v47  ;;  %v8512_v22 = vmul.u32.u64.high %v8480_v32, %v3394_v47, %v8511_v1  ;;  %v8515_v20 = vmul.u32.u64.low %v8480_v32, %v3390_v56  ;;  %v8516_v48 = vmul.u32.u64.high %v8480_v32, %v3390_v56, %v8515_v20 }
 0x4a5   :  { %v3473_v36 = vor.u32 %v3472_v35, %v3471_v40  ;;  %v3475_v3 = vshrl.u32 %v10124_v33, %v3466_v31  ;;  %v3467_v62 = vshrl.u32 %v10169_v37, %v3466_v31  ;;  %v3477_v21 = vshll.u32 %v10124_v33, %v3465_v45 }
 0x4a6   :  { %v3478_v4 = vshrl.u32 %v10128_v10, %v3466_v31  ;;  %v3481_v25 = vshrl.u32 %v10168_v55, %v3466_v31  ;;  %v3402_v8 = vmul.u32 %v8480_v32, %v3386_v29  ;;  %v3480_v61 = vshll.u32 %v10128_v10, %v3465_v45 }
 0x4a7   :  { %v3476_v15 = vor.u32 %v3475_v3, %v3474_v59  ;;  %vm3483_vm2 = vcmp.lt.s32.totalorder %v8482_v57, 1  ;;  %vm3404_vm14 = vc.u32 %v8512_v22, %v8515_v20  ;;  %v3405_v46 = vadd.s32 1, %v8516_v48 }
 0x4a8   :  { %v3479_v63 = vor.u32 %v3478_v4, %v3477_v21  ;;  %vm3484_vm12 = vcmp.lt.s32.totalorder %v8482_v57, 2  ;;  %v3482_v51 = vor.u32 %v3481_v25, %v3480_v61  ;;  %vm3485_vm13 = vcmp.lt.s32.totalorder %v8482_v57, 3 }
 0x4a9   :  { %vm3486_vm5 = vcmp.lt.s32.totalorder %v8482_v57, 4  ;;  %v3491_v31 = vsel %vm3483_vm2, %v3470_v24, %v3473_v36  ;;  %v3406_v32 = vsel %vm3404_vm14, %v3405_v46, %v8516_v48  ;;  %v3495_v52 = vsel %vm3483_vm2, %v3473_v36, %v3476_v15 }
 0x4aa   :  { %v3488_v12 = vsel %vm3486_vm5, %v3476_v15, 2102212464  ;;  %v3492_v45 = vsel %vm3486_vm5, %v3479_v63, 920167782  ;;  %v3407_v40 = vadd.s32 %v3406_v32, %v3402_v8  ;;  %v3487_v29 = vsel %vm3483_vm2, %v3467_v62, %v3470_v24 }
 0x4ab   :  { %v3493_v56 = vsel %vm3485_vm13, %v3476_v15, %v3492_v45  ;;  %v3496_v47 = vsel %vm3486_vm5, %v3482_v51, 1326507024  ;;  %v3489_v35 = vsel %vm3485_vm13, %v3473_v36, %v3488_v12  ;;  %vm3566_vm10 = vcmp.gt.s32.totalorder %v8488_v30, 0 }
 0x4ac   :  { %v3494_v1 = vsel %vm3484_vm12, %v3491_v31, %v3493_v56  ;;  %v3497_v59 = vsel %vm3485_vm13, %v3479_v63, %v3496_v47  ;;  %v3408_v3 = vadd.s32 536870912, %v3407_v40  ;;  %v3567_v36 = vsel %vm3566_vm10, %v8488_v30, 0 }
 0x4ad   :  { %v3498_v21 = vsel %vm3484_vm12, %v3495_v52, %v3497_v59  ;;  %v8541_v48 = vmul.u32.u64.low %v8484_v19, %v3494_v1  ;;  %v8542_v4 = vmul.u32.u64.high %v8484_v19, %v3494_v1, %v8541_v48  ;;  %v3490_v8 = vsel %vm3484_vm12, %v3487_v29, %v3489_v35 }
 0x4ae   :  { %v8546_v24 = vmul.u32.u64.low %v8484_v19, %v3498_v21  ;;  %v8547_v62 = vmul.u32.u64.high %v8484_v19, %v3498_v21, %v8546_v24  ;;  %v8550_v25 = vshrl.u32 %v3408_v3, 30  ;;  %v10220_v15 = vand.u32 2147483647, %v8462_v44 }
 0x4af   :  { %v3569_v46 = vand.u32 31, %v3567_v36  ;;  %v3509_v51 = vadd.s32 1, %v8542_v4  ;;  %v3662_v32 = vand.u32 2139095040, %v8476_v13  ;;  %v3506_v12 = vmul.u32 %v8484_v19, %v3490_v8 }
 0x4b0   :  { %v3562_v61 = vand.u32 8388607, %v10220_v15  ;;  %v3410_v63 = vshll.u32 %v8550_v25, 30  ;;  %vm3508_vm15 = vc.u32 %v8547_v62, %v8541_v48  ;;  %vm3349_vm9 = vcmp.lt.s32.totalorder %v8452_v53, 0 }
 0x4b1   :  { %v3570_v31 = vsub.s32 32, %v3569_v46  ;;  %v3510_v57 = vsel %vm3508_vm15, %v3509_v51, %v8542_v4  ;;  %v3572_v29 = vshll.u32 %v10169_v37, %v3569_v46  ;;  %v3575_v1 = vshll.u32 %v10170_v41, %v3569_v46 }
 0x4b2   :  { %v8562_v30 = vsub.s32 %v3407_v40, %v3410_v63  ;;  %v3563_v45 = vor.u32 8388608, %v3562_v61  ;;  %v3511_v52 = vadd.s32 %v3510_v57, %v3506_v12  ;;  %v3663_v59 = vshrl.u32 %v3662_v32, 23 }
 0x4b3   :  { %v3573_v56 = vshrl.u32 %v10170_v41, %v3570_v31  ;;  %v3576_v47 = vshrl.u32 %v10141_v16, %v3570_v31  ;;  %v3579_v19 = vshrl.u32 %v10124_v33, %v3570_v31  ;;  %v3568_v40 = vshrl.u32 %v3567_v36, 5 }
 0x4b4   :  { %v3413_v35 = vsub.s32 0, %v8562_v30  ;;  %v3512_v3 = vadd.s32 536870912, %v3511_v52  ;;  %v3578_v4 = vshll.u32 %v10141_v16, %v3569_v46  ;;  %v3581_v15 = vshll.u32 %v10124_v33, %v3569_v46 }
 0x4b5   :  { %v3574_v21 = vor.u32 %v3573_v56, %v3572_v29  ;;  %v3577_v8 = vor.u32 %v3576_v47, %v3575_v1  ;;  %v3582_v61 = vshrl.u32 %v10128_v10, %v3570_v31  ;;  %v3584_v12 = vshll.u32 %v10128_v10, %v3569_v46 }
 0x4b6   :  { %v5855_v24 = vmin.u32 %v3413_v35, %v8562_v30  ;;  %v8575_v63 = vshrl.u32 %v3512_v3, 30  ;;  %v3580_v51 = vor.u32 %v3579_v19, %v3578_v4  ;;  %v3585_v57 = vshrl.u32 %v10168_v55, %v3570_v31 }
 0x4b7   :  { %v3583_v43 = vor.u32 %v3582_v61, %v3581_v15  ;;  %v3603_v36 = vshll.u32 %v3563_v45, 8  ;;  %vm3587_vm0 = vcmp.lt.s32.totalorder %v3568_v40, 1  ;;  %v5866_v35 = vadd.s32 4294967169, %v3663_v59 }
 0x4b8   :  { %v3415_v32 = vclz %v5855_v24  ;;  %v3514_v29 = vshll.u32 %v8575_v63, 30  ;;  %v3586_v56 = vor.u32 %v3585_v57, %v3584_v12  ;;  %v3571_v1 = vshrl.u32 %v10169_v37, %v3570_v31 }
 0x4b9   :  { %vm3590_vm8 = vcmp.lt.s32.totalorder %v3568_v40, 4  ;;  %v3595_v3 = vsel %vm3587_vm0, %v3574_v21, %v3577_v8  ;;  %vm3589_vm7 = vcmp.lt.s32.totalorder %v3568_v40, 3  ;;  %vm3588_vm6 = vcmp.lt.s32.totalorder %v3568_v40, 2 }
 0x4ba   :  { %v5856_v47 = vadd.s32 4294967294, %v3415_v32  ;;  %v8582_v58 = vsub.s32 %v3511_v52, %v3514_v29  ;;  %v3592_v46 = vsel %vm3590_vm8, %v3580_v51, 2102212464  ;;  %v3596_v19 = vsel %vm3590_vm8, %v3583_v43, 920167782 }
 0x4bb   :  { %v3597_v4 = vsel %vm3589_vm7, %v3580_v51, %v3596_v19  ;;  %v3599_v45 = vsel %vm3587_vm0, %v3577_v8, %v3580_v51  ;;  %v3600_v61 = vsel %vm3590_vm8, %v3586_v56, 1326507024  ;;  %v3591_v31 = vsel %vm3587_vm0, %v3571_v1, %v3574_v21 }
 0x4bc   :  { %vm5857_vm4 = vcmp.lt.s32.totalorder %v5856_v47, 0  ;;  %v3517_v15 = vsub.s32 0, %v8582_v58  ;;  %v3598_v59 = vsel %vm3588_vm6, %v3595_v3, %v3597_v4  ;;  %v3593_v57 = vsel %vm3589_vm7, %v3577_v8, %v3592_v46 }
 0x4bd   :  { %v3418_v24 = vsel %vm5857_vm4, 0, %v5856_v47  ;;  %v3601_v32 = vsel %vm3589_vm7, %v3583_v43, %v3600_v61  ;;  %v8588_v9 = vmul.u32.u64.low %v3603_v36, %v3598_v59  ;;  %v8589_v6 = vmul.u32.u64.high %v3603_v36, %v3598_v59, %v8588_v9 }
 0x4be   :  { %v3423_v12 = vsub.s32 4294967266, %v3418_v24  ;;  %v5859_v52 = vmin.u32 %v3517_v15, %v8582_v58  ;;  %v3602_v29 = vsel %vm3588_vm6, %v3599_v45, %v3601_v32  ;;  %v3594_v51 = vsel %vm3588_vm6, %v3591_v31, %v3593_v57  ;;  %v10221_v32 = vld [vmem:[#allocation22_spill] sm:$0xff] }
 0x4bf   :  { %v8592_v19 = vmul.u32.u64.low %v3603_v36, %v3602_v29  ;;  %v8593_v28 = vmul.u32.u64.high %v3603_v36, %v3602_v29, %v8592_v19  ;;  %v10108_v47 = vand.u32 2147483647, %v8476_v13  ;;  %v3669_v3 = vadd.s32 1, %v5866_v35 }
 0x4c0   :  { %v3424_v56 = vadd.s32 127, %v3423_v12  ;;  %v3519_v4 = vclz %v5859_v52  ;;  %v3613_v40 = vadd.s32 1, %v8589_v6  ;;  %v3610_v43 = vmul.u32 %v3603_v36, %v3594_v51 }
 0x4c1   :  { %vm3670_vm11 = vcmp.gt.s32.totalorder %v3669_v3, 0  ;;  %vm3612_vm1 = vc.u32 %v8593_v28, %v8588_v9  ;;  %v3419_v21 = vsub.s32 32, %v3418_v24  ;;  %v3666_v1 = vand.u32 8388607, %v10108_v47 }
 0x4c2   :  { %v3614_v8 = vsel %vm3612_vm1, %v3613_v40, %v8589_v6  ;;  %v3671_v46 = vsel %vm3670_vm11, %v3669_v3, 0  ;;  %v3403_v35 = vadd.s32 %v8515_v20, %v8512_v22  ;;  %v3425_v15 = vshll.u32 %v3424_v56, 23 }
 0x4c3   :  { %v3615_v45 = vadd.s32 %v3614_v8, %v3610_v43  ;;  %v5860_v59 = vadd.s32 4294967294, %v3519_v4  ;;  %v3673_v61 = vand.u32 31, %v3671_v46  ;;  %v3667_v36 = vor.u32 8388608, %v3666_v1 }
 0x4c4   :  { %v3421_v31 = vshrl.u32 %v3403_v35, %v3419_v21  ;;  %v8606_v52 = vadd.f32 %v8469_v50, %v10221_v32  ;;  %v3420_v29 = vshll.u32 %v8562_v30, %v3418_v24  ;;  %v3426_v19 = vor.u32 4788187, %v3425_v15 }
 0x4c5   :  { %v3616_v12 = vadd.s32 536870912, %v3615_v45  ;;  %v3674_v57 = vsub.s32 32, %v3673_v61  ;;  %vm5861_vm3 = vcmp.lt.s32.totalorder %v5860_v59, 0  ;;  %v3433_v22 = vsub.s32 4, %v8550_v25 }
 0x4c6   :  { %v3422_v56 = vor.u32 %v3421_v31, %v3420_v29  ;;  %v3676_v4 = vshll.u32 %v10169_v37, %v3673_v61  ;;  %v8616_v40 = vshll.u32 %v3667_v36, 8  ;;  %v3766_v50 = vand.u32 2139095040, %v8606_v52 }
 0x4c7   :  { %v8608_v6 = vshrl.u32 %v3616_v12, 30  ;;  %v3677_v51 = vshrl.u32 %v10170_v41, %v3674_v57  ;;  %v3680_v3 = vshrl.u32 %v10141_v16, %v3674_v57  ;;  %v8619_v43 = vsel %vm5861_vm3, 0, %v5860_v59 }
 0x4c8   :  { %v3672_v24 = vshrl.u32 %v3671_v46, 5  ;;  %v3679_v21 = vshll.u32 %v10170_v41, %v3673_v61  ;;  %v3427_v8 = vand.u32 2147483647, %v3426_v19  ;;  %v3682_v35 = vshll.u32 %v10141_v16, %v3673_v61 }
 0x4c9   :  { %v3618_v20 = vshll.u32 %v8608_v6, 30  ;;  %v3678_v1 = vor.u32 %v3677_v51, %v3676_v4  ;;  %v3683_v15 = vshrl.u32 %v10124_v33, %v3674_v57  ;;  %v3685_v36 = vshll.u32 %v10124_v33, %v3673_v61 }
 0x4ca   :  { %v3681_v31 = vor.u32 %v3680_v3, %v3679_v21  ;;  %v3686_v59 = vshrl.u32 %v10128_v10, %v3674_v57  ;;  %v3688_v29 = vshll.u32 %v10128_v10, %v3673_v61  ;;  %v3429_v19 = vcvt.s32.f32 %v3422_v56 }
 0x4cb   :  { %v8621_v30 = vsub.s32 %v3615_v45, %v3618_v20  ;;  %v3527_v45 = vsub.s32 4294967266, %v8619_v43  ;;  %v3684_v46 = vor.u32 %v3683_v15, %v3682_v35  ;;  %v3689_v20 = vshrl.u32 %v10168_v55, %v3674_v57 }
 0x4cc   :  { %v3687_v4 = vor.u32 %v3686_v59, %v3685_v36  ;;  %vm3691_vm2 = vcmp.lt.s32.totalorder %v3672_v24, 1  ;;  %v10222_v47 = vand.u32 2147483647, %v8452_v53  ;;  %v3675_v21 = vshrl.u32 %v10169_v37, %v3674_v57 }
 0x4cd   :  { %v3621_v12 = vsub.s32 0, %v8621_v30  ;;  %v3690_v38 = vor.u32 %v3689_v20, %v3688_v29  ;;  %vm3693_vm12 = vcmp.lt.s32.totalorder %v3672_v24, 3  ;;  %vm3694_vm13 = vcmp.lt.s32.totalorder %v3672_v24, 4 }
 0x4ce   :  { %vm8636_vm14 = vcmp.le.f32.partialorder %v10222_v47, 0.7853982  ;;  %v3696_v61 = vsel %vm3694_vm13, %v3684_v46, 2102212464  ;;  %v3699_v15 = vsel %vm3691_vm2, %v3678_v1, %v3681_v31  ;;  %v3700_v56 = vsel %vm3694_vm13, %v3687_v4, 920167782 }
 0x4cf   :  { %v5863_v51 = vmin.u32 %v3621_v12, %v8621_v30  ;;  %v3430_v42 = vmul.f32 %v3429_v19, %v3427_v8  ;;  %v3528_v12 = vadd.s32 127, %v3527_v45  ;;  %vm3692_vm5 = vcmp.lt.s32.totalorder %v3672_v24, 2 }
 0x4d0   :  { %v3701_v36 = vsel %vm3693_vm12, %v3684_v46, %v3700_v56  ;;  %v3695_v47 = vsel %vm3691_vm2, %v3675_v21, %v3678_v1  ;;  %v3703_v57 = vsel %vm3691_vm2, %v3681_v31, %v3684_v46  ;;  %v3697_v29 = vsel %vm3693_vm12, %v3681_v31, %v3696_v61 }
 0x4d1   :  { %v3623_v35 = vclz %v5863_v51  ;;  %v3702_v49 = vsel %vm3692_vm5, %v3699_v15, %v3701_v36  ;;  %v3704_v20 = vsel %vm3694_vm13, %v3690_v38, 1326507024  ;;  %v3434_v8 = vsel %vm3349_vm9, %v3433_v22, %v8550_v25 }
 0x4d2   :  { %v8648_v51 = vmul.u32.u64.low %v8616_v40, %v3702_v49  ;;  %v8649_v0 = vmul.u32.u64.high %v8616_v40, %v3702_v49, %v8648_v51  ;;  %v3523_v45 = vsub.s32 32, %v8619_v43  ;;  %v3705_v1 = vsel %vm3693_vm12, %v3687_v4, %v3704_v20 }
 0x4d3   :  { %v5864_v59 = vadd.s32 4294967294, %v3623_v35  ;;  %v3431_v19 = vxor.u32 2147483648, %v3430_v42  ;;  %vm3557_vm15 = vcmp.lt.s32.totalorder %v8462_v44, 0  ;;  %v3706_v38 = vsel %vm3692_vm5, %v3703_v57, %v3705_v1 }
 0x4d4   :  { %v3767_v31 = vshrl.u32 %v3766_v50, 23  ;;  %v3507_v49 = vadd.s32 %v8541_v48, %v8547_v62  ;;  %v3529_v21 = vshll.u32 %v3528_v12, 23  ;;  %v3698_v35 = vsel %vm3692_vm5, %v3695_v47, %v3697_v29  ;;  %v10225_v62 = vld [vmem:[#allocation23_spill] sm:$0xff] }
 0x4d5   :  { %vm5865_vm10 = vcmp.lt.s32.totalorder %v5864_v59, 0  ;;  %v10109_v25 = vand.u32 2147483647, %v8606_v52  ;;  %v8667_v4 = vmul.u32.u64.low %v8616_v40, %v3706_v38  ;;  %v8668_v61 = vmul.u32.u64.high %v8616_v40, %v3706_v38, %v8667_v4 }
 0x4d6   :  { %v8658_v46 = vsel %vm5865_vm10, 0, %v5864_v59  ;;  %v5870_v15 = vadd.s32 4294967169, %v3767_v31  ;;  %v3436_v56 = vsel %vm8636_vm14, 0, %v3434_v8  ;;  %v3717_v50 = vadd.s32 1, %v8649_v0 }
 0x4d7   :  { %v3631_v22 = vsub.s32 4294967266, %v8658_v46  ;;  %v8675_v48 = vadd.f32 %v8471_v2, %v10221_v32  ;;  %v8679_v24 = vadd.f32 %v8473_v26, %v10225_v62  ;;  %v3432_v12 = vsel %vm3349_vm9, %v3431_v19, %v3430_v42 }
 0x4d8   :  { %v3524_v36 = vshll.u32 %v8582_v58, %v8619_v43  ;;  %v3525_v59 = vshrl.u32 %v3507_v49, %v3523_v45  ;;  %v3773_v47 = vadd.s32 1, %v5870_v15  ;;  %v8685_v57 = vor.u32 4788187, %v3529_v21 }
 0x4d9   :  { %v3627_v29 = vsub.s32 32, %v8658_v46  ;;  %v3641_v20 = vsub.s32 4, %v8608_v6  ;;  %v3714_v2 = vmul.u32 %v8616_v40, %v3698_v35  ;;  %v3632_v8 = vadd.s32 127, %v3631_v22 }
 0x4da   :  { %vm3716_vm0 = vc.u32 %v8668_v61, %v8648_v51  ;;  %v3770_v42 = vand.u32 8388607, %v10109_v25  ;;  %vm3774_vm8 = vcmp.gt.s32.totalorder %v3773_v47, 0  ;;  %v3611_v58 = vadd.s32 %v8588_v9, %v8593_v28 }
 0x4db   :  { %v3718_v26 = vsel %vm3716_vm0, %v3717_v50, %v8649_v0  ;;  %v3775_v43 = vsel %vm3774_vm8, %v3773_v47, 0  ;;  %v3870_v45 = vand.u32 2139095040, %v8675_v48  ;;  %v8698_v1 = vadd.s32 3, %v3436_v56 }
 0x4dc   :  { %v8700_v19 = vor.u32 %v3525_v59, %v3524_v36  ;;  %v3719_v40 = vadd.s32 %v3718_v26, %v3714_v2  ;;  %v3777_v38 = vand.u32 31, %v3775_v43  ;;  %v8705_v31 = vsel %vm8636_vm14, %v8452_v53, %v3432_v12 }
 0x4dd   :  { %v3629_v21 = vshrl.u32 %v3611_v58, %v3627_v29  ;;  %v8711_v0 = vsel %vm3557_vm15, %v3641_v20, %v8608_v6  ;;  %v3633_v28 = vshll.u32 %v3632_v8, 23  ;;  %v3771_v35 = vor.u32 8388608, %v3770_v42 }
 0x4de   :  { %v3720_v9 = vadd.s32 536870912, %v3719_v40  ;;  %v3778_v22 = vsub.s32 32, %v3777_v38  ;;  %v3776_v4 = vshrl.u32 %v3775_v43, 5  ;;  %v3780_v15 = vshll.u32 %v10169_v37, %v3777_v38 }
 0x4df   :  { %v3783_v56 = vshll.u32 %v10170_v41, %v3777_v38  ;;  %v3871_v3 = vshrl.u32 %v3870_v45, 23  ;;  %v3786_v59 = vshll.u32 %v10141_v16, %v3777_v38  ;;  %v3789_v47 = vshll.u32 %v10124_v33, %v3777_v38 }
 0x4e0   :  { %v8715_v50 = vshrl.u32 %v3720_v9, 30  ;;  %v3781_v12 = vshrl.u32 %v10170_v41, %v3778_v22  ;;  %v3784_v36 = vshrl.u32 %v10141_v16, %v3778_v22  ;;  %v3787_v6 = vshrl.u32 %v10124_v33, %v3778_v22 }
 0x4e1   :  { %v3790_v29 = vshrl.u32 %v10128_v10, %v3778_v22  ;;  %v3793_v20 = vshrl.u32 %v10168_v55, %v3778_v22  ;;  %v3628_v2 = vshll.u32 %v8621_v30, %v8658_v46  ;;  %v3792_v42 = vshll.u32 %v10128_v10, %v3777_v38 }
 0x4e2   :  { %v3722_v8 = vshll.u32 %v8715_v50, 30  ;;  %v3782_v26 = vor.u32 %v3781_v12, %v3780_v15  ;;  %v3785_v43 = vor.u32 %v3784_v36, %v3783_v56  ;;  %v3788_v45 = vor.u32 %v3787_v6, %v3786_v59 }
 0x4e3   :  { %v3791_v9 = vor.u32 %v3790_v29, %v3789_v47  ;;  %v10226_v25 = vand.u32 2147483647, %v8462_v44  ;;  %v3630_v32 = vor.u32 %v3629_v21, %v3628_v2  ;;  %v3794_v30 = vor.u32 %v3793_v20, %v3792_v42 }
 0x4e4   :  { %v8735_v54 = vsub.s32 %v3719_v40, %v3722_v8  ;;  %v3811_v46 = vshll.u32 %v3771_v35, 8  ;;  %v3634_v23 = vor.u32 4788187, %v3633_v28  ;;  %v3779_v38 = vshrl.u32 %v10169_v37, %v3778_v22 }
 0x4e5   :  { %vm8731_vm7 = vcmp.le.f32.partialorder %v10226_v25, 0.7853982  ;;  %vm3798_vm4 = vcmp.lt.s32.totalorder %v3776_v4, 4  ;;  %v5874_v58 = vadd.s32 4294967169, %v3871_v3  ;;  %vm3795_vm6 = vcmp.lt.s32.totalorder %v3776_v4, 1 }
 0x4e6   :  { %v3725_v15 = vsub.s32 0, %v8735_v54  ;;  %vm3796_vm11 = vcmp.lt.s32.totalorder %v3776_v4, 2  ;;  %v3800_v56 = vsel %vm3798_vm4, %v3788_v45, 2102212464  ;;  %vm3797_vm1 = vcmp.lt.s32.totalorder %v3776_v4, 3 }
 0x4e7   :  { %v3803_v25 = vsel %vm3795_vm6, %v3782_v26, %v3785_v43  ;;  %v3804_v12 = vsel %vm3798_vm4, %v3791_v9, 920167782  ;;  %v3807_v36 = vsel %vm3795_vm6, %v3785_v43, %v3788_v45  ;;  %v3799_v40 = vsel %vm3795_vm6, %v3779_v38, %v3782_v26 }
 0x4e8   :  { %v5867_v21 = vmin.u32 %v3725_v15, %v8735_v54  ;;  %v3805_v59 = vsel %vm3797_vm1, %v3788_v45, %v3804_v12  ;;  %v3808_v6 = vsel %vm3798_vm4, %v3794_v30, 1326507024  ;;  %v3801_v35 = vsel %vm3797_vm1, %v3785_v43, %v3800_v56 }
 0x4e9   :  { %v3806_v28 = vsel %vm3796_vm11, %v3803_v25, %v3805_v59  ;;  %v3809_v22 = vsel %vm3797_vm1, %v3791_v9, %v3808_v6  ;;  %v3877_v47 = vadd.s32 1, %v5874_v58  ;;  %v3533_v8 = vcvt.s32.f32 %v8700_v19 }
 0x4ea   :  { %v3727_v3 = vclz %v5867_v21  ;;  %v3810_v29 = vsel %vm3796_vm11, %v3807_v36, %v3809_v22  ;;  %v8742_v20 = vmul.u32.u64.low %v3811_v46, %v3806_v28  ;;  %v8743_v2 = vmul.u32.u64.high %v3811_v46, %v3806_v28, %v8742_v20 }
 0x4eb   :  { %v8747_v42 = vmul.u32.u64.low %v3811_v46, %v3810_v29  ;;  %v8748_v60 = vmul.u32.u64.high %v3811_v46, %v3810_v29, %v8747_v42  ;;  %vm3878_vm3 = vcmp.gt.s32.totalorder %v3877_v47, 0  ;;  %v3802_v43 = vsel %vm3796_vm11, %v3799_v40, %v3801_v35 }
 0x4ec   :  { %v5868_v26 = vadd.s32 4294967294, %v3727_v3  ;;  %v10229_v45 = vand.u32 2147483647, %v8675_v48  ;;  %v3879_v58 = vsel %vm3878_vm3, %v3877_v47, 0  ;;  %v10230_v30 = vand.u32 2147483647, %v8685_v57 }
 0x4ed   :  { %v3635_v15 = vand.u32 2147483647, %v3634_v23  ;;  %v3644_v19 = vsel %vm8731_vm7, 0, %v8711_v0  ;;  %v3881_v56 = vand.u32 31, %v3879_v58  ;;  %v3637_v25 = vcvt.s32.f32 %v3630_v32 }
 0x4ee   :  { %v3874_v9 = vand.u32 8388607, %v10229_v45  ;;  %v8755_v38 = vmul.f32 %v3533_v8, %v10230_v30  ;;  %v3715_v12 = vadd.s32 %v8648_v51, %v8668_v61  ;;  %vm5869_vm9 = vcmp.lt.s32.totalorder %v5868_v26, 0 }
 0x4ef   :  { %v3821_v4 = vadd.s32 1, %v8743_v2  ;;  %v3730_v36 = vsel %vm5869_vm9, 0, %v5868_v26  ;;  %v3818_v21 = vmul.u32 %v3811_v46, %v3802_v43  ;;  %vm3820_vm2 = vc.u32 %v8748_v60, %v8742_v20 }
 0x4f0   :  { %v3882_v57 = vsub.s32 32, %v3881_v56  ;;  %v3731_v40 = vsub.s32 32, %v3730_v36  ;;  %v3735_v23 = vsub.s32 4294967266, %v3730_v36  ;;  %v3875_v6 = vor.u32 8388608, %v3874_v9 }
 0x4f1   :  { %v3822_v59 = vsel %vm3820_vm2, %v3821_v4, %v8743_v2  ;;  %v8766_v35 = vmul.f32 %v3637_v25, %v3635_v15  ;;  %v3974_v51 = vand.u32 2139095040, %v8679_v24  ;;  %v3884_v46 = vshll.u32 %v10169_v37, %v3881_v56 }
 0x4f2   :  { %v3823_v32 = vadd.s32 %v3822_v59, %v3818_v21  ;;  %v3885_v28 = vshrl.u32 %v10170_v41, %v3882_v57  ;;  %v3733_v61 = vshrl.u32 %v3715_v12, %v3731_v40  ;;  %v3736_v22 = vadd.s32 127, %v3735_v23 }
 0x4f3   :  { %v3888_v47 = vshrl.u32 %v10141_v16, %v3882_v57  ;;  %v3732_v3 = vshll.u32 %v8735_v54, %v3730_v36  ;;  %v3880_v8 = vshrl.u32 %v3879_v58, 5  ;;  %v3891_v2 = vshrl.u32 %v10124_v33, %v3882_v57 }
 0x4f4   :  { %v3824_v29 = vadd.s32 536870912, %v3823_v32  ;;  %v3737_v42 = vshll.u32 %v3736_v22, 23  ;;  %v3886_v26 = vor.u32 %v3885_v28, %v3884_v46  ;;  %v3887_v43 = vshll.u32 %v10170_v41, %v3881_v56 }
 0x4f5   :  { %v3890_v45 = vshll.u32 %v10141_v16, %v3881_v56  ;;  %v3734_v9 = vor.u32 %v3733_v61, %v3732_v3  ;;  %v3893_v15 = vshll.u32 %v10124_v33, %v3881_v56  ;;  %v3894_v25 = vshrl.u32 %v10128_v10, %v3882_v57 }
 0x4f6   :  { %v8776_v30 = vshrl.u32 %v3824_v29, 30  ;;  %v3889_v12 = vor.u32 %v3888_v47, %v3887_v43  ;;  %v3896_v54 = vshll.u32 %v10128_v10, %v3881_v56  ;;  %v3897_v58 = vshrl.u32 %v10168_v55, %v3882_v57 }
 0x4f7   :  { %v3892_v4 = vor.u32 %v3891_v2, %v3890_v45  ;;  %v3535_v36 = vxor.u32 2147483648, %v8755_v38  ;;  %v3738_v21 = vor.u32 4788187, %v3737_v42  ;;  %v3895_v23 = vor.u32 %v3894_v25, %v3893_v15 }
 0x4f8   :  { %v3826_v40 = vshll.u32 %v8776_v30, 30  ;;  %vm3453_vm14 = vcmp.lt.s32.totalorder %v8455_v5, 0  ;;  %v3639_v59 = vxor.u32 2147483648, %v8766_v35  ;;  %v3898_v28 = vor.u32 %v3897_v58, %v3896_v54 }
 0x4f9   :  { %v3915_v61 = vshll.u32 %v3875_v6, 8  ;;  %v3975_v22 = vshrl.u32 %v3974_v51, 23  ;;  %v3883_v47 = vshrl.u32 %v10169_v37, %v3882_v57  ;;  %vm3899_vm12 = vcmp.lt.s32.totalorder %v3880_v8, 1 }
 0x4fa   :  { %v8786_v46 = vsub.s32 %v3823_v32, %v3826_v40  ;;  %vm3902_vm13 = vcmp.lt.s32.totalorder %v3880_v8, 4  ;;  %v3741_v56 = vcvt.s32.f32 %v3734_v9  ;;  %vm3900_vm5 = vcmp.lt.s32.totalorder %v3880_v8, 2 }
 0x4fb   :  { %v3904_v3 = vsel %vm3902_vm13, %v3892_v4, 2102212464  ;;  %v3907_v29 = vsel %vm3899_vm12, %v3886_v26, %v3889_v12  ;;  %v10231_v2 = vand.u32 2147483647, %v8455_v5  ;;  %v3739_v43 = vand.u32 2147483647, %v3738_v21 }
 0x4fc   :  { %v3829_v6 = vsub.s32 0, %v8786_v46  ;;  %vm3901_vm0 = vcmp.lt.s32.totalorder %v3880_v8, 3  ;;  %v3908_v32 = vsel %vm3902_vm13, %v3895_v23, 920167782  ;;  %v3903_v51 = vsel %vm3899_vm12, %v3883_v47, %v3886_v26 }
 0x4fd   :  { %vm8791_vm10 = vcmp.le.f32.partialorder %v10231_v2, 0.7853982  ;;  %v3909_v45 = vsel %vm3901_vm0, %v3892_v4, %v3908_v32  ;;  %v3911_v57 = vsel %vm3899_vm12, %v3889_v12, %v3892_v4  ;;  %v3912_v15 = vsel %vm3902_vm13, %v3898_v28, 1326507024 }
 0x4fe   :  { %v5871_v9 = vmin.u32 %v3829_v6, %v8786_v46  ;;  %v3905_v25 = vsel %vm3901_vm0, %v3889_v12, %v3904_v3  ;;  %v3910_v54 = vsel %vm3900_vm5, %v3907_v29, %v3909_v45  ;;  %v3913_v58 = vsel %vm3901_vm0, %v3895_v23, %v3912_v15 }
 0x4ff   :  { %vm3661_vm8 = vcmp.lt.s32.totalorder %v8476_v13, 0  ;;  %v3914_v40 = vsel %vm3900_vm5, %v3911_v57, %v3913_v58  ;;  %v8800_v2 = vmul.u32.u64.low %v3915_v61, %v3910_v54  ;;  %v8801_v21 = vmul.u32.u64.high %v3915_v61, %v3910_v54, %v8800_v2 }
 0x500   :  { %v8806_v26 = vadd.f32 %v8478_v11, %v10225_v62  ;;  %v3742_v4 = vmul.f32 %v3741_v56, %v3739_v43  ;;  %v3831_v28 = vclz %v5871_v9  ;;  %6424 = vcosq.f32 %v8705_v31 }
 0x501   :  { %v8808_v47 = vmul.u32.u64.low %v3915_v61, %v3914_v40  ;;  %v8809_v6 = vmul.u32.u64.high %v3915_v61, %v3914_v40, %v8808_v47  ;;  %v3537_v12 = vsub.s32 4, %v8575_v63  ;;  %v3906_v23 = vsel %vm3900_vm5, %v3903_v51, %v3905_v25 }
 0x502   :  { %v5878_v3 = vadd.s32 4294967169, %v3975_v22  ;;  %v3536_v29 = vsel %vm3453_vm14, %v3535_v36, %v8755_v38  ;;  %v3648_v11 = vadd.s32 3, %v3644_v19  ;;  %v10234_v56 = vand.u32 2147483647, %v8476_v13 }
 0x503   :  { %v5872_v32 = vadd.s32 4294967294, %v3831_v28  ;;  %v10113_v8 = vand.u32 2147483647, %v8679_v24  ;;  %v3640_v22 = vsel %vm3557_vm15, %v3639_v59, %v8766_v35  ;;  %v3925_v38 = vadd.s32 1, %v8801_v21 }
 0x504   :  { %vm8823_vm4 = vcmp.le.f32.partialorder %v10234_v56, 0.7853982  ;;  %v3981_v36 = vadd.s32 1, %v5878_v3  ;;  %v4078_v51 = vand.u32 2139095040, %v8806_v26  ;;  %v3743_v0 = vxor.u32 2147483648, %v3742_v4 }
 0x505   :  { %vm5873_vm6 = vcmp.lt.s32.totalorder %v5872_v32, 0  ;;  %v3922_v19 = vmul.u32 %v3915_v61, %v3906_v23  ;;  %vm3924_vm11 = vc.u32 %v8809_v6, %v8800_v2  ;;  %v3539_v45 = vsel %vm8791_vm10, %v8455_v5, %v3536_v29 }
 0x506   :  { %v8838_v57 = vsel %vm5873_vm6, 0, %v5872_v32  ;;  %v3926_v15 = vsel %vm3924_vm11, %v3925_v38, %v8801_v21  ;;  %vm3982_vm15 = vcmp.gt.s32.totalorder %v3981_v36, 0  ;;  %6426 = vsinq.f32 %v8705_v31 }
 0x507   :  { %v8843_v35 = vand.u32 3, %v8698_v1  ;;  %v3927_v59 = vadd.s32 %v3926_v15, %v3922_v19  ;;  %v3978_v61 = vand.u32 8388607, %v10113_v8  ;;  %v8850_v9 = vsel %vm8731_vm7, %v8462_v44, %v3640_v22 }
 0x508   :  { %v3839_v25 = vsub.s32 4294967266, %v8838_v57  ;;  %v3983_v54 = vsel %vm3982_vm15, %v3981_v36, 0  ;;  %v4079_v58 = vshrl.u32 %v4078_v51, 23  ;;  %v8856_v31 = vsel %vm3453_vm14, %v3537_v12, %v8575_v63 }
 0x509   :  { %6428 = vcosq.f32 %v3539_v45  ;;  %v3744_v1 = vsel %vm3661_vm8, %v3743_v0, %v3742_v4  ;;  %v3928_v40 = vadd.s32 536870912, %v3927_v59  ;;  %v8860_v21 = vand.u32 3, %v3648_v11 }
 0x50a   :  { %6430 = vsinq.f32 %v3539_v45  ;;  %v3985_v28 = vand.u32 31, %v3983_v54  ;;  %v3819_v47 = vadd.s32 %v8742_v20, %v8748_v60  ;;  %v3979_v63 = vor.u32 8388608, %v3978_v61  ;;  %v8868_v12 = vpop.eup %6424 }
 0x50b   :  { %6432 = vcosq.f32 %v8850_v9  ;;  %v8866_v23 = vshrl.u32 %v3928_v40, 30  ;;  %v8873_v4 = vsel %vm8823_vm4, %v8476_v13, %v3744_v1  ;;  %v3840_v3 = vadd.s32 127, %v3839_v25 }
 0x50c   :  { %v3986_v29 = vsub.s32 32, %v3985_v28  ;;  %v5882_v11 = vadd.s32 4294967169, %v4079_v58  ;;  %v3984_v32 = vshrl.u32 %v3983_v54, 5  ;;  %v3988_v22 = vshll.u32 %v10169_v37, %v3985_v28 }
 0x50d   :  { %v3930_v56 = vshll.u32 %v8866_v23, 30  ;;  %v3991_v60 = vshll.u32 %v10170_v41, %v3985_v28  ;;  %v3994_v36 = vshll.u32 %v10141_v16, %v3985_v28  ;;  %v3997_v19 = vshll.u32 %v10124_v33, %v3985_v28 }
 0x50e   :  { %v3989_v20 = vshrl.u32 %v10170_v41, %v3986_v29  ;;  %v3992_v38 = vshrl.u32 %v10141_v16, %v3986_v29  ;;  %v3995_v51 = vshrl.u32 %v10124_v33, %v3986_v29  ;;  %v8885_v45 = vshll.u32 %v3979_v63, 8 }
 0x50f   :  { %v8882_v0 = vsub.s32 %v3927_v59, %v3930_v56  ;;  %v3998_v58 = vshrl.u32 %v10128_v10, %v3986_v29  ;;  %v3835_v40 = vsub.s32 32, %v8838_v57  ;;  %v4000_v59 = vshll.u32 %v10128_v10, %v3985_v28 }
 0x510   :  { %v3990_v61 = vor.u32 %v3989_v20, %v3988_v22  ;;  %v3993_v25 = vor.u32 %v3992_v38, %v3991_v60  ;;  %v3996_v54 = vor.u32 %v3995_v51, %v3994_v36  ;;  %v8889_v1 = vpop.eup %6426  ;;  %v4001_v56 = vshrl.u32 %v10168_v55, %v3986_v29 }
 0x511   :  { %v3933_v8 = vsub.s32 0, %v8882_v0  ;;  %v3841_v49 = vshll.u32 %v3840_v3, 23  ;;  %v3999_v63 = vor.u32 %v3998_v58, %v3997_v19  ;;  %vm4003_vm7 = vcmp.lt.s32.totalorder %v3984_v32, 1 }
 0x512   :  { %v4085_v62 = vadd.s32 1, %v5882_v11  ;;  %v3987_v60 = vshrl.u32 %v10169_v37, %v3986_v29  ;;  %v4002_v20 = vor.u32 %v4001_v56, %v4000_v59  ;;  %vm4006_vm1 = vcmp.lt.s32.totalorder %v3984_v32, 4 }
 0x513   :  { %v8895_v15 = vpop.eup %6428  ;;  %v5875_v22 = vmin.u32 %v3933_v8, %v8882_v0  ;;  %vm4005_vm3 = vcmp.lt.s32.totalorder %v3984_v32, 3  ;;  %v4008_v36 = vsel %vm4006_vm1, %v3996_v54, 2102212464  ;;  %v4011_v28 = vsel %vm4003_vm7, %v3990_v61, %v3993_v25 }
 0x514   :  { %v8899_v38 = vpop.eup %6430  ;;  %v4012_v51 = vsel %vm4006_vm1, %v3999_v63, 920167782  ;;  %vm4004_vm9 = vcmp.lt.s32.totalorder %v3984_v32, 2  ;;  %v4015_v19 = vsel %vm4003_vm7, %v3993_v25, %v3996_v54  ;;  %v3836_v8 = vshll.u32 %v8786_v46, %v8838_v57 }
 0x515   :  { %v8902_v7 = vpop.eup %6432  ;;  %v3935_v3 = vclz %v5875_v22  ;;  %v4013_v11 = vsel %vm4005_vm3, %v3996_v54, %v4012_v51  ;;  %v3837_v29 = vshrl.u32 %v3819_v47, %v3835_v40  ;;  %v4016_v59 = vsel %vm4006_vm1, %v4002_v20, 1326507024 }
 0x516   :  { %v4014_v58 = vsel %vm4004_vm9, %v4011_v28, %v4013_v11  ;;  %v4007_v34 = vsel %vm4003_vm7, %v3987_v60, %v3990_v61  ;;  %v4009_v18 = vsel %vm4005_vm3, %v3993_v25, %v4008_v36  ;;  %v4017_v27 = vsel %vm4005_vm3, %v3999_v63, %v4016_v59 }
 0x517   :  { %v5876_v56 = vadd.s32 4294967294, %v3935_v3  ;;  %v3842_v22 = vor.u32 4788187, %v3841_v49  ;;  %v4018_v17 = vsel %vm4004_vm9, %v4015_v19, %v4017_v27  ;;  %vm4086_vm14 = vcmp.gt.s32.totalorder %v4085_v62, 0 }
 0x518   :  { %v8914_v51 = vmul.u32.u64.low %v8885_v45, %v4014_v58  ;;  %v8915_v54 = vmul.u32.u64.high %v8885_v45, %v4014_v58, %v8914_v51  ;;  %v8919_v46 = vmul.u32.u64.low %v8885_v45, %v4018_v17  ;;  %v8920_v57 = vmul.u32.u64.high %v8885_v45, %v4018_v17, %v8919_v46 }
 0x519   :  { %vm5877_vm2 = vcmp.lt.s32.totalorder %v5876_v56, 0  ;;  %v3838_v47 = vor.u32 %v3837_v29, %v3836_v8  ;;  %v4010_v25 = vsel %vm4004_vm9, %v4007_v34, %v4009_v18  ;;  %v4087_v40 = vsel %vm4086_vm14, %v4085_v62, 0 }
 0x51a   :  { %v8922_v61 = vsel %vm5877_vm2, 0, %v5876_v56  ;;  %6434 = vsinq.f32 %v8850_v9  ;;  %v10237_v49 = vand.u32 2147483647, %v8806_v26  ;;  %v3540_v60 = vsel %vm8791_vm10, 0, %v8856_v31 }
 0x51b   :  { %v3943_v27 = vsub.s32 4294967266, %v8922_v61  ;;  %6436 = vcosq.f32 %v8873_v4  ;;  %v3843_v17 = vand.u32 2147483647, %v3842_v22  ;;  %v4029_v20 = vadd.s32 1, %v8915_v54 }
 0x51c   :  { %v4082_v63 = vand.u32 8388607, %v10237_v49  ;;  %v4089_v36 = vand.u32 31, %v4087_v40  ;;  %v10238_v18 = vsub.s32 4, %v8715_v50  ;;  %6438 = vsinq.f32 %v8873_v4 }
 0x51d   :  { %v4026_v62 = vmul.u32 %v8885_v45, %v4010_v25  ;;  %vm4028_vm12 = vc.u32 %v8920_v57, %v8914_v51  ;;  %v3845_v42 = vcvt.s32.f32 %v3838_v47  ;;  %v3923_v9 = vadd.s32 %v8800_v2, %v8809_v6 }
 0x51e   :  { %v8939_v34 = vsel %vm3661_vm8, %v10238_v18, %v8715_v50  ;;  %v4030_v31 = vsel %vm4028_vm12, %v4029_v20, %v8915_v54  ;;  %v4090_v32 = vsub.s32 32, %v4089_v36  ;;  %v3944_v28 = vadd.s32 127, %v3943_v27 }
 0x51f   :  { %v4031_v3 = vadd.s32 %v4030_v31, %v4026_v62  ;;  %v4083_v11 = vor.u32 8388608, %v4082_v63  ;;  %v3544_v19 = vadd.s32 3, %v3540_v60  ;;  %v8948_v50 = vmul.f32 %v3845_v42, %v3843_v17 }
 0x520   :  { %v4093_v4 = vshrl.u32 %v10170_v41, %v4090_v32  ;;  %v4096_v45 = vshrl.u32 %v10141_v16, %v4090_v32  ;;  %v4099_v8 = vshrl.u32 %v10124_v33, %v4090_v32  ;;  %v3939_v29 = vsub.s32 32, %v8922_v61 }
 0x521   :  { %v4032_v58 = vadd.s32 536870912, %v4031_v3  ;;  %v4088_v59 = vshrl.u32 %v4087_v40, 5  ;;  %v4092_v2 = vshll.u32 %v10169_v37, %v4089_v36  ;;  %v4095_v6 = vshll.u32 %v10170_v41, %v4089_v36 }
 0x522   :  { %v4098_v56 = vshll.u32 %v10141_v16, %v4089_v36  ;;  %v4101_v22 = vshll.u32 %v10124_v33, %v4089_v36  ;;  %v4102_v54 = vshrl.u32 %v10128_v10, %v4090_v32  ;;  %v3945_v46 = vshll.u32 %v3944_v28, 23 }
 0x523   :  { %v8959_v47 = vshrl.u32 %v4032_v58, 30  ;;  %v4104_v25 = vshll.u32 %v10128_v10, %v4089_v36  ;;  %v4105_v27 = vshrl.u32 %v10168_v55, %v4090_v32  ;;  %v4094_v49 = vor.u32 %v4093_v4, %v4092_v2 }
 0x524   :  { %v4097_v63 = vor.u32 %v4096_v45, %v4095_v6  ;;  %v4100_v40 = vor.u32 %v4099_v8, %v4098_v56  ;;  %v4103_v60 = vor.u32 %v4102_v54, %v4101_v22  ;;  %v8963_v17 = vpop.eup %6434  ;;  %v8967_v42 = vand.u32 3, %v3544_v19 }
 0x525   :  { %v4034_v18 = vshll.u32 %v8959_v47, 30  ;;  %v4106_v62 = vor.u32 %v4105_v27, %v4104_v25  ;;  %v8969_v31 = vpop.eup %6436  ;;  %v3940_v36 = vshll.u32 %v8882_v0, %v8922_v61  ;;  %v3941_v28 = vshrl.u32 %v3923_v9, %v3939_v29 }
 0x526   :  { %v4123_v58 = vshll.u32 %v4083_v11, 8  ;;  %v3548_v4 = vxor.u32 2147483648, %v8899_v38  ;;  %v8974_v45 = vpop.eup %6438  ;;  %v3946_v8 = vor.u32 4788187, %v3945_v46  ;;  %vm4107_vm13 = vcmp.lt.s32.totalorder %v4088_v59, 1 }
 0x527   :  { %v8976_v2 = vsub.s32 %v4031_v3, %v4034_v18  ;;  %vm4110_vm5 = vcmp.lt.s32.totalorder %v4088_v59, 4  ;;  %v4115_v19 = vsel %vm4107_vm13, %v4094_v49, %v4097_v63  ;;  %v4091_v0 = vshrl.u32 %v10169_v37, %v4090_v32 }
 0x528   :  { %v4112_v6 = vsel %vm4110_vm5, %v4100_v40, 2102212464  ;;  %v4116_v56 = vsel %vm4110_vm5, %v4103_v60, 920167782  ;;  %v4120_v22 = vsel %vm4110_vm5, %v4106_v62, 1326507024  ;;  %v4119_v61 = vsel %vm4107_vm13, %v4097_v63, %v4100_v40 }
 0x529   :  { %v4037_v54 = vsub.s32 0, %v8976_v2  ;;  %vm4109_vm10 = vcmp.lt.s32.totalorder %v4088_v59, 3  ;;  %v3942_v9 = vor.u32 %v3941_v28, %v3940_v36  ;;  %vm4108_vm0 = vcmp.lt.s32.totalorder %v4088_v59, 2 }
 0x52a   :  { %v4117_v11 = vsel %vm4109_vm10, %v4100_v40, %v4116_v56  ;;  %v4121_v29 = vsel %vm4109_vm10, %v4103_v60, %v4120_v22  ;;  %vm3546_vm8 = vcmp.lt.s32.totalorder %v8967_v42, 2  ;;  %v4111_v46 = vsel %vm4107_vm13, %v4091_v0, %v4094_v49 }
 0x52b   :  { %v5879_v3 = vmin.u32 %v4037_v54, %v8976_v2  ;;  %v4113_v25 = vsel %vm4109_vm10, %v4097_v63, %v4112_v6  ;;  %v4118_v27 = vsel %vm4108_vm0, %v4115_v19, %v4117_v11  ;;  %v3947_v18 = vand.u32 2147483647, %v3946_v8 }
 0x52c   :  { %v4122_v62 = vsel %vm4108_vm0, %v4119_v61, %v4121_v29  ;;  %v8987_v32 = vmul.u32.u64.low %v4123_v58, %v4118_v27  ;;  %v8988_v20 = vmul.u32.u64.high %v4123_v58, %v4118_v27, %v8987_v32  ;;  %vm3543_vm6 = vweird.f32 %v8455_v5 }
 0x52d   :  { %v4039_v36 = vclz %v5879_v3  ;;  %v8991_v28 = vmul.u32.u64.low %v4123_v58, %v4122_v62  ;;  %v8992_v40 = vmul.u32.u64.high %v4123_v58, %v4122_v62, %v8991_v28  ;;  %vm3547_vm11 = vcmp.eq.s32.totalorder %v8967_v42, 0 }
 0x52e   :  { %v3949_v60 = vcvt.s32.f32 %v3942_v9  ;;  %v4114_v49 = vsel %vm4108_vm0, %v4111_v46, %v4113_v25  ;;  %v3551_v63 = vxor.u32 2147483648, %v8895_v15  ;;  %v3748_v8 = vsel %vm8823_vm4, 0, %v8939_v34 }
 0x52f   :  { %vm3765_vm15 = vcmp.lt.s32.totalorder %v8606_v52, 0  ;;  %v4027_v6 = vadd.s32 %v8914_v51, %v8920_v57  ;;  %v5880_v19 = vadd.s32 4294967294, %v4039_v36  ;;  %vm3550_vm7 = vcmp.eq.s32.totalorder %v8967_v42, 2 }
 0x530   :  { %v3752_v56 = vadd.s32 3, %v3748_v8  ;;  %v3950_v22 = vmul.f32 %v3949_v60, %v3947_v18  ;;  %v4133_v54 = vadd.s32 1, %v8988_v20  ;;  %v3549_v59 = vsel %vm3547_vm11, %v8895_v15, %v3548_v4 }
 0x531   :  { %v3552_v0 = vsel %vm3550_vm7, %v3551_v63, %v8899_v38  ;;  %vm5881_vm1 = vcmp.lt.s32.totalorder %v5880_v19, 0  ;;  %v4130_v61 = vmul.u32 %v4123_v58, %v4114_v49  ;;  %vm4132_vm4 = vc.u32 %v8992_v40, %v8987_v32 }
 0x532   :  { %v3756_v43 = vxor.u32 2147483648, %v8974_v45  ;;  %v10239_v51 = vand.u32 2147483647, %v8606_v52  ;;  %v4042_v34 = vsel %vm5881_vm1, 0, %v5880_v19  ;;  %v4134_v9 = vsel %vm4132_vm4, %v4133_v54, %v8988_v20 }
 0x533   :  { %v3753_v11 = vand.u32 3, %v3752_v56  ;;  %v3759_v15 = vxor.u32 2147483648, %v8969_v31  ;;  %vm3869_vm9 = vcmp.lt.s32.totalorder %v8675_v48, 0  ;;  %v4043_v38 = vsub.s32 32, %v4042_v34 }
 0x534   :  { %vm9013_vm3 = vcmp.le.f32.partialorder %v10239_v51, 0.7853982  ;;  %v4047_v58 = vsub.s32 4294967266, %v4042_v34  ;;  %v4135_v4 = vadd.s32 %v4134_v9, %v4130_v61  ;;  %v3553_v29 = vsel %vm3546_vm8, %v3549_v59, %v3552_v0 }
 0x535   :  { %v4044_v3 = vshll.u32 %v8976_v2, %v4042_v34  ;;  %vm3751_vm2 = vweird.f32 %v8476_v13  ;;  %vm3755_vm14 = vcmp.eq.s32.totalorder %v3753_v11, 0  ;;  %vm3758_vm12 = vcmp.eq.s32.totalorder %v3753_v11, 2 }
 0x536   :  { %v4045_v46 = vshrl.u32 %v4027_v6, %v4043_v38  ;;  %v4048_v25 = vadd.s32 127, %v4047_v58  ;;  %v4136_v20 = vadd.s32 536870912, %v4135_v4  ;;  %v3757_v27 = vsel %vm3755_vm14, %v8969_v31, %v3756_v43 }
 0x537   :  { %v9027_v18 = vsel %vm3543_vm6, nan, %v3553_v29  ;;  %vm3754_vm13 = vcmp.lt.s32.totalorder %v3753_v11, 2  ;;  %v3760_v62 = vsel %vm3758_vm12, %v3759_v15, %v8974_v45  ;;  %v3444_v42 = vxor.u32 2147483648, %v8889_v1 }
 0x538   :  { %v10242_v2 = vand.u32 2147483647, %v8675_v48  ;;  %v4046_v28 = vor.u32 %v4045_v46, %v4044_v3  ;;  %v4049_v60 = vshll.u32 %v4048_v25, 23  ;;  %v9037_v49 = vshrl.u32 %v4136_v20, 30 }
 0x539   :  { %v3761_v31 = vsel %vm3754_vm13, %v3757_v27, %v3760_v62  ;;  %v10245_v5 = vxor.u32 2147483648, %v8948_v50  ;;  %v3951_v45 = vxor.u32 2147483648, %v3950_v22  ;;  %vm3973_vm10 = vcmp.lt.s32.totalorder %v8679_v24, 0 }
 0x53a   :  { %vm9033_vm5 = vcmp.le.f32.partialorder %v10242_v2, 0.7853982  ;;  %v9047_v8 = vsel %vm3751_vm2, nan, %v3761_v31  ;;  %v3447_v6 = vxor.u32 2147483648, %v8868_v12  ;;  %v10246_v19 = vand.u32 2147483647, %v8679_v24 }
 0x53b   :  { %v3848_v63 = vsel %vm3765_vm15, %v10245_v5, %v8948_v50  ;;  %v4050_v54 = vor.u32 4788187, %v4049_v60  ;;  %v4138_v59 = vshll.u32 %v9037_v49, 30  ;;  %vm3443_vm8 = vcmp.eq.s32.totalorder %v8843_v35, 0 }
 0x53c   :  { %vm9052_vm0 = vcmp.le.f32.partialorder %v10246_v19, 0.7853982  ;;  %vm3446_vm6 = vcmp.eq.s32.totalorder %v8843_v35, 2  ;;  %v4179_v50 = vand.u32 4294901760, %v9027_v18  ;;  %v4183_v13 = vand.u32 4294901760, %v9047_v8 }
 0x53d   :  { %v3445_v0 = vsel %vm3443_vm8, %v8868_v12, %v3444_v42  ;;  %v3448_v61 = vsel %vm3446_vm6, %v3447_v6, %v8889_v1  ;;  %v3851_v43 = vsel %vm9013_vm3, %v8606_v52, %v3848_v63  ;;  %v4051_v51 = vand.u32 2147483647, %v4050_v54 }
 0x53e   :  { %v4053_v34 = vcvt.s32.f32 %v4046_v28  ;;  %v4139_v9 = vsub.s32 %v4135_v4, %v4138_v59  ;;  %v3952_v11 = vsel %vm3869_vm9, %v3951_v45, %v3950_v22  ;;  %v3953_v15 = vsub.s32 4, %v8866_v23 }
 0x53f   :  { %v9073_v38 = vpack.c.bf16 %v4183_v13, %v4179_v50  ;;  %vm3442_vm11 = vcmp.lt.s32.totalorder %v8843_v35, 2  ;;  %v3652_v29 = vxor.u32 2147483648, %v8963_v17  ;;  %6440 = vcosq.f32 %v3851_v43 }
 0x540   :  { %v4054_v12 = vmul.f32 %v4053_v34, %v4051_v51  ;;  %v4141_v1 = vsub.s32 0, %v4139_v9  ;;  %v3449_v58 = vsel %vm3442_vm11, %v3445_v0, %v3448_v61  ;;  %vm3439_vm7 = vweird.f32 %v8452_v53 }
 0x541   :  { %6015 = vmatprep.subr.bf16.mxu0 %v9073_v38  ;;  %vm3651_vm1 = vcmp.eq.s32.totalorder %v8860_v21, 0  ;;  %v3655_v22 = vxor.u32 2147483648, %v8902_v7  ;;  %vm3654_vm4 = vcmp.eq.s32.totalorder %v8860_v21, 2  ;;  %v3955_v35 = vsel %vm9033_vm5, %v8675_v48, %v3952_v11 }
 0x542   :  { %v4055_v4 = vxor.u32 2147483648, %v4054_v12  ;;  %v5883_v3 = vmin.u32 %v4141_v1, %v4139_v9  ;;  %v3653_v46 = vsel %vm3651_vm1, %v8902_v7, %v3652_v29  ;;  %v9086_v25 = vsel %vm3439_vm7, nan, %v3449_v58 }
 0x543   :  { %vm3650_vm2 = vcmp.lt.s32.totalorder %v8860_v21, 2  ;;  %v3656_v53 = vsel %vm3654_vm4, %v3655_v22, %v8963_v17  ;;  %vm3647_vm14 = vweird.f32 %v8462_v44  ;;  %6442 = vsinq.f32 %v3851_v43 }
 0x544   :  { %v4056_v20 = vsel %vm3973_vm10, %v4055_v4, %v4054_v12  ;;  %v4143_v27 = vclz %v5883_v3  ;;  %v3657_v62 = vsel %vm3650_vm2, %v3653_v46, %v3656_v53  ;;  %v4057_v7 = vsub.s32 4, %v8959_v47 }
 0x545   :  { %v4059_v42 = vsel %vm9052_vm0, %v8679_v24, %v4056_v20  ;;  %v9097_v2 = vsel %vm3647_vm14, nan, %v3657_v62  ;;  %6444 = vsinq.f32 %v3955_v35  ;;  %v4181_v17 = vand.u32 4294901760, %v9086_v25 }
 0x546   :  { %v5884_v21 = vadd.s32 4294967294, %v4143_v27  ;;  %v4185_v28 = vand.u32 4294901760, %v9097_v2  ;;  %v3849_v60 = vsub.s32 4, %v8776_v30  ;;  %6446 = vcosq.f32 %v4059_v42 }
 0x547   :  { %6448 = vsinq.f32 %v4059_v42  ;;  %v3954_v31 = vsel %vm3869_vm9, %v3953_v15, %v8866_v23  ;;  %v4058_v63 = vsel %vm3973_vm10, %v4057_v7, %v8959_v47  ;;  %v4131_v45 = vadd.s32 %v8987_v32, %v8992_v40 }
 0x548   :  { %vm5885_vm12 = vcmp.lt.s32.totalorder %v5884_v21, 0  ;;  %v9106_v44 = vpack.c.bf16 %v4185_v28, %v4181_v17  ;;  %6450 = vcosq.f32 %v3955_v35  ;;  %v3850_v59 = vsel %vm3765_vm15, %v3849_v60, %v8776_v30 }
 0x549   :  { %v4146_v5 = vsel %vm5885_vm12, 0, %v5884_v21  ;;  %v6441_v54 = vpop.eup %6440  ;;  %v3956_v43 = vsel %vm9033_vm5, 0, %v3954_v31  ;;  %v4060_v47 = vsel %vm9052_vm0, 0, %v4058_v63  ;;  %v3852_v34 = vsel %vm9013_vm3, 0, %v3850_v59 }
 0x54a   :  { %v4147_v6 = vsub.s32 32, %v4146_v5  ;;  %v4151_v19 = vsub.s32 4294967266, %v4146_v5  ;;  %6017 = vmatpush1.bf16.msra.mxu0 %v9106_v44  ;;  %v4148_v0 = vshll.u32 %v4139_v9, %v4146_v5  ;;  %v3960_v11 = vadd.s32 3, %v3956_v43 }
 0x54b   :  { %v4064_v12 = vadd.s32 3, %v4060_v47  ;;  %v4161_v30 = vsub.s32 4, %v9037_v49  ;;  %v3856_v29 = vadd.s32 3, %v3852_v34  ;;  %vm4077_vm15 = vcmp.lt.s32.totalorder %v8806_v26, 0 }
 0x54c   :  { %v4149_v23 = vshrl.u32 %v4131_v45, %v4147_v6  ;;  %v4152_v61 = vadd.s32 127, %v4151_v19  ;;  %v3961_v56 = vand.u32 3, %v3960_v11  ;;  %v10249_v62 = vand.u32 2147483647, %v8806_v26 }
 0x54d   :  { %v6443_v40 = vpop.eup %6442  ;;  %v4065_v3 = vand.u32 3, %v4064_v12  ;;  %v4162_v57 = vsel %vm4077_vm15, %v4161_v30, %v9037_v49  ;;  %v3857_v27 = vand.u32 3, %v3856_v29  ;;  %v3863_v5 = vxor.u32 2147483648, %v6441_v54 }
 0x54e   :  { %v4150_v51 = vor.u32 %v4149_v23, %v4148_v0  ;;  %v4153_v32 = vshll.u32 %v4152_v61, 23  ;;  %vm9133_vm3 = vcmp.le.f32.partialorder %v10249_v62, 0.7853982  ;;  %vm3963_vm9 = vcmp.eq.s32.totalorder %v3961_v56, 0 }
 0x54f   :  { %v6445_v15 = vpop.eup %6444  ;;  %v4164_v60 = vsel %vm9133_vm3, 0, %v4162_v57  ;;  %v3860_v31 = vxor.u32 2147483648, %v6443_v40  ;;  %vm3966_vm13 = vcmp.eq.s32.totalorder %v3961_v56, 2  ;;  %vm4067_vm5 = vcmp.eq.s32.totalorder %v4065_v3, 0 }
 0x550   :  { %v4154_v1 = vor.u32 4788187, %v4153_v32  ;;  %v6447_v9 = vpop.eup %6446  ;;  %v4157_v22 = vcvt.s32.f32 %v4150_v51  ;;  %v3964_v35 = vxor.u32 2147483648, %v6445_v15  ;;  %vm4070_vm10 = vcmp.eq.s32.totalorder %v4065_v3, 2 }
 0x551   :  { %v6449_v58 = vpop.eup %6448  ;;  %v4071_v20 = vxor.u32 2147483648, %v6447_v9  ;;  %vm3859_vm0 = vcmp.eq.s32.totalorder %v3857_v27, 0  ;;  %vm3862_vm8 = vcmp.eq.s32.totalorder %v3857_v27, 2  ;;  %vm4066_vm6 = vcmp.lt.s32.totalorder %v4065_v3, 2 }
 0x552   :  { %v4155_v36 = vand.u32 2147483647, %v4154_v1  ;;  %v6451_v4 = vpop.eup %6450  ;;  %v4068_v53 = vxor.u32 2147483648, %v6449_v58  ;;  %v3861_v0 = vsel %vm3859_vm0, %v6441_v54, %v3860_v31  ;;  %v3864_v23 = vsel %vm3862_vm8, %v3863_v5, %v6443_v40 }
 0x553   :  { %v3967_v21 = vxor.u32 2147483648, %v6451_v4  ;;  %v3965_v45 = vsel %vm3963_vm9, %v6451_v4, %v3964_v35  ;;  %v4072_v19 = vsel %vm4070_vm10, %v4071_v20, %v6449_v58  ;;  %vm3962_vm11 = vcmp.lt.s32.totalorder %v3961_v56, 2 }
 0x554   :  { %v4158_v46 = vmul.f32 %v4157_v22, %v4155_v36  ;;  %v4069_v6 = vsel %vm4067_vm5, %v6447_v9, %v4068_v53  ;;  %vm3858_vm7 = vcmp.lt.s32.totalorder %v3857_v27, 2  ;;  %v4168_v47 = vadd.s32 3, %v4164_v60 }
 0x555   :  { %v3968_v59 = vsel %vm3966_vm13, %v3967_v21, %v6445_v15  ;;  %v4073_v61 = vsel %vm4066_vm6, %v4069_v6, %v4072_v19  ;;  %v3865_v51 = vsel %vm3858_vm7, %v3861_v0, %v3864_v23  ;;  %vm4063_vm1 = vweird.f32 %v8679_v24 }
 0x556   :  { %v4159_v42 = vxor.u32 2147483648, %v4158_v46  ;;  %v3969_v43 = vsel %vm3962_vm11, %v3965_v45, %v3968_v59  ;;  %v9148_v32 = vsub.f32 %v9047_v8, %v4183_v13  ;;  %vm3959_vm4 = vweird.f32 %v8675_v48 }
 0x557   :  { %v4074_v34 = vsel %vm4063_vm1, nan, %v4073_v61  ;;  %v3970_v11 = vsel %vm3959_vm4, nan, %v3969_v43  ;;  %vm3855_vm2 = vweird.f32 %v8606_v52  ;;  %v9155_v54 = vsub.f32 %v9027_v18, %v4179_v50 }
 0x558   :  { %v4160_v49 = vsel %vm4077_vm15, %v4159_v42, %v4158_v46  ;;  %v3866_v40 = vsel %vm3855_vm2, nan, %v3865_v51  ;;  %v9160_v24 = vsub.f32 %v9097_v2, %v4185_v28  ;;  %v4169_v15 = vand.u32 3, %v4168_v47 }
 0x559   :  { %v4163_v63 = vsel %vm9133_vm3, %v8806_v26, %v4160_v49  ;;  %v4193_v8 = vand.u32 4294901760, %v4074_v34  ;;  %v4187_v13 = vand.u32 4294901760, %v3970_v11  ;;  %v4310_v48 = vand.u32 4294901760, %v9148_v32 }
 0x55a   :  { %6452 = vcosq.f32 %v4163_v63  ;;  %v9166_v52 = vsub.f32 %v9086_v25, %v4181_v17  ;;  %v4189_v1 = vand.u32 4294901760, %v3866_v40  ;;  %v4298_v30 = vand.u32 4294901760, %v9155_v54 }
 0x55b   :  { %6454 = vsinq.f32 %v4163_v63  ;;  %vm4174_vm14 = vcmp.eq.s32.totalorder %v4169_v15, 2  ;;  %v9169_v2 = vsub.f32 %v4074_v34, %v4193_v8  ;;  %v4316_v28 = vand.u32 4294901760, %v9160_v24  ;;  %v10252_v34 = vld [vmem:[#allocation16_spill] sm:$0xff] }
 0x55c   :  { %vm4171_vm12 = vcmp.eq.s32.totalorder %v4169_v15, 0  ;;  %v9172_v29 = vsub.f32 %v3970_v11, %v4187_v13  ;;  %v4311_v25 = vsub.f32 %v9148_v32, %v4310_v48  ;;  %vm4170_vm15 = vcmp.lt.s32.totalorder %v4169_v15, 2 }
 0x55d   :  { %v9177_v36 = vsub.f32 %v3866_v40, %v4189_v1  ;;  %v4304_v22 = vand.u32 4294901760, %v9166_v52  ;;  %vm4167_vm3 = vweird.f32 %v8806_v26  ;;  %v4299_v56 = vsub.f32 %v9155_v54, %v4298_v30  ;;  %v10253_v40 = vld [vmem:[#allocation18_spill] sm:$0xff] }
 0x55e   :  { %v4317_v46 = vsub.f32 %v9160_v24, %v4316_v28  ;;  %v4340_v57 = vand.u32 4294901760, %v9169_v2  ;;  %v4312_v53 = vand.u32 4294901760, %v4311_v25  ;;  %v4322_v20 = vand.u32 4294901760, %v9172_v29 }
 0x55f   :  { %v4305_v26 = vsub.f32 %v9166_v52, %v4304_v22  ;;  %v4328_v27 = vand.u32 4294901760, %v9177_v36  ;;  %v4300_v42 = vand.u32 4294901760, %v4299_v56  ;;  %v9197_v21 = vpack.c.bf16 %v4193_v8, %v4189_v1  ;;  %v10255_v8 = vld [vmem:[#allocation5_spill] sm:$0xff]  ;;  %v10256_v1 = vld [vmem:[#allocation7_spill] sm:$0xff] }
 0x560   :  { %v4318_v60 = vand.u32 4294901760, %v4317_v46  ;;  %v4341_v31 = vsub.f32 %v9169_v2, %v4340_v57  ;;  %v4323_v49 = vsub.f32 %v9172_v29, %v4322_v20  ;;  %v6030_v11 = vpack.c.bf16 %v9148_v32, %v9155_v54  ;;  %v10263_v32 = vld [vmem:[#allocation9_spill] sm:$0xff]  ;;  %v10264_v56 = vld [vmem:[#allocation11_spill] sm:$0xff] }
 0x561   :  { %v6022_v5 = vpack.c.bf16 %v4312_v53, %v4300_v42  ;;  %v4306_v45 = vand.u32 4294901760, %v4305_v26  ;;  %v4329_v6 = vsub.f32 %v9177_v36, %v4328_v27  ;;  %v6032_v15 = vpack.c.bf16 %v9160_v24, %v9166_v52  ;;  %v10265_v24 = vld [vmem:[#allocation14_spill] sm:$0xff]  ;;  %v10266_v52 = vld [vmem:[#allocation17_spill] sm:$0xff] }
 0x562   :  { %v4342_v0 = vand.u32 4294901760, %v4341_v31  ;;  %v4324_v23 = vand.u32 4294901760, %v4323_v49  ;;  %v6046_v25 = vpack.c.bf16 %v4310_v48, %v4298_v30  ;;  %v6048_v54 = vpack.c.bf16 %v4316_v28, %v4304_v22  ;;  %v10268_v42 = vld [vmem:[#allocation21_spill] sm:$0xff] }
 0x563   :  { %v6024_v59 = vpack.c.bf16 %v4318_v60, %v4306_v45  ;;  %v4330_v43 = vand.u32 4294901760, %v4329_v6  ;;  %v6052_v30 = vpack.c.bf16 %v4340_v57, %v4328_v27 }
 0x564   :  { %v6453_v12 = vpop.eup %6452 }
 0x565   :  { %v6455_v18 = vpop.eup %6454  ;;  %v4175_v50 = vxor.u32 2147483648, %v6453_v12  ;;  %v6028_v51 = vpack.c.bf16 %v4342_v0, %v4330_v43 }
 0x566   :  { %v4172_v9 = vxor.u32 2147483648, %v6455_v18 }
 0x567   :  { %v4176_v58 = vsel %vm4174_vm14, %v4175_v50, %v6455_v18  ;;  %v10257_v18 = vld [vmem:[#allocation10_spill] sm:$0xff]  ;;  %v10258_v50 = vld [vmem:[#allocation13_spill] sm:$0xff] }
 0x568   :  { %v4173_v17 = vsel %vm4171_vm12, %v6453_v12, %v4172_v9  ;;  %v6036_v12 = vpack.c.bf16 %v9169_v2, %v9177_v36  ;;  %v10259_v9 = vld [vmem:[#allocation6_spill] sm:$0xff] }
 0x569   :  { %v4177_v4 = vsel %vm4170_vm15, %v4173_v17, %v4176_v58  ;;  %v10260_v58 = vld [vmem:[#allocation8_spill] sm:$0xff] }
 0x56a   :  { %v4178_v3 = vsel %vm4167_vm3, nan, %v4177_v4  ;;  %v10261_v17 = vld [vmem:[#allocation12_spill] sm:$0xff]  ;;  %v10262_v4 = vld [vmem:[#allocation15_spill] sm:$0xff] }
 0x56b   :  { %v4191_v35 = vand.u32 4294901760, %v4178_v3 }
 0x56d   :  { %v9193_v62 = vpack.c.bf16 %v4191_v35, %v4187_v13  ;;  %v9195_v7 = vsub.f32 %v4178_v3, %v4191_v35 }
 0x56f   :  { %6019 = vmatprep.subr.bf16.mxu0 %v9193_v62  ;;  %v4334_v63 = vand.u32 4294901760, %v9195_v7  ;;  %v6034_v13 = vpack.c.bf16 %v9195_v7, %v9172_v29 }
 0x570   :  { %6021 = vmatpush1.bf16.msra.mxu0 %v9197_v21 }
 0x571   :  { %6023 = vmatprep.subr.bf16.mxu0 %v6022_v5  ;;  %v4335_v19 = vsub.f32 %v9195_v7, %v4334_v63  ;;  %v6050_v48 = vpack.c.bf16 %v4334_v63, %v4322_v20 }
 0x573   :  { %4257 = vmatmul.mubr.f32.vlgmr.msra.gmra.mrb[8].mxu0 %v7518_v39  ;;  %v4336_v61 = vand.u32 4294901760, %v4335_v19  ;;  %v10254_v39 = vld [vmem:[#allocation19_spill] sm:$0xff] }
 0x574   :  { %6025 = vmatpush1.bf16.msra.mxu0 %v6024_v59  ;;  %4262 = vmatprep.mubr.f32.mxu0 %v10204_v14 }
 0x575   :  { %v6026_v47 = vpack.c.bf16 %v4336_v61, %v4324_v23 }
 0x577   :  { %4268 = vmatmul.mubr.f32.gmra.mrb[10].mxu0 %v10252_v34  ;;  %6027 = vmatprep.subr.bf16.mxu0 %v6026_v47 }
 0x578   :  { %6029 = vmatpush1.bf16.msra.mxu0 %v6028_v51  ;;  %4273 = vmatprep.mubr.f32.mxu0 %v10204_v14 }
 0x579   :  { %6031 = vmatprep.subr.bf16.mxu0 %v6030_v11 }
 0x57b   :  { %4279 = vmatmul.mubr.f32.gmra.mrb[12].mxu0 %v10253_v40 }
 0x57c   :  { %4284 = vmatprep.mubr.f32.mxu0 %v10204_v14 }
 0x57f   :  { %4290 = vmatmul.mubr.f32.gmra.mrb[14].mxu0 %v10254_v39 }
 0x580   :  { %4400 = vmatprep.mubr.f32.mxu0 %v10204_v14 }
 0x583   :  { %4402 = vmatmul.mubr.f32.vlgmr.msra.gmra.mrb[8].mxu0 %v10255_v8 }
 0x584   :  { %6033 = vmatpush1.bf16.msra.mxu0 %v6032_v15  ;;  %4407 = vmatprep.mubr.f32.mxu0 %v10204_v14 }
 0x585   :  { %6035 = vmatprep.subr.bf16.mxu0 %v6034_v13 }
 0x587   :  { %4409 = vmatmul.mubr.f32.gmra.mrb[10].mxu0 %v10256_v1 }
 0x588   :  { %6037 = vmatpush1.bf16.msra.mxu0 %v6036_v12  ;;  %4414 = vmatprep.mubr.f32.mxu0 %v10204_v14 }
 0x589   :  { %6039 = vmatprep.subr.bf16.mxu0 %v9073_v38 }
 0x58b   :  { %4416 = vmatmul.mubr.f32.gmra.mrb[12].mxu0 %v10257_v18 }
 0x58c   :  { %4421 = vmatprep.mubr.f32.mxu0 %v10204_v14 }
 0x58f   :  { %4423 = vmatmul.mubr.f32.gmra.mrb[14].mxu0 %v10258_v50 }
 0x590   :  { %4509 = vmatprep.mubr.f32.mxu0 %v10204_v14 }
 0x593   :  { %4512 = vmatmul.mubr.f32.vlgmr.msra.gmra.mrb[8].mxu0 %v10259_v9 }
 0x594   :  { %6041 = vmatpush1.bf16.msra.mxu0 %v9106_v44  ;;  %4517 = vmatprep.mubr.f32.mxu0 %v10204_v14 }
 0x595   :  { %6043 = vmatprep.subr.bf16.mxu0 %v9193_v62 }
 0x597   :  { %4520 = vmatmul.mubr.f32.gmra.mrb[10].mxu0 %v10260_v58 }
 0x598   :  { %6045 = vmatpush1.bf16.msra.mxu0 %v9197_v21  ;;  %4525 = vmatprep.mubr.f32.mxu0 %v10204_v14 }
 0x599   :  { %6047 = vmatprep.subr.bf16.mxu0 %v6046_v25 }
 0x59b   :  { %4528 = vmatmul.mubr.f32.gmra.mrb[12].mxu0 %v10261_v17 }
 0x59c   :  { %4533 = vmatprep.mubr.f32.mxu0 %v10204_v14 }
 0x59f   :  { %4536 = vmatmul.mubr.f32.gmra.mrb[14].mxu0 %v10262_v4 }
 0x5a0   :  { %4614 = vmatprep.mubr.f32.mxu0 %v10204_v14 }
 0x5a3   :  { %4618 = vmatmul.mubr.f32.vlgmr.msra.gmra.mrb[8].mxu0 %v10263_v32 }
 0x5a4   :  { %6049 = vmatpush1.bf16.msra.mxu0 %v6048_v54  ;;  %4623 = vmatprep.mubr.f32.mxu0 %v10204_v14 }
 0x5a5   :  { %6051 = vmatprep.subr.bf16.mxu0 %v6050_v48 }
 0x5a7   :  { %4627 = vmatmul.mubr.f32.gmra.mrb[10].mxu0 %v10264_v56 }
 0x5a8   :  { %6053 = vmatpush1.bf16.msra.mxu0 %v6052_v30  ;;  %4632 = vmatprep.mubr.f32.mxu0 %v10204_v14 }
 0x5a9   :  { %6055 = vmatprep.subr.bf16.mxu0 %v9073_v38 }
 0x5ab   :  { %4636 = vmatmul.mubr.f32.gmra.mrb[12].mxu0 %v10265_v24 }
 0x5ac   :  { %4641 = vmatprep.mubr.f32.mxu0 %v10204_v14 }
 0x5af   :  { %4645 = vmatmul.mubr.f32.gmra.mrb[14].mxu0 %v10266_v52 }
 0x5b0   :  { %4739 = vmatprep.mubr.f32.mxu0 %v10204_v14 }
 0x5b3   :  { %4741 = vmatmul.mubr.f32.vlgmr.msra.gmra.mrb[8].mxu0 %v10255_v8 }
 0x5b4   :  { %6057 = vmatpush1.bf16.msra.mxu0 %v9106_v44  ;;  %4746 = vmatprep.mubr.f32.mxu0 %v10204_v14  ;;  %v10267_v44 = vld [vmem:[#allocation20_spill] sm:$0xff] }
 0x5b5   :  { %6059 = vmatprep.subr.bf16.mxu0 %v9193_v62 }
 0x5b7   :  { %4748 = vmatmul.mubr.f32.gmra.mrb[10].mxu0 %v10256_v1 }
 0x5b8   :  { %6061 = vmatpush1.bf16.msra.mxu0 %v9197_v21  ;;  %4753 = vmatprep.mubr.f32.mxu0 %v10204_v14 }
 0x5bb   :  { %4755 = vmatmul.mubr.f32.gmra.mrb[12].mxu0 %v10257_v18 }
 0x5bc   :  { %4760 = vmatprep.mubr.f32.mxu0 %v10204_v14 }
 0x5bf   :  { %4762 = vmatmul.mubr.f32.gmra.mrb[14].mxu0 %v10258_v50 }
 0x5c0   :  { %4840 = vmatprep.mubr.f32.mxu0 %v10204_v14 }
 0x5c3   :  { %4842 = vmatmul.mubr.f32.vlgmr.msra.gmra.mrb[8].mxu0 %v10255_v8 }
 0x5c4   :  { %4847 = vmatprep.mubr.f32.mxu0 %v10204_v14 }
 0x5c7   :  { %4849 = vmatmul.mubr.f32.gmra.mrb[10].mxu0 %v10256_v1 }
 0x5c8   :  { %4854 = vmatprep.mubr.f32.mxu0 %v10204_v14 }
 0x5cb   :  { %4856 = vmatmul.mubr.f32.gmra.mrb[12].mxu0 %v10257_v18 }
 0x5cc   :  { %4861 = vmatprep.mubr.f32.mxu0 %v10204_v14 }
 0x5cf   :  { %4863 = vmatmul.mubr.f32.gmra.mrb[14].mxu0 %v10258_v50 }
 0x696   :  { %v4843_v38 = vpop.f32.mrb[8].mxu0 }
 0x697   :  { %v9290_v2 = vadd.f32 %v4843_v38, %v10267_v44  ;;  %v4845_v28 = vpop.f32.mrb[9].mxu0 }
 0x698   :  { %v9293_v29 = vadd.f32 %v4845_v28, %v10267_v44 }
 0x699   :  { %v4869_v36 = vand.u32 2147483647, %v9290_v2  ;;  %v4872_v22 = vand.u32 2139095040, %v9290_v2 }
 0x69a   :  { %v4976_v3 = vand.u32 2139095040, %v9293_v29  ;;  %v4850_v46 = vpop.f32.mrb[10].mxu0 }
 0x69b   :  { %v4873_v57 = vshrl.u32 %v4872_v22, 23  ;;  %v9298_v35 = vpop.f32.mrb[11].mxu0  ;;  %v4876_v53 = vand.u32 8388607, %v4869_v36  ;;  %v9307_v21 = vadd.f32 %v4850_v46, %v10268_v42 }
 0x69c   :  { %v4977_v20 = vshrl.u32 %v4976_v3, 23 }
 0x69d   :  { %v5886_v14 = vadd.s32 4294967169, %v4873_v57  ;;  %v4877_v7 = vor.u32 8388608, %v4876_v53  ;;  %v5080_v19 = vand.u32 2139095040, %v9307_v21 }
 0x69e   :  { %v9302_v26 = vpop.f32.mrb[12].mxu0  ;;  %v5890_v31 = vadd.s32 4294967169, %v4977_v20 }
 0x69f   :  { %v4879_v27 = vadd.s32 1, %v5886_v14  ;;  %v9304_v62 = vpop.f32.mrb[13].mxu0  ;;  %v4917_v6 = vshll.u32 %v4877_v7, 8  ;;  %v5081_v1 = vshrl.u32 %v5080_v19, 23 }
 0x6a0   :  { %v4983_v61 = vadd.s32 1, %v5890_v31 }
 0x6a1   :  { %vm4880_vm9 = vcmp.gt.s32.totalorder %v4879_v27, 0  ;;  %v5894_v30 = vadd.s32 4294967169, %v5081_v1 }
 0x6a2   :  { %v4881_v60 = vsel %vm4880_vm9, %v4879_v27, 0  ;;  %v9309_v5 = vpop.f32.mrb[14].mxu0  ;;  %vm4984_vm10 = vcmp.gt.s32.totalorder %v4983_v61, 0 }
 0x6a3   :  { %v4883_v49 = vand.u32 31, %v4881_v60  ;;  %v9311_v63 = vpop.f32.mrb[15].mxu0  ;;  %v4882_v59 = vshrl.u32 %v4881_v60, 5  ;;  %v4985_v57 = vsel %vm4984_vm10, %v4983_v61, 0  ;;  %v5087_v53 = vadd.s32 1, %v5894_v30 }
 0x6a4   :  { %v4987_v7 = vand.u32 31, %v4985_v57  ;;  %v4973_v61 = vand.u32 2147483647, %v9293_v29 }
 0x6a5   :  { %v4884_v45 = vsub.s32 32, %v4883_v49  ;;  %v4886_v0 = vshll.u32 %v10169_v37, %v4883_v49  ;;  %v4889_v23 = vshll.u32 %v10170_v41, %v4883_v49  ;;  %v4892_v51 = vshll.u32 %v10141_v16, %v4883_v49 }
 0x6a6   :  { %v4895_v11 = vshll.u32 %v10124_v33, %v4883_v49  ;;  %v4898_v39 = vshll.u32 %v10128_v10, %v4883_v49  ;;  %vm4901_vm13 = vcmp.lt.s32.totalorder %v4882_v59, 1  ;;  %vm4904_vm5 = vcmp.lt.s32.totalorder %v4882_v59, 4 }
 0x6a7   :  { %v4887_v43 = vshrl.u32 %v10170_v41, %v4884_v45  ;;  %v4890_v47 = vshrl.u32 %v10141_v16, %v4884_v45  ;;  %v4893_v34 = vshrl.u32 %v10124_v33, %v4884_v45  ;;  %v4896_v40 = vshrl.u32 %v10128_v10, %v4884_v45 }
 0x6a8   :  { %v4899_v15 = vshrl.u32 %v10168_v55, %v4884_v45  ;;  %v4885_v17 = vshrl.u32 %v10169_v37, %v4884_v45  ;;  %vm4903_vm0 = vcmp.lt.s32.totalorder %v4882_v59, 3  ;;  %vm4902_vm8 = vcmp.lt.s32.totalorder %v4882_v59, 2 }
 0x6a9   :  { %v4888_v8 = vor.u32 %v4887_v43, %v4886_v0  ;;  %v4891_v13 = vor.u32 %v4890_v47, %v4889_v23  ;;  %v4894_v12 = vor.u32 %v4893_v34, %v4892_v51  ;;  %v4897_v18 = vor.u32 %v4896_v40, %v4895_v11 }
 0x6aa   :  { %v4900_v50 = vor.u32 %v4899_v15, %v4898_v39  ;;  %vm5088_vm11 = vcmp.gt.s32.totalorder %v5087_v53, 0  ;;  %v9335_v49 = vsub.s32 32, %v4987_v7  ;;  %v5077_v45 = vand.u32 2147483647, %v9307_v21 }
 0x6ab   :  { %v4906_v9 = vsel %vm4904_vm5, %v4894_v12, 2102212464  ;;  %v4909_v58 = vsel %vm4901_vm13, %v4888_v8, %v4891_v13  ;;  %v4913_v25 = vsel %vm4901_vm13, %v4891_v13, %v4894_v12  ;;  %v4910_v4 = vsel %vm4904_vm5, %v4897_v18, 920167782 }
 0x6ac   :  { %v4914_v54 = vsel %vm4904_vm5, %v4900_v50, 1326507024  ;;  %v4911_v32 = vsel %vm4903_vm0, %v4894_v12, %v4910_v4  ;;  %v4905_v56 = vsel %vm4901_vm13, %v4885_v17, %v4888_v8  ;;  %v4907_v24 = vsel %vm4903_vm0, %v4891_v13, %v4906_v9 }
 0x6ad   :  { %v4915_v48 = vsel %vm4903_vm0, %v4897_v18, %v4914_v54  ;;  %v4912_v52 = vsel %vm4902_vm8, %v4909_v58, %v4911_v32  ;;  %v4908_v46 = vsel %vm4902_vm8, %v4905_v56, %v4907_v24  ;;  %v5089_v19 = vsel %vm5088_vm11, %v5087_v53, 0 }
 0x6ae   :  { %v4916_v38 = vsel %vm4902_vm8, %v4913_v25, %v4915_v48  ;;  %v9328_v22 = vmul.u32.u64.low %v4917_v6, %v4912_v52  ;;  %v9329_v3 = vmul.u32.u64.high %v4917_v6, %v4912_v52, %v9328_v22  ;;  %v4924_v20 = vmul.u32 %v4917_v6, %v4908_v46 }
 0x6af   :  { %v9325_v44 = vmul.u32.u64.low %v4917_v6, %v4916_v38  ;;  %v9326_v28 = vmul.u32.u64.high %v4917_v6, %v4916_v38, %v9325_v44  ;;  %v9340_v59 = vadd.f32 %v9298_v35, %v10268_v42  ;;  %v5091_v23 = vand.u32 31, %v5089_v19 }
 0x6b0   :  { %v4927_v14 = vadd.s32 1, %v9329_v3  ;;  %v4991_v43 = vshrl.u32 %v10170_v41, %v9335_v49  ;;  %v9350_v47 = vand.u32 8388607, %v5077_v45  ;;  %v4994_v35 = vshrl.u32 %v10141_v16, %v9335_v49 }
 0x6b1   :  { %vm4926_vm6 = vc.u32 %v9326_v28, %v9328_v22  ;;  %v5184_v51 = vand.u32 2139095040, %v9340_v59  ;;  %v9355_v42 = vsub.s32 32, %v5091_v23  ;;  %v4990_v11 = vshll.u32 %v10169_v37, %v4987_v7 }
 0x6b2   :  { %v4928_v27 = vsel %vm4926_vm6, %v4927_v14, %v9329_v3  ;;  %v9360_v39 = vand.u32 8388607, %v4973_v61  ;;  %v4993_v15 = vshll.u32 %v10170_v41, %v4987_v7  ;;  %v9363_v8 = vshrl.u32 %v4985_v57, 5 }
 0x6b3   :  { %v4929_v60 = vadd.s32 %v4928_v27, %v4924_v20  ;;  %v9365_v13 = vor.u32 %v4991_v43, %v4990_v11  ;;  %v5085_v12 = vor.u32 8388608, %v9350_v47  ;;  %v9368_v1 = vshrl.u32 %v5184_v51, 23 }
 0x6b4   :  { %v9370_v50 = vor.u32 %v4994_v35, %v4993_v15  ;;  %v4996_v9 = vshll.u32 %v10141_v16, %v4987_v7  ;;  %v5104_v58 = vshrl.u32 %v10128_v10, %v9355_v42  ;;  %v4997_v25 = vshrl.u32 %v10124_v33, %v9335_v49 }
 0x6b5   :  { %v4930_v31 = vadd.s32 536870912, %v4929_v60  ;;  %v5000_v17 = vshrl.u32 %v10128_v10, %v9335_v49  ;;  %v5095_v4 = vshrl.u32 %v10170_v41, %v9355_v42  ;;  %v5098_v54 = vshrl.u32 %v10141_v16, %v9355_v42 }
 0x6b6   :  { %v5101_v48 = vshrl.u32 %v10124_v33, %v9355_v42  ;;  %v5103_v30 = vshll.u32 %v10124_v33, %v5091_v23  ;;  %v5107_v56 = vshrl.u32 %v10168_v55, %v9355_v42  ;;  %v5003_v24 = vshrl.u32 %v10168_v55, %v9335_v49 }
 0x6b7   :  { %v9342_v0 = vshrl.u32 %v4930_v31, 30  ;;  %v9390_v52 = vshrl.u32 %v5089_v19, 5  ;;  %v5094_v38 = vshll.u32 %v10169_v37, %v5091_v23  ;;  %v5097_v44 = vshll.u32 %v10170_v41, %v5091_v23 }
 0x6b8   :  { %v5100_v46 = vshll.u32 %v10141_v16, %v5091_v23  ;;  %v5105_v57 = vor.u32 %v5104_v58, %v5103_v30  ;;  %v5106_v14 = vshll.u32 %v10128_v10, %v5091_v23  ;;  %v4999_v53 = vshll.u32 %v10124_v33, %v4987_v7 }
 0x6b9   :  { %v4932_v6 = vshll.u32 %v9342_v0, 30  ;;  %v5002_v20 = vshll.u32 %v10128_v10, %v4987_v7  ;;  %v9398_v27 = vor.u32 %v5095_v4, %v5094_v38  ;;  %v4925_v31 = vadd.s32 %v9328_v22, %v9326_v28 }
 0x6ba   :  { %v5102_v19 = vor.u32 %v5101_v48, %v5100_v46  ;;  %v5001_v47 = vor.u32 %v5000_v17, %v4999_v53  ;;  %vm5112_vm1 = vcmp.lt.s32.totalorder %v9390_v52, 4  ;;  %vm5109_vm4 = vcmp.lt.s32.totalorder %v9390_v52, 1 }
 0x6bb   :  { %v4933_v34 = vsub.s32 %v4929_v60, %v4932_v6  ;;  %v9400_v60 = vor.u32 %v5098_v54, %v5097_v44  ;;  %v5108_v6 = vor.u32 %v5107_v56, %v5106_v14  ;;  %v5004_v51 = vor.u32 %v5003_v24, %v5002_v20 }
 0x6bc   :  { %v5118_v7 = vsel %vm5112_vm1, %v5105_v57, 920167782  ;;  %vm5008_vm2 = vcmp.lt.s32.totalorder %v9363_v8, 4  ;;  %vm5111_vm14 = vcmp.lt.s32.totalorder %v9390_v52, 3  ;;  %v4998_v58 = vor.u32 %v4997_v25, %v4996_v9 }
 0x6bd   :  { %v4935_v40 = vsub.s32 0, %v4933_v34  ;;  %v5117_v28 = vsel %vm5109_vm4, %v9398_v27, %v9400_v60  ;;  %v5119_v15 = vsel %vm5111_vm14, %v5102_v19, %v5118_v7  ;;  %v5018_v17 = vsel %vm5008_vm2, %v5004_v51, 1326507024 }
 0x6be   :  { %v5121_v4 = vsel %vm5109_vm4, %v9400_v60, %v5102_v19  ;;  %vm5110_vm12 = vcmp.lt.s32.totalorder %v9390_v52, 2  ;;  %v4981_v30 = vor.u32 8388608, %v9360_v39  ;;  %vm5005_vm15 = vcmp.lt.s32.totalorder %v9363_v8, 1 }
 0x6bf   :  { %v5887_v18 = vmin.u32 %v4935_v40, %v4933_v34  ;;  %v5120_v9 = vsel %vm5110_vm12, %v5117_v28, %v5119_v15  ;;  %v5125_v25 = vshll.u32 %v5085_v12, 8  ;;  %vm5007_vm3 = vcmp.lt.s32.totalorder %v9363_v8, 3 }
 0x6c0   :  { %v5013_v24 = vsel %vm5005_vm15, %v9365_v13, %v9370_v50  ;;  %v5017_v44 = vsel %vm5005_vm15, %v9370_v50, %v4998_v58  ;;  %v5019_v12 = vsel %vm5007_vm3, %v5001_v47, %v5018_v17  ;;  %vm5006_vm9 = vcmp.lt.s32.totalorder %v9363_v8, 2 }
 0x6c1   :  { %v4937_v32 = vclz %v5887_v18  ;;  %v5122_v18 = vsel %vm5112_vm1, %v5108_v6, 1326507024  ;;  %v9446_v14 = vmul.u32.u64.low %v5125_v25, %v5120_v9  ;;  %v9447_v53 = vmul.u32.u64.high %v5125_v25, %v5120_v9, %v9446_v14 }
 0x6c2   :  { %v5123_v48 = vsel %vm5111_vm14, %v5105_v57, %v5122_v18  ;;  %vm4871_vm13 = vcmp.lt.s32.totalorder %v9290_v2, 0  ;;  %v5114_v7 = vsel %vm5112_vm1, %v5102_v19, 2102212464  ;;  %vm9464_vm5 = vcmp.le.f32.partialorder %v4869_v36, 0.7853982 }
 0x6c3   :  { %v5888_v3 = vadd.s32 4294967294, %v4937_v32  ;;  %v5124_v38 = vsel %vm5110_vm12, %v5121_v4, %v5123_v48  ;;  %v5115_v4 = vsel %vm5111_vm14, %v9400_v60, %v5114_v7  ;;  %vm4961_vm6 = vweird.f32 %v9290_v2 }
 0x6c4   :  { %v5181_v8 = vand.u32 2147483647, %v9340_v59 }
 0x6c5   :  { %vm5889_vm7 = vcmp.lt.s32.totalorder %v5888_v3, 0 }
 0x6c6   :  { %v4940_v43 = vsel %vm5889_vm7, 0, %v5888_v3  ;;  %v5898_v3 = vadd.s32 4294967169, %v9368_v1  ;;  %v5020_v1 = vsel %vm5006_vm9, %v5017_v44, %v5019_v12 }
 0x6c7   :  { %v4941_v35 = vsub.s32 32, %v4940_v43  ;;  %v4945_v23 = vsub.s32 4294967266, %v4940_v43  ;;  %v4942_v11 = vshll.u32 %v4933_v34, %v4940_v43  ;;  %v5014_v34 = vsel %vm5008_vm2, %v5001_v47, 920167782 }
 0x6c8   :  { %v5015_v39 = vsel %vm5007_vm3, %v4998_v58, %v5014_v34  ;;  %v4955_v43 = vsub.s32 4, %v9342_v0  ;;  %v5021_v47 = vshll.u32 %v4981_v30, 8 }
 0x6c9   :  { %v4943_v22 = vshrl.u32 %v4925_v31, %v4941_v35  ;;  %v4946_v40 = vadd.s32 127, %v4945_v23  ;;  %v9451_v20 = vmul.u32.u64.low %v5125_v25, %v5124_v38  ;;  %v9452_v31 = vmul.u32.u64.high %v5125_v25, %v5124_v38, %v9451_v20 }
 0x6ca   :  { %v5016_v51 = vsel %vm5006_vm9, %v5013_v24, %v5015_v39  ;;  %v5191_v35 = vadd.s32 1, %v5898_v3  ;;  %v4956_v18 = vsel %vm4871_vm13, %v4955_v43, %v9342_v0 }
 0x6cb   :  { %v4944_v54 = vor.u32 %v4943_v22, %v4942_v11  ;;  %v4947_v32 = vshll.u32 %v4946_v40, 23  ;;  %v9468_v28 = vmul.u32.u64.low %v5021_v47, %v5016_v51  ;;  %v9469_v22 = vmul.u32.u64.high %v5021_v47, %v5016_v51, %v9468_v28 }
 0x6cc   :  { %v5093_v40 = vshrl.u32 %v10169_v37, %v9355_v42  ;;  %v9475_v34 = vmul.u32.u64.low %v5021_v47, %v5020_v1  ;;  %v9476_v17 = vmul.u32.u64.high %v5021_v47, %v5020_v1, %v9475_v34  ;;  %vm5192_vm10 = vcmp.gt.s32.totalorder %v5191_v35, 0 }
 0x6cd   :  { %v4948_v56 = vor.u32 4788187, %v4947_v32  ;;  %v4951_v57 = vcvt.s32.f32 %v4944_v54  ;;  %v5135_v42 = vadd.s32 1, %v9447_v53  ;;  %v4958_v0 = vsel %vm9464_vm5, 0, %v4956_v18 }
 0x6ce   :  { %v5113_v19 = vsel %vm5109_vm4, %v5093_v40, %v9398_v27  ;;  %v5010_v54 = vsel %vm5008_vm2, %v4998_v58, 2102212464  ;;  %vm5134_vm0 = vc.u32 %v9452_v31, %v9446_v14  ;;  %v4989_v27 = vshrl.u32 %v10169_v37, %v9335_v49  ;;  %v10271_v49 = vld [vmem:[#allocation22_spill] sm:$0xff] }
 0x6cf   :  { %v4949_v46 = vand.u32 2147483647, %v4948_v56  ;;  %v5116_v60 = vsel %vm5110_vm12, %v5113_v19, %v5115_v4  ;;  %v5193_v32 = vsel %vm5192_vm10, %v5191_v35, 0  ;;  %v4962_v48 = vadd.s32 3, %v4958_v0 }
 0x6d0   :  { %v5009_v30 = vsel %vm5005_vm15, %v4989_v27, %v9365_v13  ;;  %v5011_v9 = vsel %vm5007_vm3, %v9370_v50, %v5010_v54  ;;  %v5136_v58 = vsel %vm5134_vm0, %v5135_v42, %v9447_v53  ;;  %v5031_v56 = vadd.s32 1, %v9469_v22 }
 0x6d1   :  { %v4952_v6 = vmul.f32 %v4951_v57, %v4949_v46  ;;  %v5132_v24 = vmul.u32 %v5125_v25, %v5116_v60  ;;  %v5195_v38 = vand.u32 31, %v5193_v32  ;;  %vm5030_vm8 = vc.u32 %v9476_v17, %v9468_v28 }
 0x6d2   :  { %v9510_v52 = vadd.f32 %v9302_v26, %v10271_v49  ;;  %v5012_v13 = vsel %vm5006_vm9, %v5009_v30, %v5011_v9  ;;  %v4963_v44 = vand.u32 3, %v4962_v48  ;;  %v5032_v50 = vsel %vm5030_vm8, %v5031_v56, %v9469_v22 }
 0x6d3   :  { %v4953_v23 = vxor.u32 2147483648, %v4952_v6  ;;  %v5137_v39 = vadd.s32 %v5136_v58, %v5132_v24  ;;  %v9515_v12 = vsub.s32 32, %v5195_v38  ;;  %v5028_v46 = vmul.u32 %v5021_v47, %v5012_v13 }
 0x6d4   :  { %v5288_v25 = vand.u32 2139095040, %v9510_v52  ;;  %vm4968_vm11 = vcmp.eq.s32.totalorder %v4963_v44, 2  ;;  %vm4964_vm7 = vcmp.lt.s32.totalorder %v4963_v44, 2  ;;  %vm4965_vm1 = vcmp.eq.s32.totalorder %v4963_v44, 0 }
 0x6d5   :  { %v4954_v15 = vsel %vm4871_vm13, %v4953_v23, %v4952_v6  ;;  %v5138_v20 = vadd.s32 536870912, %v5137_v39  ;;  %v9519_v6 = vadd.s32 %v5032_v50, %v5028_v46  ;;  %v5208_v51 = vshrl.u32 %v10128_v10, %v9515_v12 }
 0x6d6   :  { %v4957_v36 = vsel %vm9464_vm5, %v9290_v2, %v4954_v15  ;;  %v9524_v47 = vshrl.u32 %v5193_v32, 5  ;;  %v5211_v35 = vshrl.u32 %v10168_v55, %v9515_v12  ;;  %v5289_v23 = vshrl.u32 %v5288_v25, 23 }
 0x6d7   :  { %6456 = vcosq.f32 %v4957_v36  ;;  %v9528_v11 = vshrl.u32 %v5138_v20, 30  ;;  %v5199_v22 = vshrl.u32 %v10170_v41, %v9515_v12  ;;  %v5207_v40 = vshll.u32 %v10124_v33, %v5195_v38 }
 0x6d8   :  { %6458 = vsinq.f32 %v4957_v36  ;;  %v5202_v18 = vshrl.u32 %v10141_v16, %v9515_v12  ;;  %v5205_v34 = vshrl.u32 %v10124_v33, %v9515_v12  ;;  %v5210_v36 = vshll.u32 %v10128_v10, %v5195_v38 }
 0x6d9   :  { %v5034_v19 = vadd.s32 536870912, %v9519_v6  ;;  %v5188_v4 = vand.u32 8388607, %v5181_v8  ;;  %v5209_v42 = vor.u32 %v5208_v51, %v5207_v40  ;;  %v5902_v0 = vadd.s32 4294967169, %v5289_v23 }
 0x6da   :  { %v5198_v54 = vshll.u32 %v10169_v37, %v5195_v38  ;;  %v5201_v2 = vshll.u32 %v10170_v41, %v5195_v38  ;;  %v5204_v27 = vshll.u32 %v10141_v16, %v5195_v38  ;;  %v5212_v60 = vor.u32 %v5211_v35, %v5210_v36 }
 0x6db   :  { %v5140_v32 = vshll.u32 %v9528_v11, 30  ;;  %v5295_v48 = vadd.s32 1, %v5902_v0  ;;  %vm5216_vm4 = vcmp.lt.s32.totalorder %v9524_v47, 4  ;;  %v9558_v24 = vshrl.u32 %v5034_v19, 30 }
 0x6dc   :  { %v9549_v30 = vor.u32 %v5199_v22, %v5198_v54  ;;  %v9551_v9 = vor.u32 %v5202_v18, %v5201_v2  ;;  %v9553_v58 = vor.u32 %v5205_v34, %v5204_v27  ;;  %v5222_v56 = vsel %vm5216_vm4, %v5209_v42, 920167782 }
 0x6dd   :  { %vm5296_vm2 = vcmp.gt.s32.totalorder %v5295_v48, 0  ;;  %v5189_v13 = vor.u32 8388608, %v5188_v4  ;;  %v5226_v38 = vsel %vm5216_vm4, %v5212_v60, 1326507024  ;;  %v9562_v44 = vsub.s32 %v5137_v39, %v5140_v32 }
 0x6de   :  { %vm5213_vm14 = vcmp.lt.s32.totalorder %v9524_v47, 1  ;;  %vm5215_vm12 = vcmp.lt.s32.totalorder %v9524_v47, 3  ;;  %v5297_v50 = vsel %vm5296_vm2, %v5295_v48, 0  ;;  %v5285_v25 = vand.u32 2147483647, %v9510_v52 }
 0x6df   :  { %v5223_v46 = vsel %vm5215_vm12, %v9553_v58, %v5222_v56  ;;  %v5225_v39 = vsel %vm5213_vm14, %v9551_v9, %v9553_v58  ;;  %v5036_v20 = vshll.u32 %v9558_v24, 30  ;;  %vm5214_vm15 = vcmp.lt.s32.totalorder %v9524_v47, 2 }
 0x6e0   :  { %v5298_v22 = vshrl.u32 %v5297_v50, 5 }
 0x6e1   :  { %v6457_v3 = vpop.eup %6456 }
 0x6e2   :  { %v6459_v57 = vpop.eup %6458  ;;  %v4969_v53 = vxor.u32 2147483648, %v6457_v3  ;;  %vm5317_vm3 = vcmp.lt.s32.totalorder %v5298_v22, 1  ;;  %vm5319_vm9 = vcmp.lt.s32.totalorder %v5298_v22, 3  ;;  %vm5320_vm13 = vcmp.lt.s32.totalorder %v5298_v22, 4 }
 0x6e3   :  { %v4966_v26 = vxor.u32 2147483648, %v6459_v57  ;;  %vm5318_vm5 = vcmp.lt.s32.totalorder %v5298_v22, 2 }
 0x6e4   :  { %v4970_v43 = vsel %vm4968_vm11, %v4969_v53, %v6459_v57  ;;  %v5227_v57 = vsel %vm5215_vm12, %v5209_v42, %v5226_v38  ;;  %v5299_v53 = vand.u32 31, %v5297_v50  ;;  %v9615_v50 = vsub.s32 %v9519_v6, %v5036_v20 }
 0x6e5   :  { %v4967_v1 = vsel %vm4965_vm1, %v6457_v3, %v4966_v26  ;;  %v5221_v3 = vsel %vm5213_vm14, %v9549_v30, %v9551_v9  ;;  %v9584_v26 = vadd.f32 %v9304_v62, %v10271_v49  ;;  %v5228_v23 = vsel %vm5214_vm15, %v5225_v39, %v5227_v57 }
 0x6e6   :  { %v4971_v7 = vsel %vm4964_vm7, %v4967_v1, %v4970_v43  ;;  %v5143_v43 = vsub.s32 0, %v9562_v44  ;;  %v5224_v51 = vsel %vm5214_vm15, %v5221_v3, %v5223_v46  ;;  %v9589_v1 = vshll.u32 %v5189_v13, 8 }
 0x6e7   :  { %v9535_v15 = vsel %vm4961_vm6, nan, %v4971_v7  ;;  %v5300_v35 = vsub.s32 32, %v5299_v53  ;;  %v5292_v7 = vand.u32 8388607, %v5285_v25  ;;  %v5302_v40 = vshll.u32 %v10169_v37, %v5299_v53 }
 0x6e8   :  { %v5305_v49 = vshll.u32 %v10170_v41, %v5299_v53  ;;  %v5308_v34 = vshll.u32 %v10141_v16, %v5299_v53  ;;  %v5311_v19 = vshll.u32 %v10124_v33, %v5299_v53  ;;  %v5314_v27 = vshll.u32 %v10128_v10, %v5299_v53 }
 0x6e9   :  { %v5303_v62 = vshrl.u32 %v10170_v41, %v5300_v35  ;;  %v5306_v18 = vshrl.u32 %v10141_v16, %v5300_v35  ;;  %v5309_v36 = vshrl.u32 %v10124_v33, %v5300_v35  ;;  %v5312_v4 = vshrl.u32 %v10128_v10, %v5300_v35 }
 0x6ea   :  { %v5315_v42 = vshrl.u32 %v10168_v55, %v5300_v35  ;;  %v9605_v0 = vmul.u32.u64.low %v9589_v1, %v5228_v23  ;;  %v9606_v54 = vmul.u32.u64.high %v9589_v1, %v5228_v23, %v9605_v0  ;;  %v5293_v3 = vor.u32 8388608, %v5292_v7 }
 0x6eb   :  { %v5304_v2 = vor.u32 %v5303_v62, %v5302_v40  ;;  %v5307_v60 = vor.u32 %v5306_v18, %v5305_v49  ;;  %v5310_v32 = vor.u32 %v5309_v36, %v5308_v34  ;;  %v5313_v48 = vor.u32 %v5312_v4, %v5311_v19 }
 0x6ec   :  { %v9610_v56 = vmul.u32.u64.low %v9589_v1, %v5224_v51  ;;  %v9611_v13 = vmul.u32.u64.high %v9589_v1, %v5224_v51, %v9610_v56  ;;  %v5316_v38 = vor.u32 %v5315_v42, %v5314_v27  ;;  %v5392_v46 = vand.u32 2139095040, %v9584_v26 }
 0x6ed   :  { %v5895_v39 = vmin.u32 %v5143_v43, %v9562_v44  ;;  %v5325_v57 = vsel %vm5317_vm3, %v5304_v2, %v5307_v60  ;;  %v5322_v53 = vsel %vm5320_vm13, %v5310_v32, 2102212464  ;;  %v5326_v23 = vsel %vm5320_vm13, %v5313_v48, 920167782 }
 0x6ee   :  { %v5330_v40 = vsel %vm5320_vm13, %v5316_v38, 1326507024  ;;  %v5301_v51 = vshrl.u32 %v10169_v37, %v5300_v35  ;;  %v5327_v62 = vsel %vm5319_vm9, %v5310_v32, %v5326_v23  ;;  %v5329_v6 = vsel %vm5317_vm3, %v5307_v60, %v5310_v32 }
 0x6ef   :  { %v5328_v20 = vsel %vm5318_vm5, %v5325_v57, %v5327_v62  ;;  %v5331_v7 = vsel %vm5319_vm9, %v5313_v48, %v5330_v40  ;;  %v5333_v49 = vshll.u32 %v5293_v3, 8  ;;  %v5393_v43 = vshrl.u32 %v5392_v46, 23 }
 0x6f0   :  { %v5039_v18 = vsub.s32 0, %v9615_v50  ;;  %v5145_v34 = vclz %v5895_v39  ;;  %v5321_v36 = vsel %vm5317_vm3, %v5301_v51, %v5304_v2  ;;  %v5323_v19 = vsel %vm5319_vm9, %v5307_v60, %v5322_v53 }
 0x6f1   :  { %v5332_v35 = vsel %vm5318_vm5, %v5329_v6, %v5331_v7  ;;  %v9629_v4 = vmul.u32.u64.low %v5333_v49, %v5328_v20  ;;  %v9630_v42 = vmul.u32.u64.high %v5333_v49, %v5328_v20, %v9629_v4  ;;  %v5906_v0 = vadd.s32 4294967169, %v5393_v43 }
 0x6f2   :  { %v5197_v27 = vshrl.u32 %v10169_v37, %v9515_v12  ;;  %v5218_v32 = vsel %vm5216_vm4, %v9553_v58, 2102212464  ;;  %v9638_v48 = vmul.u32.u64.low %v5333_v49, %v5332_v35  ;;  %v9639_v38 = vmul.u32.u64.high %v5333_v49, %v5332_v35, %v9638_v48 }
 0x6f3   :  { %v5399_v2 = vadd.s32 1, %v5906_v0  ;;  %v5324_v3 = vsel %vm5318_vm5, %v5321_v36, %v5323_v19  ;;  %v5896_v46 = vadd.s32 4294967294, %v5145_v34  ;;  %v5219_v39 = vsel %vm5215_vm12, %v9551_v9, %v5218_v32 }
 0x6f4   :  { %v5217_v60 = vsel %vm5213_vm14, %v5197_v27, %v9549_v30  ;;  %v5343_v12 = vadd.s32 1, %v9630_v42  ;;  %v5891_v58 = vmin.u32 %v5039_v18, %v9615_v50  ;;  %v5239_v57 = vadd.s32 1, %v9611_v13 }
 0x6f5   :  { %vm5400_vm10 = vcmp.gt.s32.totalorder %v5399_v2, 0  ;;  %vm5238_vm0 = vc.u32 %v9606_v54, %v9610_v56  ;;  %v5340_v53 = vmul.u32 %v5333_v49, %v5324_v3  ;;  %vm5342_vm8 = vc.u32 %v9639_v38, %v9629_v4 }
 0x6f6   :  { %v5401_v30 = vsel %vm5400_vm10, %v5399_v2, 0  ;;  %v5220_v22 = vsel %vm5214_vm15, %v5217_v60, %v5219_v39  ;;  %v5344_v9 = vsel %vm5342_vm8, %v5343_v12, %v9630_v42  ;;  %vm5897_vm6 = vcmp.lt.s32.totalorder %v5896_v46, 0 }
 0x6f7   :  { %v5345_v23 = vadd.s32 %v5344_v9, %v5340_v53  ;;  %v5403_v40 = vand.u32 31, %v5401_v30  ;;  %v5240_v51 = vsel %vm5238_vm0, %v5239_v57, %v9611_v13  ;;  %v5041_v62 = vclz %v5891_v58 }
 0x6f8   :  { %v5236_v6 = vmul.u32 %v9589_v1, %v5220_v22  ;;  %v9660_v49 = vsel %vm5897_vm6, 0, %v5896_v46  ;;  %v10119_v43 = vand.u32 2147483647, %v9584_v26  ;;  %v5402_v60 = vshrl.u32 %v5401_v30, 5 }
 0x6f9   :  { %v5346_v20 = vadd.s32 536870912, %v5345_v23  ;;  %v5404_v7 = vsub.s32 32, %v5403_v40  ;;  %v5892_v35 = vadd.s32 4294967294, %v5041_v62  ;;  %v5153_v13 = vsub.s32 4294967266, %v9660_v49 }
 0x6fa   :  { %v5241_v18 = vadd.s32 %v5240_v51, %v5236_v6  ;;  %v5406_v1 = vshll.u32 %v10169_v37, %v5403_v40  ;;  %v5396_v0 = vand.u32 8388607, %v10119_v43  ;;  %v5409_v27 = vshll.u32 %v10170_v41, %v5403_v40 }
 0x6fb   :  { %v5407_v47 = vshrl.u32 %v10170_v41, %v5404_v7  ;;  %v5410_v34 = vshrl.u32 %v10141_v16, %v5404_v7  ;;  %v5413_v36 = vshrl.u32 %v10124_v33, %v5404_v7  ;;  %v5416_v19 = vshrl.u32 %v10128_v10, %v5404_v7 }
 0x6fc   :  { %v9668_v42 = vshrl.u32 %v5346_v20, 30  ;;  %v5412_v32 = vshll.u32 %v10141_v16, %v5403_v40  ;;  %v5415_v48 = vshll.u32 %v10124_v33, %v5403_v40  ;;  %v5242_v2 = vadd.s32 536870912, %v5241_v18 }
 0x6fd   :  { %v5408_v3 = vor.u32 %v5407_v47, %v5406_v1  ;;  %v5419_v46 = vshrl.u32 %v10168_v55, %v5404_v7  ;;  %v5411_v39 = vor.u32 %v5410_v34, %v5409_v27  ;;  %v5418_v57 = vshll.u32 %v10128_v10, %v5403_v40  ;;  %v10272_v47 = vld [vmem:[#allocation23_spill] sm:$0xff] }
 0x6fe   :  { %v5414_v12 = vor.u32 %v5413_v36, %v5412_v32  ;;  %v5417_v58 = vor.u32 %v5416_v19, %v5415_v48  ;;  %v5348_v53 = vshll.u32 %v9668_v42, 30  ;;  %vm5893_vm11 = vcmp.lt.s32.totalorder %v5892_v35, 0 }
 0x6ff   :  { %v5397_v22 = vor.u32 8388608, %v5396_v0  ;;  %v5420_v9 = vor.u32 %v5419_v46, %v5418_v57  ;;  %v5154_v51 = vadd.s32 127, %v5153_v13  ;;  %v9679_v62 = vshrl.u32 %v5242_v2, 30 }
 0x700   :  { %vm5421_vm7 = vcmp.lt.s32.totalorder %v5402_v60, 1  ;;  %vm5424_vm1 = vcmp.lt.s32.totalorder %v5402_v60, 4  ;;  %v9683_v34 = vadd.f32 %v9309_v5, %v10272_v47  ;;  %v9685_v36 = vsub.s32 %v5345_v23, %v5348_v53 }
 0x701   :  { %v5426_v6 = vsel %vm5424_vm1, %v5414_v12, 2102212464  ;;  %v5429_v30 = vsel %vm5421_vm7, %v5408_v3, %v5411_v39  ;;  %v5430_v20 = vsel %vm5424_vm1, %v5417_v58, 920167782  ;;  %v5405_v40 = vshrl.u32 %v10169_v37, %v5404_v7 }
 0x702   :  { %vm5423_vm4 = vcmp.lt.s32.totalorder %v5402_v60, 3  ;;  %v5433_v19 = vsel %vm5421_vm7, %v5411_v39, %v5414_v12  ;;  %vm5422_vm2 = vcmp.lt.s32.totalorder %v5402_v60, 2  ;;  %v5434_v13 = vsel %vm5424_vm1, %v5420_v9, 1326507024 }
 0x703   :  { %v5431_v1 = vsel %vm5423_vm4, %v5414_v12, %v5430_v20  ;;  %v5437_v0 = vshll.u32 %v5397_v22, 8  ;;  %v5425_v27 = vsel %vm5421_vm7, %v5405_v40, %v5408_v3  ;;  %v5427_v32 = vsel %vm5423_vm4, %v5411_v39, %v5426_v6 }
 0x704   :  { %v5432_v48 = vsel %vm5422_vm2, %v5429_v30, %v5431_v1  ;;  %v5435_v2 = vsel %vm5423_vm4, %v5417_v58, %v5434_v13  ;;  %v5244_v46 = vshll.u32 %v9679_v62, 30  ;;  %v5149_v23 = vsub.s32 32, %v9660_v49 }
 0x705   :  { %v5436_v57 = vsel %vm5422_vm2, %v5433_v19, %v5435_v2  ;;  %v9689_v43 = vmul.u32.u64.low %v5437_v0, %v5432_v48  ;;  %v9690_v5 = vmul.u32.u64.high %v5437_v0, %v5432_v48, %v9689_v43  ;;  %v5351_v7 = vsub.s32 0, %v9685_v36 }
 0x706   :  { %v9695_v53 = vmul.u32.u64.low %v5437_v0, %v5436_v57  ;;  %v9696_v60 = vmul.u32.u64.high %v5437_v0, %v5436_v57, %v9695_v53  ;;  %v5428_v12 = vsel %vm5422_vm2, %v5425_v27, %v5427_v32  ;;  %v5496_v3 = vand.u32 2139095040, %v9683_v34 }
 0x707   :  { %v5044_v39 = vsel %vm5893_vm11, 0, %v5892_v35  ;;  %v5133_v58 = vadd.s32 %v9446_v14, %v9452_v31  ;;  %v5155_v22 = vshll.u32 %v5154_v51, 23  ;;  %v9702_v9 = vsub.s32 %v5241_v18, %v5244_v46 }
 0x708   :  { %v5447_v6 = vadd.s32 1, %v9690_v5  ;;  %v5497_v30 = vshrl.u32 %v5496_v3, 23  ;;  %v5903_v40 = vmin.u32 %v5351_v7, %v9685_v36  ;;  %v5444_v19 = vmul.u32 %v5437_v0, %v5428_v12 }
 0x709   :  { %v5151_v20 = vshrl.u32 %v5133_v58, %v5149_v23  ;;  %vm5446_vm14 = vc.u32 %v9696_v60, %v9689_v43  ;;  %v5045_v35 = vsub.s32 32, %v5044_v39  ;;  %v5049_v27 = vsub.s32 4294967266, %v5044_v39 }
 0x70a   :  { %v5448_v1 = vsel %vm5446_vm14, %v5447_v6, %v9690_v5  ;;  %v5910_v13 = vadd.s32 4294967169, %v5497_v30  ;;  %v5150_v14 = vshll.u32 %v9562_v44, %v9660_v49  ;;  %v5156_v18 = vor.u32 4788187, %v5155_v22 }
 0x70b   :  { %v5449_v31 = vadd.s32 %v5448_v1, %v5444_v19  ;;  %v5247_v51 = vsub.s32 0, %v9702_v9  ;;  %v5029_v48 = vadd.s32 %v9468_v28, %v9476_v17  ;;  %v5353_v2 = vclz %v5903_v40 }
 0x70c   :  { %v5503_v32 = vadd.s32 1, %v5910_v13  ;;  %v5152_v0 = vor.u32 %v5151_v20, %v5150_v14  ;;  %v9716_v57 = vadd.f32 %v9311_v63, %v10272_v47  ;;  %v5050_v23 = vadd.s32 127, %v5049_v27 }
 0x70d   :  { %v5450_v46 = vadd.s32 536870912, %v5449_v31  ;;  %v5047_v5 = vshrl.u32 %v5029_v48, %v5045_v35  ;;  %v5157_v49 = vand.u32 2147483647, %v5156_v18  ;;  %v5899_v53 = vmin.u32 %v5247_v51, %v9702_v9 }
 0x70e   :  { %vm5504_vm12 = vcmp.gt.s32.totalorder %v5503_v32, 0  ;;  %v5046_v3 = vshll.u32 %v9615_v50, %v5044_v39  ;;  %v5159_v28 = vcvt.s32.f32 %v5152_v0  ;;  %v5904_v17 = vadd.s32 4294967294, %v5353_v2 }
 0x70f   :  { %v9718_v7 = vshrl.u32 %v5450_v46, 30  ;;  %v5505_v44 = vsel %vm5504_vm12, %v5503_v32, 0  ;;  %v10121_v22 = vand.u32 2147483647, %v9683_v34  ;;  %v5600_v63 = vand.u32 2139095040, %v9716_v57 }
 0x710   :  { %v5507_v12 = vand.u32 31, %v5505_v44  ;;  %v9725_v47 = vor.u32 %v5047_v5, %v5046_v3  ;;  %v5051_v30 = vshll.u32 %v5050_v23, 23  ;;  %v9727_v20 = vmul.f32 %v5159_v28, %v5157_v49 }
 0x711   :  { %v5452_v58 = vshll.u32 %v9718_v7, 30  ;;  %v5249_v40 = vclz %v5899_v53  ;;  %vm5905_vm15 = vcmp.lt.s32.totalorder %v5904_v17, 0  ;;  %v5500_v27 = vand.u32 8388607, %v10121_v22 }
 0x712   :  { %v5508_v6 = vsub.s32 32, %v5507_v12  ;;  %v5510_v50 = vshll.u32 %v10169_v37, %v5507_v12  ;;  %v5513_v39 = vshll.u32 %v10170_v41, %v5507_v12  ;;  %v5516_v14 = vshll.u32 %v10141_v16, %v5507_v12 }
 0x713   :  { %v9734_v35 = vsub.s32 %v5449_v31, %v5452_v58  ;;  %v5601_v18 = vshrl.u32 %v5600_v63, 23  ;;  %v5506_v51 = vshrl.u32 %v5505_v44, 5  ;;  %v5519_v0 = vshll.u32 %v10124_v33, %v5507_v12 }
 0x714   :  { %v5511_v19 = vshrl.u32 %v10170_v41, %v5508_v6  ;;  %v5514_v1 = vshrl.u32 %v10141_v16, %v5508_v6  ;;  %v5517_v13 = vshrl.u32 %v10124_v33, %v5508_v6  ;;  %v5520_v46 = vshrl.u32 %v10128_v10, %v5508_v6 }
 0x715   :  { %v5522_v5 = vshll.u32 %v10128_v10, %v5507_v12  ;;  %v5523_v23 = vshrl.u32 %v10168_v55, %v5508_v6  ;;  %v9743_v31 = vor.u32 4788187, %v5051_v30  ;;  %v5161_v49 = vxor.u32 2147483648, %v9727_v20 }
 0x716   :  { %v5512_v32 = vor.u32 %v5511_v19, %v5510_v50  ;;  %v5515_v48 = vor.u32 %v5514_v1, %v5513_v39  ;;  %v5518_v2 = vor.u32 %v5517_v13, %v5516_v14  ;;  %v5900_v53 = vadd.s32 4294967294, %v5249_v40 }
 0x717   :  { %v9747_v3 = vsel %vm5905_vm15, 0, %v5904_v17  ;;  %v5455_v44 = vsub.s32 0, %v9734_v35  ;;  %v5501_v28 = vor.u32 8388608, %v5500_v27  ;;  %v5521_v58 = vor.u32 %v5520_v46, %v5519_v0 }
 0x718   :  { %v5524_v63 = vor.u32 %v5523_v23, %v5522_v5  ;;  %vm5079_vm3 = vcmp.lt.s32.totalorder %v9307_v21, 0  ;;  %vm5525_vm9 = vcmp.lt.s32.totalorder %v5506_v51, 1  ;;  %vm5527_vm13 = vcmp.lt.s32.totalorder %v5506_v51, 3 }
 0x719   :  { %vm5528_vm5 = vcmp.lt.s32.totalorder %v5506_v51, 4  ;;  %v5914_v12 = vadd.s32 4294967169, %v5601_v18  ;;  %v5533_v30 = vsel %vm5525_vm9, %v5512_v32, %v5515_v48  ;;  %v5537_v40 = vsel %vm5525_vm9, %v5515_v48, %v5518_v2 }
 0x71a   :  { %v5530_v19 = vsel %vm5528_vm5, %v5518_v2, 2102212464  ;;  %v5534_v1 = vsel %vm5528_vm5, %v5521_v58, 920167782  ;;  %v5509_v17 = vshrl.u32 %v10169_v37, %v5508_v6  ;;  %vm5526_vm10 = vcmp.lt.s32.totalorder %v5506_v51, 2 }
 0x71b   :  { %v5535_v50 = vsel %vm5527_vm13, %v5518_v2, %v5534_v1  ;;  %v5538_v39 = vsel %vm5528_vm5, %v5524_v63, 1326507024  ;;  %vm4975_vm0 = vcmp.lt.s32.totalorder %v9293_v29, 0  ;;  %v5907_v13 = vmin.u32 %v5455_v44, %v9734_v35 }
 0x71c   :  { %v5536_v27 = vsel %vm5526_vm10, %v5533_v30, %v5535_v50  ;;  %v5539_v14 = vsel %vm5527_vm13, %v5521_v58, %v5538_v39  ;;  %v5541_v18 = vshll.u32 %v5501_v28, 8  ;;  %v5361_v0 = vsub.s32 4294967266, %v9747_v3 }
 0x71d   :  { %v5529_v46 = vsel %vm5525_vm9, %v5509_v17, %v5512_v32  ;;  %v5531_v5 = vsel %vm5527_vm13, %v5515_v48, %v5530_v19  ;;  %v5540_v6 = vsel %vm5526_vm10, %v5537_v40, %v5539_v14  ;;  %v5059_v44 = vsub.s32 4, %v9558_v24 }
 0x71e   :  { %v9763_v23 = vmul.u32.u64.low %v5541_v18, %v5540_v6  ;;  %v9764_v2 = vmul.u32.u64.high %v5541_v18, %v5540_v6, %v9763_v23  ;;  %v9766_v63 = vmul.u32.u64.low %v5541_v18, %v5536_v27  ;;  %v9767_v1 = vmul.u32.u64.high %v5541_v18, %v5536_v27, %v9766_v63 }
 0x71f   :  { %vm9773_vm8 = vcmp.le.f32.partialorder %v5077_v45, 0.7853982  ;;  %v5357_v32 = vsub.s32 32, %v9747_v3  ;;  %v5607_v48 = vadd.s32 1, %v5914_v12  ;;  %v5055_v58 = vcvt.s32.f32 %v9725_v47 }
 0x720   :  { %vm5901_vm6 = vcmp.lt.s32.totalorder %v5900_v53, 0  ;;  %v5457_v19 = vclz %v5907_v13  ;;  %v5532_v30 = vsel %vm5526_vm10, %v5529_v46, %v5531_v5  ;;  %v5053_v40 = vand.u32 2147483647, %v9743_v31 }
 0x721   :  { %v5341_v17 = vadd.s32 %v9629_v4, %v9639_v38  ;;  %v5362_v50 = vadd.s32 127, %v5361_v0  ;;  %vm5608_vm11 = vcmp.gt.s32.totalorder %v5607_v48, 0  ;;  %v5162_v45 = vsel %vm5079_vm3, %v5161_v49, %v9727_v20 }
 0x722   :  { %v5163_v39 = vsub.s32 4, %v9528_v11  ;;  %vm5550_vm7 = vc.u32 %v9764_v2, %v9766_v63  ;;  %v5551_v47 = vadd.s32 1, %v9767_v1  ;;  %v9790_v51 = vsel %vm5901_vm6, 0, %v5900_v53 }
 0x723   :  { %v5359_v12 = vshrl.u32 %v5341_v17, %v5357_v32  ;;  %v5548_v31 = vmul.u32 %v5541_v18, %v5532_v30  ;;  %v5609_v13 = vsel %vm5608_vm11, %v5607_v48, 0  ;;  %v5908_v27 = vadd.s32 4294967294, %v5457_v19 }
 0x724   :  { %v5552_v4 = vsel %vm5550_vm7, %v5551_v47, %v9767_v1  ;;  %v10120_v38 = vand.u32 2147483647, %v9716_v57  ;;  %v5611_v14 = vand.u32 31, %v5609_v13  ;;  %v9797_v20 = vsel %vm4975_vm0, %v5059_v44, %v9558_v24 }
 0x725   :  { %v5358_v49 = vshll.u32 %v9685_v36, %v9747_v3  ;;  %v5363_v0 = vshll.u32 %v5362_v50, 23  ;;  %v5553_v53 = vadd.s32 %v5552_v4, %v5548_v31  ;;  %v9801_v46 = vmul.f32 %v5055_v58, %v5053_v40 }
 0x726   :  { %v9806_v18 = vsel %vm5079_vm3, %v5163_v39, %v9528_v11  ;;  %v9810_v5 = vadd.s32 %v9610_v56, %v9606_v54  ;;  %v5612_v6 = vsub.s32 32, %v5611_v14  ;;  %v9815_v24 = vsel %vm9773_vm8, %v9307_v21, %v5162_v45 }
 0x727   :  { %v5257_v36 = vsub.s32 4294967266, %v9790_v51  ;;  %v5360_v3 = vor.u32 %v5359_v12, %v5358_v49  ;;  %v5554_v23 = vadd.s32 536870912, %v5553_v53  ;;  %vm5909_vm1 = vcmp.lt.s32.totalorder %v5908_v27, 0 }
 0x728   :  { %v5604_v1 = vand.u32 8388607, %v10120_v38  ;;  %v5615_v11 = vshrl.u32 %v10170_v41, %v5612_v6  ;;  %v5618_v44 = vshrl.u32 %v10141_v16, %v5612_v6  ;;  %v5364_v54 = vor.u32 4788187, %v5363_v0 }
 0x729   :  { %v9822_v56 = vshrl.u32 %v5554_v23, 30  ;;  %v5621_v32 = vshrl.u32 %v10124_v33, %v5612_v6  ;;  %v5624_v48 = vshrl.u32 %v10128_v10, %v5612_v6  ;;  %v5614_v58 = vshll.u32 %v10169_v37, %v5611_v14 }
 0x72a   :  { %v5617_v19 = vshll.u32 %v10170_v41, %v5611_v14  ;;  %v5623_v30 = vshll.u32 %v10124_v33, %v5611_v14  ;;  %v5627_v40 = vshrl.u32 %v10168_v55, %v5612_v6  ;;  %v9830_v17 = vsel %vm5909_vm1, 0, %v5908_v27 }
 0x72b   :  { %v5556_v50 = vshll.u32 %v9822_v56, 30  ;;  %v5610_v45 = vshrl.u32 %v5609_v13, 5  ;;  %v5620_v39 = vshll.u32 %v10141_v16, %v5611_v14  ;;  %v5616_v47 = vor.u32 %v5615_v11, %v5614_v58 }
 0x72c   :  { %v5619_v12 = vor.u32 %v5618_v44, %v5617_v19  ;;  %v5625_v31 = vor.u32 %v5624_v48, %v5623_v30  ;;  %v5626_v4 = vshll.u32 %v10128_v10, %v5611_v14  ;;  %v5253_v49 = vsub.s32 32, %v9790_v51 }
 0x72d   :  { %v5258_v0 = vadd.s32 127, %v5257_v36  ;;  %v9836_v41 = vsub.s32 %v5553_v53, %v5556_v50  ;;  %v5622_v33 = vor.u32 %v5621_v32, %v5620_v39  ;;  %v5365_v23 = vand.u32 2147483647, %v5364_v54 }
 0x72e   :  { %v5367_v55 = vcvt.s32.f32 %v5360_v3  ;;  %v5605_v27 = vor.u32 8388608, %v5604_v1  ;;  %v5628_v38 = vor.u32 %v5627_v40, %v5626_v4  ;;  %v5465_v22 = vsub.s32 4294967266, %v9830_v17 }
 0x72f   :  { %v5559_v13 = vsub.s32 0, %v9836_v41  ;;  %vm5629_vm4 = vcmp.lt.s32.totalorder %v5610_v45, 1  ;;  %vm5632_vm2 = vcmp.lt.s32.totalorder %v5610_v45, 4  ;;  %v5613_v16 = vshrl.u32 %v10169_v37, %v5612_v6 }
 0x730   :  { %vm5631_vm14 = vcmp.lt.s32.totalorder %v5610_v45, 3  ;;  %v5637_v10 = vsel %vm5629_vm4, %v5616_v47, %v5619_v12  ;;  %v5638_v14 = vsel %vm5632_vm2, %v5625_v31, 920167782  ;;  %vm5630_vm12 = vcmp.lt.s32.totalorder %v5610_v45, 2 }
 0x731   :  { %v5911_v53 = vmin.u32 %v5559_v13, %v9836_v41  ;;  %v5634_v36 = vsel %vm5632_vm2, %v5622_v33, 2102212464  ;;  %v5639_v3 = vsel %vm5631_vm14, %v5622_v33, %v5638_v14  ;;  %v5641_v11 = vsel %vm5629_vm4, %v5619_v12, %v5622_v33 }
 0x732   :  { %v5640_v1 = vsel %vm5630_vm12, %v5637_v10, %v5639_v3  ;;  %v5642_v44 = vsel %vm5632_vm2, %v5628_v38, 1326507024  ;;  %v5645_v54 = vshll.u32 %v5605_v27, 8  ;;  %vm5287_vm15 = vcmp.lt.s32.totalorder %v9510_v52, 0 }
 0x733   :  { %v5368_v32 = vmul.f32 %v5367_v55, %v5365_v23  ;;  %v5466_v37 = vadd.s32 127, %v5465_v22  ;;  %v5561_v6 = vclz %v5911_v53  ;;  %v5633_v48 = vsel %vm5629_vm4, %v5613_v16, %v5616_v47 }
 0x734   :  { %v5635_v58 = vsel %vm5631_vm14, %v5619_v12, %v5634_v36  ;;  %v5643_v19 = vsel %vm5631_vm14, %v5625_v31, %v5642_v44  ;;  %v9850_v30 = vmul.u32.u64.low %v5645_v54, %v5640_v1  ;;  %v9851_v40 = vmul.u32.u64.high %v5645_v54, %v5640_v1, %v9850_v30 }
 0x735   :  { %6460 = vcosq.f32 %v9815_v24  ;;  %v5259_v50 = vshll.u32 %v5258_v0, 23  ;;  %v5912_v38 = vadd.s32 4294967294, %v5561_v6  ;;  %v5644_v39 = vsel %vm5630_vm12, %v5641_v11, %v5643_v19 }
 0x736   :  { %v5255_v4 = vshrl.u32 %v9810_v5, %v5253_v49  ;;  %vm9859_vm3 = vcmp.le.f32.partialorder %v5285_v25, 0.7853982  ;;  %v5461_v47 = vsub.s32 32, %v9830_v17  ;;  %vm9869_vm9 = vcmp.le.f32.partialorder %v4973_v61, 0.7853982 }
 0x737   :  { %v9864_v12 = vmul.u32.u64.low %v5645_v54, %v5644_v39  ;;  %v9865_v31 = vmul.u32.u64.high %v5645_v54, %v5644_v39, %v9864_v12  ;;  %v5254_v5 = vshll.u32 %v9702_v9, %v9790_v51  ;;  %v5445_v25 = vadd.s32 %v9689_v43, %v9696_v60 }
 0x738   :  { %vm5913_vm13 = vcmp.lt.s32.totalorder %v5912_v38, 0  ;;  %v5636_v49 = vsel %vm5630_vm12, %v5633_v48, %v5635_v58  ;;  %v5369_v33 = vxor.u32 2147483648, %v5368_v32  ;;  %v5467_v23 = vshll.u32 %v5466_v37, 23 }
 0x739   :  { %v5564_v55 = vsel %vm5913_vm13, 0, %v5912_v38  ;;  %v5655_v27 = vadd.s32 1, %v9851_v40  ;;  %v5260_v13 = vor.u32 4788187, %v5259_v50  ;;  %v5549_v61 = vadd.s32 %v9766_v63, %v9764_v2 }
 0x73a   :  { %v5565_v16 = vsub.s32 32, %v5564_v55  ;;  %v5569_v10 = vsub.s32 4294967266, %v5564_v55  ;;  %v5256_v14 = vor.u32 %v5255_v4, %v5254_v5  ;;  %v5463_v53 = vshrl.u32 %v5445_v25, %v5461_v47 }
 0x73b   :  { %v5652_v9 = vmul.u32 %v5645_v54, %v5636_v49  ;;  %vm5654_vm5 = vc.u32 %v9865_v31, %v9850_v30  ;;  %v5566_v43 = vshll.u32 %v9836_v41, %v5564_v55  ;;  %v5370_v36 = vsel %vm5287_vm15, %v5369_v33, %v5368_v32 }
 0x73c   :  { %v5567_v60 = vshrl.u32 %v5549_v61, %v5565_v16  ;;  %v5570_v51 = vadd.s32 127, %v5569_v10  ;;  %v5656_v45 = vsel %vm5654_vm5, %v5655_v27, %v9851_v40  ;;  %v5462_v2 = vshll.u32 %v9734_v35, %v9830_v17 }
 0x73d   :  { %v5468_v63 = vor.u32 4788187, %v5467_v23  ;;  %v5657_v3 = vadd.s32 %v5656_v45, %v5652_v9  ;;  %6462 = vsinq.f32 %v9815_v24  ;;  %v5261_v1 = vand.u32 2147483647, %v5260_v13 }
 0x73e   :  { %v5568_v11 = vor.u32 %v5567_v60, %v5566_v43  ;;  %v5571_v44 = vshll.u32 %v5570_v51, 23  ;;  %v5057_v54 = vxor.u32 2147483648, %v9801_v46  ;;  %v5166_v41 = vsel %vm9773_vm8, 0, %v9806_v18 }
 0x73f   :  { %v5464_v37 = vor.u32 %v5463_v53, %v5462_v2  ;;  %v5658_v6 = vadd.s32 536870912, %v5657_v3  ;;  %v9894_v48 = vpop.eup %6460  ;;  %v5263_v32 = vcvt.s32.f32 %v5256_v14  ;;  %v5371_v35 = vsub.s32 4, %v9668_v42 }
 0x740   :  { %v5373_v24 = vsel %vm9859_vm3, %v9510_v52, %v5370_v36  ;;  %v5572_v17 = vor.u32 4788187, %v5571_v44  ;;  %v5062_v58 = vsel %vm9869_vm9, 0, %v9797_v20  ;;  %v5469_v19 = vand.u32 2147483647, %v5468_v63 }
 0x741   :  { %v9903_v40 = vshrl.u32 %v5658_v6, 30  ;;  %v5170_v28 = vadd.s32 3, %v5166_v41  ;;  %v5264_v18 = vmul.f32 %v5263_v32, %v5261_v1  ;;  %v5575_v38 = vcvt.s32.f32 %v5568_v11 }
 0x742   :  { %v5573_v50 = vand.u32 2147483647, %v5572_v17  ;;  %v5058_v39 = vsel %vm4975_vm0, %v5057_v54, %v9801_v46  ;;  %6464 = vcosq.f32 %v5373_v24  ;;  %v5471_v4 = vcvt.s32.f32 %v5464_v37 }
 0x743   :  { %v5660_v47 = vshll.u32 %v9903_v40, 30  ;;  %v5372_v12 = vsel %vm5287_vm15, %v5371_v35, %v9668_v42  ;;  %6466 = vsinq.f32 %v5373_v24  ;;  %v5579_v5 = vsub.s32 4, %v9822_v56 }
 0x744   :  { %v5576_v20 = vmul.f32 %v5575_v38, %v5573_v50  ;;  %vm9915_vm10 = vcmp.le.f32.partialorder %v5181_v8, 0.7853982  ;;  %vm5183_vm0 = vcmp.lt.s32.totalorder %v9340_v59, 0  ;;  %v5472_v46 = vmul.f32 %v5471_v4, %v5469_v19 }
 0x745   :  { %v9920_v49 = vsub.s32 %v5657_v3, %v5660_v47  ;;  %v5061_v33 = vsel %vm9869_vm9, %v9293_v29, %v5058_v39  ;;  %v9925_v42 = vadd.s32 3, %v5062_v58  ;;  %v5265_v23 = vxor.u32 2147483648, %v5264_v18 }
 0x746   :  { %v5577_v55 = vxor.u32 2147483648, %v5576_v20  ;;  %v5171_v27 = vand.u32 3, %v5170_v28  ;;  %v5374_v8 = vsel %vm9859_vm3, 0, %v5372_v12  ;;  %vm5495_vm8 = vcmp.lt.s32.totalorder %v9683_v34, 0 }
 0x747   :  { %v5663_v13 = vsub.s32 0, %v9920_v49  ;;  %v6463_v61 = vpop.eup %6462  ;;  %v5267_v16 = vsub.s32 4, %v9679_v62  ;;  %v10281_v10 = vand.u32 2147483647, %v9683_v34  ;;  %v5580_v53 = vsel %vm5495_vm8, %v5579_v5, %v9822_v56 }
 0x748   :  { %v5578_v14 = vsel %vm5495_vm8, %v5577_v55, %v5576_v20  ;;  %6468 = vcosq.f32 %v5061_v33  ;;  %v5473_v9 = vxor.u32 2147483648, %v5472_v46  ;;  %v5177_v60 = vxor.u32 2147483648, %v9894_v48 }
 0x749   :  { %vm9934_vm6 = vcmp.le.f32.partialorder %v10281_v10, 0.7853982  ;;  %v5915_v43 = vmin.u32 %v5663_v13, %v9920_v49  ;;  %v5266_v51 = vsel %vm5183_vm0, %v5265_v23, %v5264_v18  ;;  %v5378_v45 = vadd.s32 3, %v5374_v8 }
 0x74a   :  { %v5581_v22 = vsel %vm9934_vm6, %v9683_v34, %v5578_v14  ;;  %v5174_v36 = vxor.u32 2147483648, %v6463_v61  ;;  %v5582_v2 = vsel %vm9934_vm6, 0, %v5580_v53  ;;  %vm5172_vm11 = vcmp.lt.s32.totalorder %v5171_v27, 2 }
 0x74b   :  { %6470 = vcosq.f32 %v5581_v22  ;;  %v5665_v56 = vclz %v5915_v43  ;;  %v5268_v63 = vsel %vm5183_vm0, %v5267_v16, %v9679_v62  ;;  %vm5391_vm7 = vcmp.lt.s32.totalorder %v9584_v26, 0 }
 0x74c   :  { %6472 = vsinq.f32 %v5581_v22  ;;  %v6465_v3 = vpop.eup %6464  ;;  %vm5173_vm1 = vcmp.eq.s32.totalorder %v5171_v27, 0  ;;  %v5269_v1 = vsel %vm9915_vm10, %v9340_v59, %v5266_v51  ;;  %v5474_v11 = vsel %vm5391_vm7, %v5473_v9, %v5472_v46 }
 0x74d   :  { %6474 = vsinq.f32 %v5061_v33  ;;  %v5916_v44 = vadd.s32 4294967294, %v5665_v56  ;;  %v6467_v54 = vpop.eup %6466  ;;  %vm5176_vm4 = vcmp.eq.s32.totalorder %v5171_v27, 2  ;;  %v5379_v41 = vand.u32 3, %v5378_v45  ;;  %v9985_v27 = vpop.permute.xlu1 %5708 }
 0x74e   :  { %v10284_v37 = vand.u32 2147483647, %v9584_v26  ;;  %v5586_v62 = vadd.s32 3, %v5582_v2  ;;  %vm5169_vm14 = vweird.f32 %v9307_v21  ;;  %v5175_v32 = vsel %vm5173_vm1, %v9894_v48, %v5174_v36 }
 0x74f   :  { %v5178_v35 = vsel %vm5176_vm4, %v5177_v60, %v6463_v61  ;;  %v5270_v24 = vsel %vm9915_vm10, 0, %v5268_v63  ;;  %vm5917_vm12 = vcmp.lt.s32.totalorder %v5916_v44, 0  ;;  %6476 = vcosq.f32 %v5269_v1 }
 0x750   :  { %vm9959_vm2 = vcmp.le.f32.partialorder %v10284_v37, 0.7853982  ;;  %v5385_v17 = vxor.u32 2147483648, %v6465_v3  ;;  %v5668_v19 = vsel %vm5917_vm12, 0, %v5916_v44  ;;  %v5382_v28 = vxor.u32 2147483648, %v6467_v54 }
 0x751   :  { %v5477_v58 = vsel %vm9959_vm2, %v9584_v26, %v5474_v11  ;;  %v5653_v18 = vadd.s32 %v9850_v30, %v9865_v31  ;;  %v5669_v50 = vsub.s32 32, %v5668_v19  ;;  %v5673_v38 = vsub.s32 4294967266, %v5668_v19  ;;  %v5719_v11 = vpop.permute.xlu1 %5718 }
 0x752   :  { %6478 = vsinq.f32 %v5269_v1  ;;  %vm5384_vm15 = vcmp.eq.s32.totalorder %v5379_v41, 2  ;;  %v5475_v48 = vsub.s32 4, %v9718_v7  ;;  %v5587_v39 = vand.u32 3, %v5586_v62  ;;  %v9973_v4 = vpop.eup %6468 }
 0x753   :  { %6480 = vcosq.f32 %v5477_v58  ;;  %v5670_v47 = vshll.u32 %v9920_v49, %v5668_v19  ;;  %v5671_v12 = vshrl.u32 %v5653_v18, %v5669_v50  ;;  %v5674_v20 = vadd.s32 127, %v5673_v38 }
 0x754   :  { %v5179_v25 = vsel %vm5172_vm11, %v5175_v32, %v5178_v35  ;;  %vm5381_vm3 = vcmp.eq.s32.totalorder %v5379_v41, 0  ;;  %v5386_v46 = vsel %vm5384_vm15, %v5385_v17, %v6467_v54  ;;  %6482 = vsinq.f32 %v5477_v58 }
 0x755   :  { %v6471_v5 = vpop.eup %6470  ;;  %v5383_v31 = vsel %vm5381_vm3, %v6465_v3, %v5382_v28  ;;  %v5672_v23 = vor.u32 %v5671_v12, %v5670_v47  ;;  %v5675_v55 = vshll.u32 %v5674_v20, 23  ;;  %v9980_v13 = vand.u32 3, %v9925_v42  ;;  %v9989_v42 = vpop.permute.xlu0 %5713 }
 0x756   :  { %v6473_v30 = vpop.eup %6472  ;;  %v5593_v33 = vxor.u32 2147483648, %v6471_v5  ;;  %v5476_v49 = vsel %vm5391_vm7, %v5475_v48, %v9718_v7  ;;  %vm5592_vm9 = vcmp.eq.s32.totalorder %v5587_v39, 2  ;;  %vm5380_vm13 = vcmp.lt.s32.totalorder %v5379_v41, 2 }
 0x757   :  { %v9977_v8 = vpop.eup %6474  ;;  %v5590_v61 = vxor.u32 2147483648, %v6473_v30  ;;  %vm5589_vm5 = vcmp.eq.s32.totalorder %v5587_v39, 0  ;;  %v5676_v10 = vor.u32 4788187, %v5675_v55  ;;  %v5180_v0 = vsel %vm5169_vm14, nan, %v5179_v25 }
 0x758   :  { %v5594_v16 = vsel %vm5592_vm9, %v5593_v33, %v6473_v30  ;;  %v5274_v14 = vadd.s32 3, %v5270_v24  ;;  %v5387_v53 = vsel %vm5380_vm13, %v5383_v31, %v5386_v46  ;;  %v5478_v22 = vsel %vm9959_vm2, 0, %v5476_v49 }
 0x759   :  { %v5591_v9 = vsel %vm5589_vm5, %v6471_v5, %v5590_v61  ;;  %vm5588_vm10 = vcmp.lt.s32.totalorder %v5587_v39, 2  ;;  %v5677_v7 = vand.u32 2147483647, %v5676_v10  ;;  %v5679_v43 = vcvt.s32.f32 %v5672_v23  ;;  %v6477_v60 = vpop.eup %6476 }
 0x75a   :  { %vm5377_vm0 = vweird.f32 %v9510_v52  ;;  %v5595_v51 = vsel %vm5588_vm10, %v5591_v9, %v5594_v16  ;;  %vm5072_vm8 = vcmp.eq.s32.totalorder %v9980_v13, 2  ;;  %v5683_v36 = vsub.s32 4, %v9903_v40 }
 0x75b   :  { %v5388_v45 = vsel %vm5377_vm0, nan, %v5387_v53  ;;  %v5680_v21 = vmul.f32 %v5679_v43, %v5677_v7  ;;  %v5726_v56 = vmul.f32 %v9985_v27, %v9535_v15  ;;  %v5728_v63 = vmul.f32 %v9989_v42, %v5180_v0  ;;  %v10291_v15 = vld [vmem:[#allocation3_spill] sm:$0xff] }
 0x75c   :  { %v6479_v2 = vpop.eup %6478  ;;  %v5482_v3 = vadd.s32 3, %v5478_v22  ;;  %vm5585_vm6 = vweird.f32 %v9683_v34  ;;  %v5073_v52 = vxor.u32 2147483648, %v9973_v4  ;;  %v5275_v44 = vand.u32 3, %v5274_v14  ;;  %v5724_v34 = vpop.permute.xlu0 %5723 }
 0x75d   :  { %v6481_v1 = vpop.eup %6480  ;;  %v5596_v54 = vsel %vm5585_vm6, nan, %v5595_v51  ;;  %v5681_v41 = vxor.u32 2147483648, %v5680_v21  ;;  %v5070_v6 = vxor.u32 2147483648, %v9977_v8  ;;  %v5730_v62 = vmul.f32 %v5719_v11, %v5388_v45 }
 0x75e   :  { %v6483_v37 = vpop.eup %6482  ;;  %v10287_v32 = vand.u32 2147483647, %v9716_v57  ;;  %vm5599_vm7 = vcmp.lt.s32.totalorder %v9716_v57, 0  ;;  %v5278_v35 = vxor.u32 2147483648, %v6479_v2  ;;  %v5281_v24 = vxor.u32 2147483648, %v6477_v60 }
 0x75f   :  { %v5682_v17 = vsel %vm5599_vm7, %v5681_v41, %v5680_v21  ;;  %v5684_v58 = vsel %vm5599_vm7, %v5683_v36, %v9903_v40  ;;  %v5734_v19 = vadd.f32 %v5728_v63, %v5726_v56  ;;  %v5483_v28 = vand.u32 3, %v5482_v3 }
 0x760   :  { %vm10004_vm11 = vcmp.le.f32.partialorder %v10287_v32, 0.7853982  ;;  %v5732_v18 = vmul.f32 %v5724_v34, %v5596_v54  ;;  %vm5277_vm1 = vcmp.eq.s32.totalorder %v5275_v44, 0  ;;  %v5486_v38 = vxor.u32 2147483648, %v6483_v37  ;;  %v10290_v54 = vld [vmem:[#allocation4_spill] sm:$0xff] }
 0x761   :  { %v5685_v50 = vsel %vm10004_vm11, %v9716_v57, %v5682_v17  ;;  %v5489_v48 = vxor.u32 2147483648, %v6481_v1  ;;  %vm5280_vm4 = vcmp.eq.s32.totalorder %v5275_v44, 2  ;;  %v5735_v39 = vadd.f32 %v5734_v19, %v5730_v62 }
 0x762   :  { %6484 = vcosq.f32 %v5685_v50  ;;  %v5686_v47 = vsel %vm10004_vm11, 0, %v5684_v58  ;;  %vm5069_vm2 = vcmp.eq.s32.totalorder %v9980_v13, 0  ;;  %v5074_v40 = vsel %vm5072_vm8, %v5073_v52, %v9977_v8 }
 0x763   :  { %6486 = vsinq.f32 %v5685_v50  ;;  %v5279_v12 = vsel %vm5277_vm1, %v6477_v60, %v5278_v35  ;;  %v5282_v20 = vsel %vm5280_vm4, %v5281_v24, %v6479_v2  ;;  %v5071_v5 = vsel %vm5069_vm2, %v9973_v4, %v5070_v6 }
 0x764   :  { %vm5485_vm14 = vcmp.eq.s32.totalorder %v5483_v28, 0  ;;  %vm5488_vm12 = vcmp.eq.s32.totalorder %v5483_v28, 2  ;;  %v5736_v25 = vadd.f32 %v5735_v39, %v5732_v18  ;;  %vm5276_vm15 = vcmp.lt.s32.totalorder %v5275_v44, 2 }
 0x765   :  { %v5487_v46 = vsel %vm5485_vm14, %v6481_v1, %v5486_v38  ;;  %v5490_v30 = vsel %vm5488_vm12, %v5489_v48, %v6483_v37  ;;  %v5690_v31 = vadd.s32 3, %v5686_v47  ;;  %v5283_v33 = vsel %vm5276_vm15, %v5279_v12, %v5282_v20 }
 0x766   :  { %vm5068_vm3 = vcmp.lt.s32.totalorder %v9980_v13, 2  ;;  %vm5484_vm9 = vcmp.lt.s32.totalorder %v5483_v28, 2  ;;  %vm5273_vm13 = vweird.f32 %v9340_v59  ;;  %v5737_v8 = vrot.slane %v5736_v25, 4 }
 0x767   :  { %v5075_v23 = vsel %vm5068_vm3, %v5071_v5, %v5074_v40  ;;  %v5491_v55 = vsel %vm5484_vm9, %v5487_v46, %v5490_v30  ;;  %v5284_v49 = vsel %vm5273_vm13, nan, %v5283_v33  ;;  %v5691_v61 = vand.u32 3, %v5690_v31 }
 0x768   :  { %vm5065_vm5 = vweird.f32 %v9293_v29  ;;  %vm5481_vm10 = vweird.f32 %v9584_v26  ;;  %v5729_v14 = vmul.f32 %v9989_v42, %v5284_v49  ;;  %v5738_v53 = vadd.f32 %v5737_v8, %v5736_v25 }
 0x769   :  { %v5076_v16 = vsel %vm5065_vm5, nan, %v5075_v23  ;;  %v5492_v10 = vsel %vm5481_vm10, nan, %v5491_v55  ;;  %vm5696_vm0 = vcmp.eq.s32.totalorder %v5691_v61, 2  ;;  %vm5693_vm8 = vcmp.eq.s32.totalorder %v5691_v61, 0 }
 0x76a   :  { %v5727_v59 = vmul.f32 %v9985_v27, %v5076_v16  ;;  %v5731_v22 = vmul.f32 %v5719_v11, %v5492_v10  ;;  %vm5692_vm6 = vcmp.lt.s32.totalorder %v5691_v61, 2  ;;  %v5739_v60 = vrot.slane %v5738_v53, 2  ;;  %v5755_v11 = vpop.permute.xlu1 %5754 }
 0x76b   :  { %vm5689_vm11 = vweird.f32 %v9716_v57  ;;  %v6499_v27 = vmov 1966171168   ;;  %v5760_v41 = vrot.slane %v5755_v11, %v10290_v54  ;;  %v10292_v17 = vlaneseq }
 0x76c   :  { %v6485_v4 = vpop.eup %6484  ;;  %v5743_v29 = vadd.f32 %v5729_v14, %v5727_v59  ;;  %v5740_v42 = vadd.f32 %v5739_v60, %v5738_v53  ;;  %v5767_v1 = vunpack.c.l.s4 %v6499_v27 }
 0x76d   :  { %v6487_v0 = vpop.eup %6486  ;;  %v5697_v13 = vxor.u32 2147483648, %v6485_v4  ;;  %vm5783_vm7 = vcmp.lt.s32.totalorder %v10292_v17, 256 }
 0x76e   :  { %v5694_v9 = vxor.u32 2147483648, %v6487_v0  ;;  %v5744_v45 = vadd.f32 %v5743_v29, %v5731_v22  ;;  %v5741_v56 = vrot.slane %v5740_v42, 1  ;;  %v5768_v6 = vunpack.c.0.s8 %v5767_v1 }
 0x76f   :  { %v5698_v7 = vsel %vm5696_vm0, %v5697_v13, %v6487_v0 }
 0x770   :  { %v5695_v43 = vsel %vm5693_vm8, %v6485_v4, %v5694_v9  ;;  %v5742_v52 = vadd.f32 %v5741_v56, %v5740_v42 }
 0x771   :  { %v5699_v26 = vsel %vm5692_vm6, %v5695_v43, %v5698_v7 }
 0x772   :  { %v5700_v51 = vsel %vm5689_vm11, nan, %v5699_v26  ;;  %v5761_v57 = vadd.f32 %v5760_v41, %v5742_v52 }
 0x773   :  { %v5733_v21 = vmul.f32 %v5724_v34, %v5700_v51  ;;  %v5771_v34 = vsub.s32 %v5768_v6, %v10291_v15 }
 0x775   :  { %v5745_v36 = vadd.f32 %v5744_v45, %v5733_v21 }
 0x777   :  { %v5746_v2 = vrot.slane %v5745_v36, 4 }
 0x779   :  { %v5747_v63 = vadd.f32 %v5746_v2, %v5745_v36 }
 0x77b   :  { %v5748_v3 = vrot.slane %v5747_v63, 2 }
 0x77d   :  { %v5749_v44 = vadd.f32 %v5748_v3, %v5747_v63 }
 0x77f   :  { %v5750_v37 = vrot.slane %v5749_v44, 1 }
 0x781   :  { %v5751_v62 = vadd.f32 %v5750_v37, %v5749_v44 }
 0x783   :  { %v5762_v32 = vadd.f32 %v5760_v41, %v5751_v62 }
 0x785   :  { %v5765_v35 = vcombine.low %v5761_v57, %v5762_v32 }
 0x787   :  { %v5772_v24 = vrot.slane %v5765_v35, %v5771_v34 }
 0x789   :  { %v5779_v58 = vrot.slane %v5772_v24, %v5771_v34 }
 0x78b   :  { %5785 = vst.msk [vmem:[%s10040_s7] sm:$0x3] %vm5783_vm7, %v5779_v58 }

</bundles_post_ra>
